<compile_context>
chip_gen: v7x
topology: tpu7x:2x2x1
jax: 0.10.0
libtpu: 0.0.40
codegen_flags: <defaults>
</compile_context>

<pallas_src>
import functools
import math

import jax
import jax.numpy as jnp
from jax.experimental import pallas as pl
from jax.experimental.pallas import tpu as pltpu

NEG_INF = -1e30  # numerically identical to float('-inf') after softmax


# ----------------------------------------------------------------------------
# Math shared by the Pallas kernel body and the pure-JAX reference
# ----------------------------------------------------------------------------
def _layer_norm(x, gamma, beta, eps=1e-5):
    mu = jnp.mean(x, axis=-1, keepdims=True)
    var = jnp.mean((x - mu) ** 2, axis=-1, keepdims=True)
    return (x - mu) * jax.lax.rsqrt(var + eps) * gamma + beta


def _mha_math(xq, xkv, attn_mask, B, Sq, Skv, nhead, wqkv, bqkv, wo, bo):
    """torch.nn.MultiheadAttention forward (dropout=0), batch folded into rows.

    xq: (B*Sq, D) f32, xkv: (B*Skv, D) f32
    wqkv: (3, D, D)       == in_proj_weight.T split into [Wq.T, Wk.T, Wv.T]
    bqkv: (3, 1, D)       == in_proj_bias split
    wo:   (nhead, dh, D)  == out_proj.weight.T reshaped per head
    bo:   (1, D)          == out_proj.bias
    """
    D = xq.shape[-1]
    dh = D // nhead
    scale = 1.0 / math.sqrt(dh)
    bf = jnp.bfloat16
    xq_b = xq.astype(bf)
    xkv_b = xkv.astype(bf)
    q = jnp.dot(xq_b, wqkv[0].astype(bf), preferred_element_type=jnp.float32) + bqkv[0]
    k = jnp.dot(xkv_b, wqkv[1].astype(bf), preferred_element_type=jnp.float32) + bqkv[1]
    v = jnp.dot(xkv_b, wqkv[2].astype(bf), preferred_element_type=jnp.float32) + bqkv[2]
    acc = jnp.zeros((B * Sq, D), jnp.float32)
    for h in range(nhead):                         # static unroll; heads live in lanes
        sl = slice(h * dh, (h + 1) * dh)
        qh = (q[:, sl] * scale).reshape(B, Sq, dh).astype(bf)
        kh = k[:, sl].reshape(B, Skv, dh).astype(bf)
        vh = v[:, sl].reshape(B, Skv, dh).astype(bf)
        s = jnp.einsum('bqd,bkd->bqk', qh, kh, preferred_element_type=jnp.float32)
        if attn_mask is not None:
            s = s + attn_mask
        s = s - jnp.max(s, axis=-1, keepdims=True)
        p = jnp.exp(s)
        p = p / jnp.sum(p, axis=-1, keepdims=True)
        oh = jnp.einsum('bqk,bkd->bqd', p.astype(bf), vh,
                        preferred_element_type=jnp.float32)
        # out_proj(concat_h oh_h) == sum_h  oh_h @ Wo.T[h*dh:(h+1)*dh, :]
        acc = acc + jnp.dot(oh.reshape(B * Sq, dh).astype(bf), wo[h].astype(bf),
                            preferred_element_type=jnp.float32)
    return acc + bo


def _one_decoder_layer(x, mem, tgt_mask, B, S, Sm, nhead,
                       sa_wqkv, sa_bqkv, sa_wo, sa_bo,
                       ca_wqkv, ca_bqkv, ca_wo, ca_bo,
                       w1, b1, w2, b2, g1, be1, g2, be2, g3, be3):
    """One post-norm TransformerDecoderLayer on flattened (B*S, D) activations."""
    bf = jnp.bfloat16
    # self-attention block
    sa = _mha_math(x, x, tgt_mask, B, S, S, nhead, sa_wqkv, sa_bqkv, sa_wo, sa_bo)
    x = _layer_norm(x + sa, g1, be1)
    # cross-attention block (memory_mask / key_padding_mask = None)
    ca = _mha_math(x, mem, None, B, S, Sm, nhead, ca_wqkv, ca_bqkv, ca_wo, ca_bo)
    x = _layer_norm(x + ca, g2, be2)
    # feed-forward block (relu)
    h = jnp.dot(x.astype(bf), w1.astype(bf), preferred_element_type=jnp.float32) + b1
    h = jnp.maximum(h, 0.0)
    ff = jnp.dot(h.astype(bf), w2.astype(bf), preferred_element_type=jnp.float32) + b2
    x = _layer_norm(x + ff, g3, be3)
    return x


# ----------------------------------------------------------------------------
# Fused Pallas kernel: posenc + all decoder layers in a single pallas_call
# ----------------------------------------------------------------------------
def _fused_decoder_kernel(tgt_ref, pe_ref, mem_ref, mask_ref,
                          sa_wqkv_ref, sa_bqkv_ref, sa_wo_ref,
                          ca_wqkv_ref, ca_bqkv_ref, ca_wo_ref,
                          w1_ref, b1_ref, w2_ref, dvec_ref,
                          o_ref, *, B, S, Sm, nhead, emb_scale):
    layer = pl.program_id(0)

    # Layer 0: fused positional encoding, x = (tgt + pe) * sqrt(ninp).
    # o_ref has a constant index_map -> it stays resident in VMEM across the
    # whole layer grid and is written back to HBM once at the end.
    @pl.when(layer == 0)
    def _():
        o_ref[...] = (tgt_ref[...] + pe_ref[...]) * emb_scale

    x = o_ref[...]                 # (B*S, D) activations, carried across layers
    mem = mem_ref[...]             # (B*Sm, D)
    mask = mask_ref[...]           # (S, S)
    dv = dvec_ref[0]               # (9, 1, D): [sa_bo, ca_bo, b2, g1,be1,g2,be2,g3,be3]

    x = _one_decoder_layer(
        x, mem, mask, B, S, Sm, nhead,
        sa_wqkv_ref[0], sa_bqkv_ref[0], sa_wo_ref[0], dv[0],
        ca_wqkv_ref[0], ca_bqkv_ref[0], ca_wo_ref[0], dv[1],
        w1_ref[0], b1_ref[0], w2_ref[0], dv[2],
        dv[3], dv[4], dv[5], dv[6], dv[7], dv[8])

    o_ref[...] = x.astype(o_ref.dtype)


def pack_params(all_layer_params, D, nhead):
    """Stack per-layer PyTorch-layout params into kernel-friendly arrays."""
    dh = D // nhead

    def split_w(w):   # in_proj_weight.T (D, 3D) -> (3, D, D)
        return jnp.stack([w[:, :D], w[:, D:2 * D], w[:, 2 * D:]], axis=0)

    def split_b(b):   # in_proj_bias (1, 3D) -> (3, 1, D)
        return jnp.stack([b[:, :D], b[:, D:2 * D], b[:, 2 * D:]], axis=0)

    acc = [[] for _ in range(10)]
    for p in all_layer_params:
        (swin, sbin, swo, sbo, cwin, cbin, cwo, cbo,
         w1, b1, w2, b2, g1, be1, g2, be2, g3, be3) = p
        acc[0].append(split_w(swin))
        acc[1].append(split_b(sbin))
        acc[2].append(swo.reshape(nhead, dh, D))
        acc[3].append(split_w(cwin))
        acc[4].append(split_b(cbin))
        acc[5].append(cwo.reshape(nhead, dh, D))
        acc[6].append(w1)
        acc[7].append(b1)
        acc[8].append(w2)
        acc[9].append(jnp.stack([sbo, cbo, b2, g1, be1, g2, be2, g3, be3], axis=0))
    return tuple(jnp.stack(a, axis=0) for a in acc)


def decoder_layer_forward(tgt, memory, pe, tgt_mask, all_layer_params, ninp, nhead):
    """Equivalent of Decoder_layer.forward (batch-first in, batch-first out)."""
    B, S, D = tgt.shape
    Sm = memory.shape[1]
    L = len(all_layer_params)
    F = all_layer_params[0][8].shape[1]            # nhid
    dh = D // nhead
    assert D % nhead == 0

    packed = pack_params(all_layer_params, D, nhead)
    tgt2d = tgt.reshape(B * S, D)
    pe2d = jnp.tile(pe, (B, 1))                    # PE replicated over the batch
    mem2d = memory.reshape(B * Sm, D)

    kernel = functools.partial(_fused_decoder_kernel, B=B, S=S, Sm=Sm,
                               nhead=nhead, emb_scale=math.sqrt(ninp))

    const2d = lambda l: (0, 0)
    per_layer3 = lambda l: (l, 0, 0)
    per_layer4 = lambda l: (l, 0, 0, 0)

    in_specs = [
        pl.BlockSpec((B * S, D), const2d),             # tgt (flattened)
        pl.BlockSpec((B * S, D), const2d),             # positional encoding
        pl.BlockSpec((B * Sm, D), const2d),            # memory (flattened)
        pl.BlockSpec((S, S), const2d),                 # tgt_mask
        pl.BlockSpec((1, 3, D, D), per_layer4),        # sa in-proj weights
        pl.BlockSpec((1, 3, 1, D), per_layer4),        # sa in-proj biases
        pl.BlockSpec((1, nhead, dh, D), per_layer4),   # sa out-proj weight (per head)
        pl.BlockSpec((1, 3, D, D), per_layer4),        # ca in-proj weights
        pl.BlockSpec((1, 3, 1, D), per_layer4),        # ca in-proj biases
        pl.BlockSpec((1, nhead, dh, D), per_layer4),   # ca out-proj weight (per head)
        pl.BlockSpec((1, D, F), per_layer3),           # ffn w1
        pl.BlockSpec((1, 1, F), per_layer3),           # ffn b1
        pl.BlockSpec((1, F, D), per_layer3),           # ffn w2
        pl.BlockSpec((1, 9, 1, D), per_layer4),        # [sa_bo, ca_bo, b2, LN params]
    ]

    out2d = pl.pallas_call(
        kernel,
        out_shape=jax.ShapeDtypeStruct((B * S, D), jnp.float32),
        grid=(L,),                                     # layer loop; x resident in VMEM
        in_specs=in_specs,
        out_specs=pl.BlockSpec((B * S, D), const2d),
        compiler_params=pltpu.CompilerParams(
            dimension_semantics=("arbitrary",)),       # layers are sequential
    )(tgt2d, pe2d, mem2d, tgt_mask, *packed)
    return out2d.reshape(B, S, D)


# ----------------------------------------------------------------------------
# Deterministic setup + pure-JAX reference
# ----------------------------------------------------------------------------
def causal_mask(S):
    i = jnp.arange(S)[:, None]
    j = jnp.arange(S)[None, :]
    return jnp.where(j <= i, 0.0, NEG_INF).astype(jnp.float32)


def sinusoidal_pe(S, D):
    pos = jnp.arange(S, dtype=jnp.float32)[:, None]
    div = jnp.exp(jnp.arange(0, D, 2, dtype=jnp.float32) * (-math.log(10000.0) / D))
    pe = jnp.zeros((S, D), jnp.float32)
    pe = pe.at[:, 0::2].set(jnp.sin(pos * div))
    pe = pe.at[:, 1::2].set(jnp.cos(pos * div))
    return pe


def init_layer_params(key, D, nhid):
    ks = jax.random.split(key, 8)

    def w(k, shape, s=0.05):
        return jax.random.normal(k, shape, jnp.float32) * s

    sa_win, sa_bin = w(ks[0], (D, 3 * D)), jnp.zeros((1, 3 * D), jnp.float32)
    sa_wo, sa_bo = w(ks[1], (D, D)), jnp.zeros((1, D), jnp.float32)
    ca_win, ca_bin = w(ks[2], (D, 3 * D)), jnp.zeros((1, 3 * D), jnp.float32)
    ca_wo, ca_bo = w(ks[3], (D, D)), jnp.zeros((1, D), jnp.float32)
    w1, b1 = w(ks[4], (D, nhid)), w(ks[5], (1, nhid), 0.01)
    w2, b2 = w(ks[6], (nhid, D)), w(ks[7], (1, D), 0.01)
    ones, zeros = jnp.ones((1, D), jnp.float32), jnp.zeros((1, D), jnp.float32)
    return [sa_win, sa_bin, sa_wo, sa_bo, ca_win, ca_bin, ca_wo, ca_bo,
            w1, b1, w2, b2, ones, zeros, ones, zeros, ones, zeros]


def ref_forward(tgt, memory, pe, tgt_mask, all_layer_params, ninp, nhead):
    B, S, D = tgt.shape
    Sm = memory.shape[1]
    packed = pack_params(all_layer_params, D, nhead)
    (sa_wqkv, sa_bqkv, sa_wo, ca_wqkv, ca_bqkv, ca_wo, w1, b1, w2, dvecs) = packed
    x = (tgt.reshape(B * S, D) + jnp.tile(pe, (B, 1))) * math.sqrt(ninp)
    mem2d = memory.reshape(B * Sm, D)
    for l in range(len(all_layer_params)):
        dv = dvecs[l]
        x = _one_decoder_layer(
            x, mem2d, tgt_mask, B, S, Sm, nhead,
            sa_wqkv[l], sa_bqkv[l], sa_wo[l], dv[0],
            ca_wqkv[l], ca_bqkv[l], ca_wo[l], dv[1],
            w1[l], b1[l], w2[l], dv[2],
            dv[3], dv[4], dv[5], dv[6], dv[7], dv[8])
    return x.reshape(B, S, D)


if __name__ == "__main__":
    B, S, Sm = 2, 8, 12
    ninp, nhead, nhid, nlayers = 32, 4, 64, 2
    his_mask = True

    key = jax.random.PRNGKey(0)
    k_tgt, k_mem, k_p = jax.random.split(key, 3)
    tgt = jax.random.normal(k_tgt, (B, S, ninp), jnp.float32)      # (B, S, D)
    memory = jax.random.normal(k_mem, (B, Sm, ninp), jnp.float32)  # (B, Sm, D)

    pe = sinusoidal_pe(S, ninp)
    mask = causal_mask(S) if his_mask else jnp.zeros((S, S), jnp.float32)
    params = [init_layer_params(k, ninp, nhid) for k in jax.random.split(k_p, nlayers)]

    out = decoder_layer_forward(tgt, memory, pe, mask, params, ninp, nhead)
    out = jax.block_until_ready(out)

    ref = ref_forward(tgt, memory, pe, mask, params, ninp, nhead)
    assert out.shape == (B, S, ninp)
    assert bool(jnp.all(jnp.isfinite(out)))
    err = float(jnp.max(jnp.abs(out - ref)))
    assert bool(jnp.allclose(out, ref, rtol=5e-3, atol=5e-3)), err
    print("KERNEL_OK")
</pallas_src>

<mosaic_0001>
module attributes {stable_mosaic.version = 11 : i64} {
  func.func @_fused_decoder_kernel(%arg0: i32, %arg1: memref<16x32xf32, #tpu.memory_space<vmem>>, %arg2: memref<16x32xf32, #tpu.memory_space<vmem>>, %arg3: memref<24x32xf32, #tpu.memory_space<vmem>>, %arg4: memref<8x8xf32, #tpu.memory_space<vmem>>, %arg5: memref<1x3x32x32xf32, #tpu.memory_space<vmem>>, %arg6: memref<1x3x1x32xf32, #tpu.memory_space<vmem>>, %arg7: memref<1x4x8x32xf32, #tpu.memory_space<vmem>>, %arg8: memref<1x3x32x32xf32, #tpu.memory_space<vmem>>, %arg9: memref<1x3x1x32xf32, #tpu.memory_space<vmem>>, %arg10: memref<1x4x8x32xf32, #tpu.memory_space<vmem>>, %arg11: memref<1x32x64xf32, #tpu.memory_space<vmem>>, %arg12: memref<1x1x64xf32, #tpu.memory_space<vmem>>, %arg13: memref<1x64x32xf32, #tpu.memory_space<vmem>>, %arg14: memref<1x9x1x32xf32, #tpu.memory_space<vmem>>, %arg15: memref<16x32xf32, #tpu.memory_space<vmem>>) attributes {dimension_semantics = [#tpu.dimension_semantics<arbitrary>], iteration_bounds = array<i64: 2>, scalar_prefetch = 0 : i64, scratch_operands = 0 : i64, tpu.core_type = #tpu.core_type<tc>, window_params = [{pipeline_mode = #tpu.pipeline_mode<synchronous>, transform_indices = @transform_0, window_bounds = array<i64: 16, 32>}, {pipeline_mode = #tpu.pipeline_mode<synchronous>, transform_indices = @transform_1, window_bounds = array<i64: 16, 32>}, {pipeline_mode = #tpu.pipeline_mode<synchronous>, transform_indices = @transform_2, window_bounds = array<i64: 24, 32>}, {pipeline_mode = #tpu.pipeline_mode<synchronous>, transform_indices = @transform_3, window_bounds = array<i64: 8, 8>}, {transform_indices = @transform_4, window_bounds = array<i64: 1, 3, 32, 32>}, {transform_indices = @transform_5, window_bounds = array<i64: 1, 3, 1, 32>}, {transform_indices = @transform_6, window_bounds = array<i64: 1, 4, 8, 32>}, {transform_indices = @transform_7, window_bounds = array<i64: 1, 3, 32, 32>}, {transform_indices = @transform_8, window_bounds = array<i64: 1, 3, 1, 32>}, {transform_indices = @transform_9, window_bounds = array<i64: 1, 4, 8, 32>}, {transform_indices = @transform_10, window_bounds = array<i64: 1, 32, 64>}, {transform_indices = @transform_11, window_bounds = array<i64: 1, 1, 64>}, {transform_indices = @transform_12, window_bounds = array<i64: 1, 64, 32>}, {transform_indices = @transform_13, window_bounds = array<i64: 1, 9, 1, 32>}, {pipeline_mode = #tpu.pipeline_mode<synchronous>, transform_indices = @transform_14, window_bounds = array<i64: 16, 32>}]} {
    %c0_i32 = arith.constant 0 : i32
    %0 = arith.cmpi eq, %arg0, %c0_i32 : i32
    %1 = arith.extui %0 : i1 to i32
    %c0_i32_0 = arith.constant 0 : i32
    %2 = arith.cmpi ne, %1, %c0_i32_0 : i32
    scf.if %2 {
      %c0_118 = arith.constant 0 : index
      %c0_119 = arith.constant 0 : index
      %436 = vector.load %arg1[%c0_118, %c0_119] : memref<16x32xf32, #tpu.memory_space<vmem>>, vector<16x32xf32>
      %c0_120 = arith.constant 0 : index
      %c0_121 = arith.constant 0 : index
      %437 = vector.load %arg2[%c0_120, %c0_121] : memref<16x32xf32, #tpu.memory_space<vmem>>, vector<16x32xf32>
      %438 = arith.addf %436, %437 : vector<16x32xf32>
      %cst_122 = arith.constant 5.65685415 : f32
      %439 = vector.broadcast %cst_122 : f32 to vector<16x32xf32>
      %440 = arith.mulf %438, %439 : vector<16x32xf32>
      %c0_123 = arith.constant 0 : index
      %c0_124 = arith.constant 0 : index
      %441 = vector.load %arg15[%c0_123, %c0_124] : memref<16x32xf32, #tpu.memory_space<vmem>>, vector<16x32xf32>
      tpu.vector_store %arg15[%c0_123, %c0_124], %440 {strides = array<i32>} : memref<16x32xf32, #tpu.memory_space<vmem>>, vector<16x32xf32>,
    } else {
    }
    %c0 = arith.constant 0 : index
    %c0_1 = arith.constant 0 : index
    %3 = vector.load %arg15[%c0, %c0_1] : memref<16x32xf32, #tpu.memory_space<vmem>>, vector<16x32xf32>
    %c0_2 = arith.constant 0 : index
    %c0_3 = arith.constant 0 : index
    %4 = vector.load %arg3[%c0_2, %c0_3] : memref<24x32xf32, #tpu.memory_space<vmem>>, vector<24x32xf32>
    %c0_4 = arith.constant 0 : index
    %c0_5 = arith.constant 0 : index
    %5 = vector.load %arg4[%c0_4, %c0_5] : memref<8x8xf32, #tpu.memory_space<vmem>>, vector<8x8xf32>
    %c0_6 = arith.constant 0 : index
    %c0_7 = arith.constant 0 : index
    %c0_8 = arith.constant 0 : index
    %c0_9 = arith.constant 0 : index
    %6 = vector.load %arg14[%c0_6, %c0_7, %c0_8, %c0_9] : memref<1x9x1x32xf32, #tpu.memory_space<vmem>>, vector<1x9x1x32xf32>
    %7 = vector.shape_cast %6 : vector<1x9x1x32xf32> to vector<9x1x32xf32>
    %c0_10 = arith.constant 0 : index
    %c0_11 = arith.constant 0 : index
    %c0_12 = arith.constant 0 : index
    %c0_13 = arith.constant 0 : index
    %8 = vector.load %arg5[%c0_10, %c0_11, %c0_12, %c0_13] : memref<1x3x32x32xf32, #tpu.memory_space<vmem>>, vector<1x3x32x32xf32>
    %9 = vector.shape_cast %8 : vector<1x3x32x32xf32> to vector<3x32x32xf32>
    %c0_14 = arith.constant 0 : index
    %c0_15 = arith.constant 0 : index
    %c0_16 = arith.constant 0 : index
    %c0_17 = arith.constant 0 : index
    %10 = vector.load %arg6[%c0_14, %c0_15, %c0_16, %c0_17] : memref<1x3x1x32xf32, #tpu.memory_space<vmem>>, vector<1x3x1x32xf32>
    %11 = vector.shape_cast %10 : vector<1x3x1x32xf32> to vector<3x1x32xf32>
    %c0_18 = arith.constant 0 : index
    %c0_19 = arith.constant 0 : index
    %c0_20 = arith.constant 0 : index
    %c0_21 = arith.constant 0 : index
    %12 = vector.load %arg7[%c0_18, %c0_19, %c0_20, %c0_21] : memref<1x4x8x32xf32, #tpu.memory_space<vmem>>, vector<1x4x8x32xf32>
    %13 = vector.shape_cast %12 : vector<1x4x8x32xf32> to vector<4x8x32xf32>
    %14 = vector.extract_strided_slice %7 {offsets = [0, 0, 0], sizes = [1, 1, 32], strides = [1, 1, 1]} : vector<9x1x32xf32> to vector<1x1x32xf32>
    %15 = vector.shape_cast %14 : vector<1x1x32xf32> to vector<1x32xf32>
    %c0_22 = arith.constant 0 : index
    %c0_23 = arith.constant 0 : index
    %c0_24 = arith.constant 0 : index
    %c0_25 = arith.constant 0 : index
    %16 = vector.load %arg8[%c0_22, %c0_23, %c0_24, %c0_25] : memref<1x3x32x32xf32, #tpu.memory_space<vmem>>, vector<1x3x32x32xf32>
    %17 = vector.shape_cast %16 : vector<1x3x32x32xf32> to vector<3x32x32xf32>
    %c0_26 = arith.constant 0 : index
    %c0_27 = arith.constant 0 : index
    %c0_28 = arith.constant 0 : index
    %c0_29 = arith.constant 0 : index
    %18 = vector.load %arg9[%c0_26, %c0_27, %c0_28, %c0_29] : memref<1x3x1x32xf32, #tpu.memory_space<vmem>>, vector<1x3x1x32xf32>
    %19 = vector.shape_cast %18 : vector<1x3x1x32xf32> to vector<3x1x32xf32>
    %c0_30 = arith.constant 0 : index
    %c0_31 = arith.constant 0 : index
    %c0_32 = arith.constant 0 : index
    %c0_33 = arith.constant 0 : index
    %20 = vector.load %arg10[%c0_30, %c0_31, %c0_32, %c0_33] : memref<1x4x8x32xf32, #tpu.memory_space<vmem>>, vector<1x4x8x32xf32>
    %21 = vector.shape_cast %20 : vector<1x4x8x32xf32> to vector<4x8x32xf32>
    %22 = vector.extract_strided_slice %7 {offsets = [1, 0, 0], sizes = [1, 1, 32], strides = [1, 1, 1]} : vector<9x1x32xf32> to vector<1x1x32xf32>
    %23 = vector.shape_cast %22 : vector<1x1x32xf32> to vector<1x32xf32>
    %c0_34 = arith.constant 0 : index
    %c0_35 = arith.constant 0 : index
    %c0_36 = arith.constant 0 : index
    %24 = vector.load %arg11[%c0_34, %c0_35, %c0_36] : memref<1x32x64xf32, #tpu.memory_space<vmem>>, vector<1x32x64xf32>
    %25 = vector.shape_cast %24 : vector<1x32x64xf32> to vector<32x64xf32>
    %c0_37 = arith.constant 0 : index
    %c0_38 = arith.constant 0 : index
    %c0_39 = arith.constant 0 : index
    %26 = vector.load %arg12[%c0_37, %c0_38, %c0_39] : memref<1x1x64xf32, #tpu.memory_space<vmem>>, vector<1x1x64xf32>
    %27 = vector.shape_cast %26 : vector<1x1x64xf32> to vector<1x64xf32>
    %c0_40 = arith.constant 0 : index
    %c0_41 = arith.constant 0 : index
    %c0_42 = arith.constant 0 : index
    %28 = vector.load %arg13[%c0_40, %c0_41, %c0_42] : memref<1x64x32xf32, #tpu.memory_space<vmem>>, vector<1x64x32xf32>
    %29 = vector.shape_cast %28 : vector<1x64x32xf32> to vector<64x32xf32>
    %30 = vector.extract_strided_slice %7 {offsets = [2, 0, 0], sizes = [1, 1, 32], strides = [1, 1, 1]} : vector<9x1x32xf32> to vector<1x1x32xf32>
    %31 = vector.shape_cast %30 : vector<1x1x32xf32> to vector<1x32xf32>
    %32 = vector.extract_strided_slice %7 {offsets = [3, 0, 0], sizes = [1, 1, 32], strides = [1, 1, 1]} : vector<9x1x32xf32> to vector<1x1x32xf32>
    %33 = vector.shape_cast %32 : vector<1x1x32xf32> to vector<1x32xf32>
    %34 = vector.extract_strided_slice %7 {offsets = [4, 0, 0], sizes = [1, 1, 32], strides = [1, 1, 1]} : vector<9x1x32xf32> to vector<1x1x32xf32>
    %35 = vector.shape_cast %34 : vector<1x1x32xf32> to vector<1x32xf32>
    %36 = vector.extract_strided_slice %7 {offsets = [5, 0, 0], sizes = [1, 1, 32], strides = [1, 1, 1]} : vector<9x1x32xf32> to vector<1x1x32xf32>
    %37 = vector.shape_cast %36 : vector<1x1x32xf32> to vector<1x32xf32>
    %38 = vector.extract_strided_slice %7 {offsets = [6, 0, 0], sizes = [1, 1, 32], strides = [1, 1, 1]} : vector<9x1x32xf32> to vector<1x1x32xf32>
    %39 = vector.shape_cast %38 : vector<1x1x32xf32> to vector<1x32xf32>
    %40 = vector.extract_strided_slice %7 {offsets = [7, 0, 0], sizes = [1, 1, 32], strides = [1, 1, 1]} : vector<9x1x32xf32> to vector<1x1x32xf32>
    %41 = vector.shape_cast %40 : vector<1x1x32xf32> to vector<1x32xf32>
    %42 = vector.extract_strided_slice %7 {offsets = [8, 0, 0], sizes = [1, 1, 32], strides = [1, 1, 1]} : vector<9x1x32xf32> to vector<1x1x32xf32>
    %43 = vector.shape_cast %42 : vector<1x1x32xf32> to vector<1x32xf32>
    %44 = arith.truncf %3 : vector<16x32xf32> to vector<16x32xbf16>
    %45 = arith.truncf %3 : vector<16x32xf32> to vector<16x32xbf16>
    %46 = vector.extract_strided_slice %9 {offsets = [0, 0, 0], sizes = [1, 32, 32], strides = [1, 1, 1]} : vector<3x32x32xf32> to vector<1x32x32xf32>
    %47 = vector.shape_cast %46 : vector<1x32x32xf32> to vector<32x32xf32>
    %48 = arith.truncf %47 : vector<32x32xf32> to vector<32x32xbf16>
    %cst = arith.constant dense<0.000000e+00> : vector<16x32xf32>
    %49 = tpu.matmul %44, %48, %cst {dimension_numbers = #tpu.dot_dimension_numbers<[1], [0], [0], [1], [0, 0, 1, 1], [], []>} : vector<16x32xbf16>, vector<32x32xbf16>, vector<16x32xf32> -> vector<16x32xf32>
    %50 = vector.extract_strided_slice %11 {offsets = [0, 0, 0], sizes = [1, 1, 32], strides = [1, 1, 1]} : vector<3x1x32xf32> to vector<1x1x32xf32>
    %51 = vector.shape_cast %50 : vector<1x1x32xf32> to vector<1x32xf32>
    %52 = vector.broadcast %51 : vector<1x32xf32> to vector<16x32xf32>
    %53 = arith.addf %49, %52 : vector<16x32xf32>
    %54 = vector.extract_strided_slice %9 {offsets = [1, 0, 0], sizes = [1, 32, 32], strides = [1, 1, 1]} : vector<3x32x32xf32> to vector<1x32x32xf32>
    %55 = vector.shape_cast %54 : vector<1x32x32xf32> to vector<32x32xf32>
    %56 = arith.truncf %55 : vector<32x32xf32> to vector<32x32xbf16>
    %cst_43 = arith.constant dense<0.000000e+00> : vector<16x32xf32>
    %57 = tpu.matmul %45, %56, %cst_43 {dimension_numbers = #tpu.dot_dimension_numbers<[1], [0], [0], [1], [0, 0, 1, 1], [], []>} : vector<16x32xbf16>, vector<32x32xbf16>, vector<16x32xf32> -> vector<16x32xf32>
    %58 = vector.extract_strided_slice %11 {offsets = [1, 0, 0], sizes = [1, 1, 32], strides = [1, 1, 1]} : vector<3x1x32xf32> to vector<1x1x32xf32>
    %59 = vector.shape_cast %58 : vector<1x1x32xf32> to vector<1x32xf32>
    %60 = vector.broadcast %59 : vector<1x32xf32> to vector<16x32xf32>
    %61 = arith.addf %57, %60 : vector<16x32xf32>
    %62 = vector.extract_strided_slice %9 {offsets = [2, 0, 0], sizes = [1, 32, 32], strides = [1, 1, 1]} : vector<3x32x32xf32> to vector<1x32x32xf32>
    %63 = vector.shape_cast %62 : vector<1x32x32xf32> to vector<32x32xf32>
    %64 = arith.truncf %63 : vector<32x32xf32> to vector<32x32xbf16>
    %cst_44 = arith.constant dense<0.000000e+00> : vector<16x32xf32>
    %65 = tpu.matmul %45, %64, %cst_44 {dimension_numbers = #tpu.dot_dimension_numbers<[1], [0], [0], [1], [0, 0, 1, 1], [], []>} : vector<16x32xbf16>, vector<32x32xbf16>, vector<16x32xf32> -> vector<16x32xf32>
    %66 = vector.extract_strided_slice %11 {offsets = [2, 0, 0], sizes = [1, 1, 32], strides = [1, 1, 1]} : vector<3x1x32xf32> to vector<1x1x32xf32>
    %67 = vector.shape_cast %66 : vector<1x1x32xf32> to vector<1x32xf32>
    %68 = vector.broadcast %67 : vector<1x32xf32> to vector<16x32xf32>
    %69 = arith.addf %65, %68 : vector<16x32xf32>
    %cst_45 = arith.constant 0.000000e+00 : f32
    %70 = vector.broadcast %cst_45 : f32 to vector<16x32xf32>
    %71 = vector.extract_strided_slice %53 {offsets = [0, 0], sizes = [16, 8], strides = [1, 1]} : vector<16x32xf32> to vector<16x8xf32>
    %cst_46 = arith.constant 0.353553385 : f32
    %72 = vector.broadcast %cst_46 : f32 to vector<16x8xf32>
    %73 = arith.mulf %71, %72 : vector<16x8xf32>
    %74 = vector.shape_cast %73 : vector<16x8xf32> to vector<2x8x8xf32>
    %75 = arith.truncf %74 : vector<2x8x8xf32> to vector<2x8x8xbf16>
    %76 = vector.extract_strided_slice %61 {offsets = [0, 0], sizes = [16, 8], strides = [1, 1]} : vector<16x32xf32> to vector<16x8xf32>
    %77 = vector.shape_cast %76 : vector<16x8xf32> to vector<2x8x8xf32>
    %78 = arith.truncf %77 : vector<2x8x8xf32> to vector<2x8x8xbf16>
    %79 = vector.extract_strided_slice %69 {offsets = [0, 0], sizes = [16, 8], strides = [1, 1]} : vector<16x32xf32> to vector<16x8xf32>
    %80 = vector.shape_cast %79 : vector<16x8xf32> to vector<2x8x8xf32>
    %81 = arith.truncf %80 : vector<2x8x8xf32> to vector<2x8x8xbf16>
    "tpu.trace_start"() <{level = 10 : i32, message = "bqd,bkd->bqk"}> : () -> ()
    %cst_47 = arith.constant dense<0.000000e+00> : vector<2x8x8xf32>
    %82 = tpu.matmul %75, %78, %cst_47 {dimension_numbers = #tpu.dot_dimension_numbers<[2], [2], [1], [1], [0, 0, 0, 1, 1, 1], [0], [0]>} : vector<2x8x8xbf16>, vector<2x8x8xbf16>, vector<2x8x8xf32> -> vector<2x8x8xf32>
    "tpu.trace_stop"() : () -> ()
    %83 = vector.shape_cast %5 : vector<8x8xf32> to vector<1x8x8xf32>
    %84 = vector.broadcast %83 : vector<1x8x8xf32> to vector<2x8x8xf32>
    %85 = arith.addf %82, %84 : vector<2x8x8xf32>
    %cst_48 = arith.constant dense<0xFF800000> : vector<2x8xf32>
    %86 = vector.multi_reduction <maximumf>, %85, %cst_48 [2] : vector<2x8x8xf32> to vector<2x8xf32>
    %87 = vector.shape_cast %86 : vector<2x8xf32> to vector<2x8x1xf32>
    %88 = vector.broadcast %87 : vector<2x8x1xf32> to vector<2x8x8xf32>
    %89 = arith.subf %85, %88 : vector<2x8x8xf32>
    %90 = math.exp %89 : vector<2x8x8xf32>
    %cst_49 = arith.constant dense<0.000000e+00> : vector<2x8xf32>
    %91 = vector.multi_reduction <add>, %90, %cst_49 [2] : vector<2x8x8xf32> to vector<2x8xf32>
    %92 = vector.shape_cast %91 : vector<2x8xf32> to vector<2x8x1xf32>
    %93 = vector.broadcast %92 : vector<2x8x1xf32> to vector<2x8x8xf32>
    %94 = arith.divf %90, %93 : vector<2x8x8xf32>
    %95 = arith.truncf %94 : vector<2x8x8xf32> to vector<2x8x8xbf16>
    "tpu.trace_start"() <{level = 10 : i32, message = "bqk,bkd->bqd"}> : () -> ()
    %cst_50 = arith.constant dense<0.000000e+00> : vector<2x8x8xf32>
    %96 = tpu.matmul %95, %81, %cst_50 {dimension_numbers = #tpu.dot_dimension_numbers<[2], [1], [1], [2], [0, 0, 0, 1, 1, 2], [0], [0]>} : vector<2x8x8xbf16>, vector<2x8x8xbf16>, vector<2x8x8xf32> -> vector<2x8x8xf32>
    "tpu.trace_stop"() : () -> ()
    %97 = vector.shape_cast %96 : vector<2x8x8xf32> to vector<16x8xf32>
    %98 = arith.truncf %97 : vector<16x8xf32> to vector<16x8xbf16>
    %99 = vector.extract_strided_slice %13 {offsets = [0, 0, 0], sizes = [1, 8, 32], strides = [1, 1, 1]} : vector<4x8x32xf32> to vector<1x8x32xf32>
    %100 = vector.shape_cast %99 : vector<1x8x32xf32> to vector<8x32xf32>
    %101 = arith.truncf %100 : vector<8x32xf32> to vector<8x32xbf16>
    %cst_51 = arith.constant dense<0.000000e+00> : vector<16x32xf32>
    %102 = tpu.matmul %98, %101, %cst_51 {dimension_numbers = #tpu.dot_dimension_numbers<[1], [0], [0], [1], [0, 0, 1, 1], [], []>} : vector<16x8xbf16>, vector<8x32xbf16>, vector<16x32xf32> -> vector<16x32xf32>
    %103 = arith.addf %70, %102 : vector<16x32xf32>
    %104 = vector.extract_strided_slice %53 {offsets = [0, 8], sizes = [16, 8], strides = [1, 1]} : vector<16x32xf32> to vector<16x8xf32>
    %cst_52 = arith.constant 0.353553385 : f32
    %105 = vector.broadcast %cst_52 : f32 to vector<16x8xf32>
    %106 = arith.mulf %104, %105 : vector<16x8xf32>
    %107 = vector.shape_cast %106 : vector<16x8xf32> to vector<2x8x8xf32>
    %108 = arith.truncf %107 : vector<2x8x8xf32> to vector<2x8x8xbf16>
    %109 = vector.extract_strided_slice %61 {offsets = [0, 8], sizes = [16, 8], strides = [1, 1]} : vector<16x32xf32> to vector<16x8xf32>
    %110 = vector.shape_cast %109 : vector<16x8xf32> to vector<2x8x8xf32>
    %111 = arith.truncf %110 : vector<2x8x8xf32> to vector<2x8x8xbf16>
    %112 = vector.extract_strided_slice %69 {offsets = [0, 8], sizes = [16, 8], strides = [1, 1]} : vector<16x32xf32> to vector<16x8xf32>
    %113 = vector.shape_cast %112 : vector<16x8xf32> to vector<2x8x8xf32>
    %114 = arith.truncf %113 : vector<2x8x8xf32> to vector<2x8x8xbf16>
    "tpu.trace_start"() <{level = 10 : i32, message = "bqd,bkd->bqk"}> : () -> ()
    %cst_53 = arith.constant dense<0.000000e+00> : vector<2x8x8xf32>
    %115 = tpu.matmul %108, %111, %cst_53 {dimension_numbers = #tpu.dot_dimension_numbers<[2], [2], [1], [1], [0, 0, 0, 1, 1, 1], [0], [0]>} : vector<2x8x8xbf16>, vector<2x8x8xbf16>, vector<2x8x8xf32> -> vector<2x8x8xf32>
    "tpu.trace_stop"() : () -> ()
    %116 = vector.shape_cast %5 : vector<8x8xf32> to vector<1x8x8xf32>
    %117 = vector.broadcast %116 : vector<1x8x8xf32> to vector<2x8x8xf32>
    %118 = arith.addf %115, %117 : vector<2x8x8xf32>
    %cst_54 = arith.constant dense<0xFF800000> : vector<2x8xf32>
    %119 = vector.multi_reduction <maximumf>, %118, %cst_54 [2] : vector<2x8x8xf32> to vector<2x8xf32>
    %120 = vector.shape_cast %119 : vector<2x8xf32> to vector<2x8x1xf32>
    %121 = vector.broadcast %120 : vector<2x8x1xf32> to vector<2x8x8xf32>
    %122 = arith.subf %118, %121 : vector<2x8x8xf32>
    %123 = math.exp %122 : vector<2x8x8xf32>
    %cst_55 = arith.constant dense<0.000000e+00> : vector<2x8xf32>
    %124 = vector.multi_reduction <add>, %123, %cst_55 [2] : vector<2x8x8xf32> to vector<2x8xf32>
    %125 = vector.shape_cast %124 : vector<2x8xf32> to vector<2x8x1xf32>
    %126 = vector.broadcast %125 : vector<2x8x1xf32> to vector<2x8x8xf32>
    %127 = arith.divf %123, %126 : vector<2x8x8xf32>
    %128 = arith.truncf %127 : vector<2x8x8xf32> to vector<2x8x8xbf16>
    "tpu.trace_start"() <{level = 10 : i32, message = "bqk,bkd->bqd"}> : () -> ()
    %cst_56 = arith.constant dense<0.000000e+00> : vector<2x8x8xf32>
    %129 = tpu.matmul %128, %114, %cst_56 {dimension_numbers = #tpu.dot_dimension_numbers<[2], [1], [1], [2], [0, 0, 0, 1, 1, 2], [0], [0]>} : vector<2x8x8xbf16>, vector<2x8x8xbf16>, vector<2x8x8xf32> -> vector<2x8x8xf32>
    "tpu.trace_stop"() : () -> ()
    %130 = vector.shape_cast %129 : vector<2x8x8xf32> to vector<16x8xf32>
    %131 = arith.truncf %130 : vector<16x8xf32> to vector<16x8xbf16>
    %132 = vector.extract_strided_slice %13 {offsets = [1, 0, 0], sizes = [1, 8, 32], strides = [1, 1, 1]} : vector<4x8x32xf32> to vector<1x8x32xf32>
    %133 = vector.shape_cast %132 : vector<1x8x32xf32> to vector<8x32xf32>
    %134 = arith.truncf %133 : vector<8x32xf32> to vector<8x32xbf16>
    %cst_57 = arith.constant dense<0.000000e+00> : vector<16x32xf32>
    %135 = tpu.matmul %131, %134, %cst_57 {dimension_numbers = #tpu.dot_dimension_numbers<[1], [0], [0], [1], [0, 0, 1, 1], [], []>} : vector<16x8xbf16>, vector<8x32xbf16>, vector<16x32xf32> -> vector<16x32xf32>
    %136 = arith.addf %103, %135 : vector<16x32xf32>
    %137 = vector.extract_strided_slice %53 {offsets = [0, 16], sizes = [16, 8], strides = [1, 1]} : vector<16x32xf32> to vector<16x8xf32>
    %cst_58 = arith.constant 0.353553385 : f32
    %138 = vector.broadcast %cst_58 : f32 to vector<16x8xf32>
    %139 = arith.mulf %137, %138 : vector<16x8xf32>
    %140 = vector.shape_cast %139 : vector<16x8xf32> to vector<2x8x8xf32>
    %141 = arith.truncf %140 : vector<2x8x8xf32> to vector<2x8x8xbf16>
    %142 = vector.extract_strided_slice %61 {offsets = [0, 16], sizes = [16, 8], strides = [1, 1]} : vector<16x32xf32> to vector<16x8xf32>
    %143 = vector.shape_cast %142 : vector<16x8xf32> to vector<2x8x8xf32>
    %144 = arith.truncf %143 : vector<2x8x8xf32> to vector<2x8x8xbf16>
    %145 = vector.extract_strided_slice %69 {offsets = [0, 16], sizes = [16, 8], strides = [1, 1]} : vector<16x32xf32> to vector<16x8xf32>
    %146 = vector.shape_cast %145 : vector<16x8xf32> to vector<2x8x8xf32>
    %147 = arith.truncf %146 : vector<2x8x8xf32> to vector<2x8x8xbf16>
    "tpu.trace_start"() <{level = 10 : i32, message = "bqd,bkd->bqk"}> : () -> ()
    %cst_59 = arith.constant dense<0.000000e+00> : vector<2x8x8xf32>
    %148 = tpu.matmul %141, %144, %cst_59 {dimension_numbers = #tpu.dot_dimension_numbers<[2], [2], [1], [1], [0, 0, 0, 1, 1, 1], [0], [0]>} : vector<2x8x8xbf16>, vector<2x8x8xbf16>, vector<2x8x8xf32> -> vector<2x8x8xf32>
    "tpu.trace_stop"() : () -> ()
    %149 = vector.shape_cast %5 : vector<8x8xf32> to vector<1x8x8xf32>
    %150 = vector.broadcast %149 : vector<1x8x8xf32> to vector<2x8x8xf32>
    %151 = arith.addf %148, %150 : vector<2x8x8xf32>
    %cst_60 = arith.constant dense<0xFF800000> : vector<2x8xf32>
    %152 = vector.multi_reduction <maximumf>, %151, %cst_60 [2] : vector<2x8x8xf32> to vector<2x8xf32>
    %153 = vector.shape_cast %152 : vector<2x8xf32> to vector<2x8x1xf32>
    %154 = vector.broadcast %153 : vector<2x8x1xf32> to vector<2x8x8xf32>
    %155 = arith.subf %151, %154 : vector<2x8x8xf32>
    %156 = math.exp %155 : vector<2x8x8xf32>
    %cst_61 = arith.constant dense<0.000000e+00> : vector<2x8xf32>
    %157 = vector.multi_reduction <add>, %156, %cst_61 [2] : vector<2x8x8xf32> to vector<2x8xf32>
    %158 = vector.shape_cast %157 : vector<2x8xf32> to vector<2x8x1xf32>
    %159 = vector.broadcast %158 : vector<2x8x1xf32> to vector<2x8x8xf32>
    %160 = arith.divf %156, %159 : vector<2x8x8xf32>
    %161 = arith.truncf %160 : vector<2x8x8xf32> to vector<2x8x8xbf16>
    "tpu.trace_start"() <{level = 10 : i32, message = "bqk,bkd->bqd"}> : () -> ()
    %cst_62 = arith.constant dense<0.000000e+00> : vector<2x8x8xf32>
    %162 = tpu.matmul %161, %147, %cst_62 {dimension_numbers = #tpu.dot_dimension_numbers<[2], [1], [1], [2], [0, 0, 0, 1, 1, 2], [0], [0]>} : vector<2x8x8xbf16>, vector<2x8x8xbf16>, vector<2x8x8xf32> -> vector<2x8x8xf32>
    "tpu.trace_stop"() : () -> ()
    %163 = vector.shape_cast %162 : vector<2x8x8xf32> to vector<16x8xf32>
    %164 = arith.truncf %163 : vector<16x8xf32> to vector<16x8xbf16>
    %165 = vector.extract_strided_slice %13 {offsets = [2, 0, 0], sizes = [1, 8, 32], strides = [1, 1, 1]} : vector<4x8x32xf32> to vector<1x8x32xf32>
    %166 = vector.shape_cast %165 : vector<1x8x32xf32> to vector<8x32xf32>
    %167 = arith.truncf %166 : vector<8x32xf32> to vector<8x32xbf16>
    %cst_63 = arith.constant dense<0.000000e+00> : vector<16x32xf32>
    %168 = tpu.matmul %164, %167, %cst_63 {dimension_numbers = #tpu.dot_dimension_numbers<[1], [0], [0], [1], [0, 0, 1, 1], [], []>} : vector<16x8xbf16>, vector<8x32xbf16>, vector<16x32xf32> -> vector<16x32xf32>
    %169 = arith.addf %136, %168 : vector<16x32xf32>
    %170 = vector.extract_strided_slice %53 {offsets = [0, 24], sizes = [16, 8], strides = [1, 1]} : vector<16x32xf32> to vector<16x8xf32>
    %cst_64 = arith.constant 0.353553385 : f32
    %171 = vector.broadcast %cst_64 : f32 to vector<16x8xf32>
    %172 = arith.mulf %170, %171 : vector<16x8xf32>
    %173 = vector.shape_cast %172 : vector<16x8xf32> to vector<2x8x8xf32>
    %174 = arith.truncf %173 : vector<2x8x8xf32> to vector<2x8x8xbf16>
    %175 = vector.extract_strided_slice %61 {offsets = [0, 24], sizes = [16, 8], strides = [1, 1]} : vector<16x32xf32> to vector<16x8xf32>
    %176 = vector.shape_cast %175 : vector<16x8xf32> to vector<2x8x8xf32>
    %177 = arith.truncf %176 : vector<2x8x8xf32> to vector<2x8x8xbf16>
    %178 = vector.extract_strided_slice %69 {offsets = [0, 24], sizes = [16, 8], strides = [1, 1]} : vector<16x32xf32> to vector<16x8xf32>
    %179 = vector.shape_cast %178 : vector<16x8xf32> to vector<2x8x8xf32>
    %180 = arith.truncf %179 : vector<2x8x8xf32> to vector<2x8x8xbf16>
    "tpu.trace_start"() <{level = 10 : i32, message = "bqd,bkd->bqk"}> : () -> ()
    %cst_65 = arith.constant dense<0.000000e+00> : vector<2x8x8xf32>
    %181 = tpu.matmul %174, %177, %cst_65 {dimension_numbers = #tpu.dot_dimension_numbers<[2], [2], [1], [1], [0, 0, 0, 1, 1, 1], [0], [0]>} : vector<2x8x8xbf16>, vector<2x8x8xbf16>, vector<2x8x8xf32> -> vector<2x8x8xf32>
    "tpu.trace_stop"() : () -> ()
    %182 = vector.shape_cast %5 : vector<8x8xf32> to vector<1x8x8xf32>
    %183 = vector.broadcast %182 : vector<1x8x8xf32> to vector<2x8x8xf32>
    %184 = arith.addf %181, %183 : vector<2x8x8xf32>
    %cst_66 = arith.constant dense<0xFF800000> : vector<2x8xf32>
    %185 = vector.multi_reduction <maximumf>, %184, %cst_66 [2] : vector<2x8x8xf32> to vector<2x8xf32>
    %186 = vector.shape_cast %185 : vector<2x8xf32> to vector<2x8x1xf32>
    %187 = vector.broadcast %186 : vector<2x8x1xf32> to vector<2x8x8xf32>
    %188 = arith.subf %184, %187 : vector<2x8x8xf32>
    %189 = math.exp %188 : vector<2x8x8xf32>
    %cst_67 = arith.constant dense<0.000000e+00> : vector<2x8xf32>
    %190 = vector.multi_reduction <add>, %189, %cst_67 [2] : vector<2x8x8xf32> to vector<2x8xf32>
    %191 = vector.shape_cast %190 : vector<2x8xf32> to vector<2x8x1xf32>
    %192 = vector.broadcast %191 : vector<2x8x1xf32> to vector<2x8x8xf32>
    %193 = arith.divf %189, %192 : vector<2x8x8xf32>
    %194 = arith.truncf %193 : vector<2x8x8xf32> to vector<2x8x8xbf16>
    "tpu.trace_start"() <{level = 10 : i32, message = "bqk,bkd->bqd"}> : () -> ()
    %cst_68 = arith.constant dense<0.000000e+00> : vector<2x8x8xf32>
    %195 = tpu.matmul %194, %180, %cst_68 {dimension_numbers = #tpu.dot_dimension_numbers<[2], [1], [1], [2], [0, 0, 0, 1, 1, 2], [0], [0]>} : vector<2x8x8xbf16>, vector<2x8x8xbf16>, vector<2x8x8xf32> -> vector<2x8x8xf32>
    "tpu.trace_stop"() : () -> ()
    %196 = vector.shape_cast %195 : vector<2x8x8xf32> to vector<16x8xf32>
    %197 = arith.truncf %196 : vector<16x8xf32> to vector<16x8xbf16>
    %198 = vector.extract_strided_slice %13 {offsets = [3, 0, 0], sizes = [1, 8, 32], strides = [1, 1, 1]} : vector<4x8x32xf32> to vector<1x8x32xf32>
    %199 = vector.shape_cast %198 : vector<1x8x32xf32> to vector<8x32xf32>
    %200 = arith.truncf %199 : vector<8x32xf32> to vector<8x32xbf16>
    %cst_69 = arith.constant dense<0.000000e+00> : vector<16x32xf32>
    %201 = tpu.matmul %197, %200, %cst_69 {dimension_numbers = #tpu.dot_dimension_numbers<[1], [0], [0], [1], [0, 0, 1, 1], [], []>} : vector<16x8xbf16>, vector<8x32xbf16>, vector<16x32xf32> -> vector<16x32xf32>
    %202 = arith.addf %169, %201 : vector<16x32xf32>
    %203 = vector.broadcast %15 : vector<1x32xf32> to vector<16x32xf32>
    %204 = arith.addf %202, %203 : vector<16x32xf32>
    %205 = arith.addf %3, %204 : vector<16x32xf32>
    %cst_70 = arith.constant dense<0.000000e+00> : vector<16xf32>
    %206 = vector.multi_reduction <add>, %205, %cst_70 [1] : vector<16x32xf32> to vector<16xf32>
    %207 = vector.shape_cast %206 : vector<16xf32> to vector<16x1xf32>
    %cst_71 = arith.constant 3.200000e+01 : f32
    %208 = vector.broadcast %cst_71 : f32 to vector<16x1xf32>
    %209 = arith.divf %207, %208 : vector<16x1xf32>
    %210 = vector.broadcast %209 : vector<16x1xf32> to vector<16x32xf32>
    %211 = arith.subf %205, %210 : vector<16x32xf32>
    %212 = arith.mulf %211, %211 : vector<16x32xf32>
    %cst_72 = arith.constant dense<0.000000e+00> : vector<16xf32>
    %213 = vector.multi_reduction <add>, %212, %cst_72 [1] : vector<16x32xf32> to vector<16xf32>
    %214 = vector.shape_cast %213 : vector<16xf32> to vector<16x1xf32>
    %cst_73 = arith.constant 3.200000e+01 : f32
    %215 = vector.broadcast %cst_73 : f32 to vector<16x1xf32>
    %216 = arith.divf %214, %215 : vector<16x1xf32>
    %217 = vector.broadcast %209 : vector<16x1xf32> to vector<16x32xf32>
    %218 = arith.subf %205, %217 : vector<16x32xf32>
    %cst_74 = arith.constant 9.99999974E-6 : f32
    %219 = vector.broadcast %cst_74 : f32 to vector<16x1xf32>
    %220 = arith.addf %216, %219 : vector<16x1xf32>
    %221 = math.rsqrt %220 : vector<16x1xf32>
    %222 = vector.broadcast %221 : vector<16x1xf32> to vector<16x32xf32>
    %223 = arith.mulf %218, %222 : vector<16x32xf32>
    %224 = vector.broadcast %33 : vector<1x32xf32> to vector<16x32xf32>
    %225 = arith.mulf %223, %224 : vector<16x32xf32>
    %226 = vector.broadcast %35 : vector<1x32xf32> to vector<16x32xf32>
    %227 = arith.addf %225, %226 : vector<16x32xf32>
    %228 = arith.truncf %227 : vector<16x32xf32> to vector<16x32xbf16>
    %229 = arith.truncf %4 : vector<24x32xf32> to vector<24x32xbf16>
    %230 = vector.extract_strided_slice %17 {offsets = [0, 0, 0], sizes = [1, 32, 32], strides = [1, 1, 1]} : vector<3x32x32xf32> to vector<1x32x32xf32>
    %231 = vector.shape_cast %230 : vector<1x32x32xf32> to vector<32x32xf32>
    %232 = arith.truncf %231 : vector<32x32xf32> to vector<32x32xbf16>
    %cst_75 = arith.constant dense<0.000000e+00> : vector<16x32xf32>
    %233 = tpu.matmul %228, %232, %cst_75 {dimension_numbers = #tpu.dot_dimension_numbers<[1], [0], [0], [1], [0, 0, 1, 1], [], []>} : vector<16x32xbf16>, vector<32x32xbf16>, vector<16x32xf32> -> vector<16x32xf32>
    %234 = vector.extract_strided_slice %19 {offsets = [0, 0, 0], sizes = [1, 1, 32], strides = [1, 1, 1]} : vector<3x1x32xf32> to vector<1x1x32xf32>
    %235 = vector.shape_cast %234 : vector<1x1x32xf32> to vector<1x32xf32>
    %236 = vector.broadcast %235 : vector<1x32xf32> to vector<16x32xf32>
    %237 = arith.addf %233, %236 : vector<16x32xf32>
    %238 = vector.extract_strided_slice %17 {offsets = [1, 0, 0], sizes = [1, 32, 32], strides = [1, 1, 1]} : vector<3x32x32xf32> to vector<1x32x32xf32>
    %239 = vector.shape_cast %238 : vector<1x32x32xf32> to vector<32x32xf32>
    %240 = arith.truncf %239 : vector<32x32xf32> to vector<32x32xbf16>
    %cst_76 = arith.constant dense<0.000000e+00> : vector<24x32xf32>
    %241 = tpu.matmul %229, %240, %cst_76 {dimension_numbers = #tpu.dot_dimension_numbers<[1], [0], [0], [1], [0, 0, 1, 1], [], []>} : vector<24x32xbf16>, vector<32x32xbf16>, vector<24x32xf32> -> vector<24x32xf32>
    %242 = vector.extract_strided_slice %19 {offsets = [1, 0, 0], sizes = [1, 1, 32], strides = [1, 1, 1]} : vector<3x1x32xf32> to vector<1x1x32xf32>
    %243 = vector.shape_cast %242 : vector<1x1x32xf32> to vector<1x32xf32>
    %244 = vector.broadcast %243 : vector<1x32xf32> to vector<24x32xf32>
    %245 = arith.addf %241, %244 : vector<24x32xf32>
    %246 = vector.extract_strided_slice %17 {offsets = [2, 0, 0], sizes = [1, 32, 32], strides = [1, 1, 1]} : vector<3x32x32xf32> to vector<1x32x32xf32>
    %247 = vector.shape_cast %246 : vector<1x32x32xf32> to vector<32x32xf32>
    %248 = arith.truncf %247 : vector<32x32xf32> to vector<32x32xbf16>
    %cst_77 = arith.constant dense<0.000000e+00> : vector<24x32xf32>
    %249 = tpu.matmul %229, %248, %cst_77 {dimension_numbers = #tpu.dot_dimension_numbers<[1], [0], [0], [1], [0, 0, 1, 1], [], []>} : vector<24x32xbf16>, vector<32x32xbf16>, vector<24x32xf32> -> vector<24x32xf32>
    %250 = vector.extract_strided_slice %19 {offsets = [2, 0, 0], sizes = [1, 1, 32], strides = [1, 1, 1]} : vector<3x1x32xf32> to vector<1x1x32xf32>
    %251 = vector.shape_cast %250 : vector<1x1x32xf32> to vector<1x32xf32>
    %252 = vector.broadcast %251 : vector<1x32xf32> to vector<24x32xf32>
    %253 = arith.addf %249, %252 : vector<24x32xf32>
    %cst_78 = arith.constant 0.000000e+00 : f32
    %254 = vector.broadcast %cst_78 : f32 to vector<16x32xf32>
    %255 = vector.extract_strided_slice %237 {offsets = [0, 0], sizes = [16, 8], strides = [1, 1]} : vector<16x32xf32> to vector<16x8xf32>
    %cst_79 = arith.constant 0.353553385 : f32
    %256 = vector.broadcast %cst_79 : f32 to vector<16x8xf32>
    %257 = arith.mulf %255, %256 : vector<16x8xf32>
    %258 = vector.shape_cast %257 : vector<16x8xf32> to vector<2x8x8xf32>
    %259 = arith.truncf %258 : vector<2x8x8xf32> to vector<2x8x8xbf16>
    %260 = vector.extract_strided_slice %245 {offsets = [0, 0], sizes = [24, 8], strides = [1, 1]} : vector<24x32xf32> to vector<24x8xf32>
    %261 = vector.shape_cast %260 : vector<24x8xf32> to vector<2x12x8xf32>
    %262 = arith.truncf %261 : vector<2x12x8xf32> to vector<2x12x8xbf16>
    %263 = vector.extract_strided_slice %253 {offsets = [0, 0], sizes = [24, 8], strides = [1, 1]} : vector<24x32xf32> to vector<24x8xf32>
    %264 = vector.shape_cast %263 : vector<24x8xf32> to vector<2x12x8xf32>
    %265 = arith.truncf %264 : vector<2x12x8xf32> to vector<2x12x8xbf16>
    "tpu.trace_start"() <{level = 10 : i32, message = "bqd,bkd->bqk"}> : () -> ()
    %cst_80 = arith.constant dense<0.000000e+00> : vector<2x8x12xf32>
    %266 = tpu.matmul %259, %262, %cst_80 {dimension_numbers = #tpu.dot_dimension_numbers<[2], [2], [1], [1], [0, 0, 0, 1, 1, 1], [0], [0]>} : vector<2x8x8xbf16>, vector<2x12x8xbf16>, vector<2x8x12xf32> -> vector<2x8x12xf32>
    "tpu.trace_stop"() : () -> ()
    %cst_81 = arith.constant dense<0xFF800000> : vector<2x8xf32>
    %267 = vector.multi_reduction <maximumf>, %266, %cst_81 [2] : vector<2x8x12xf32> to vector<2x8xf32>
    %268 = vector.shape_cast %267 : vector<2x8xf32> to vector<2x8x1xf32>
    %269 = vector.broadcast %268 : vector<2x8x1xf32> to vector<2x8x12xf32>
    %270 = arith.subf %266, %269 : vector<2x8x12xf32>
    %271 = math.exp %270 : vector<2x8x12xf32>
    %cst_82 = arith.constant dense<0.000000e+00> : vector<2x8xf32>
    %272 = vector.multi_reduction <add>, %271, %cst_82 [2] : vector<2x8x12xf32> to vector<2x8xf32>
    %273 = vector.shape_cast %272 : vector<2x8xf32> to vector<2x8x1xf32>
    %274 = vector.broadcast %273 : vector<2x8x1xf32> to vector<2x8x12xf32>
    %275 = arith.divf %271, %274 : vector<2x8x12xf32>
    %276 = arith.truncf %275 : vector<2x8x12xf32> to vector<2x8x12xbf16>
    "tpu.trace_start"() <{level = 10 : i32, message = "bqk,bkd->bqd"}> : () -> ()
    %cst_83 = arith.constant dense<0.000000e+00> : vector<2x8x8xf32>
    %277 = tpu.matmul %276, %265, %cst_83 {dimension_numbers = #tpu.dot_dimension_numbers<[2], [1], [1], [2], [0, 0, 0, 1, 1, 2], [0], [0]>} : vector<2x8x12xbf16>, vector<2x12x8xbf16>, vector<2x8x8xf32> -> vector<2x8x8xf32>
    "tpu.trace_stop"() : () -> ()
    %278 = vector.shape_cast %277 : vector<2x8x8xf32> to vector<16x8xf32>
    %279 = arith.truncf %278 : vector<16x8xf32> to vector<16x8xbf16>
    %280 = vector.extract_strided_slice %21 {offsets = [0, 0, 0], sizes = [1, 8, 32], strides = [1, 1, 1]} : vector<4x8x32xf32> to vector<1x8x32xf32>
    %281 = vector.shape_cast %280 : vector<1x8x32xf32> to vector<8x32xf32>
    %282 = arith.truncf %281 : vector<8x32xf32> to vector<8x32xbf16>
    %cst_84 = arith.constant dense<0.000000e+00> : vector<16x32xf32>
    %283 = tpu.matmul %279, %282, %cst_84 {dimension_numbers = #tpu.dot_dimension_numbers<[1], [0], [0], [1], [0, 0, 1, 1], [], []>} : vector<16x8xbf16>, vector<8x32xbf16>, vector<16x32xf32> -> vector<16x32xf32>
    %284 = arith.addf %254, %283 : vector<16x32xf32>
    %285 = vector.extract_strided_slice %237 {offsets = [0, 8], sizes = [16, 8], strides = [1, 1]} : vector<16x32xf32> to vector<16x8xf32>
    %cst_85 = arith.constant 0.353553385 : f32
    %286 = vector.broadcast %cst_85 : f32 to vector<16x8xf32>
    %287 = arith.mulf %285, %286 : vector<16x8xf32>
    %288 = vector.shape_cast %287 : vector<16x8xf32> to vector<2x8x8xf32>
    %289 = arith.truncf %288 : vector<2x8x8xf32> to vector<2x8x8xbf16>
    %290 = vector.extract_strided_slice %245 {offsets = [0, 8], sizes = [24, 8], strides = [1, 1]} : vector<24x32xf32> to vector<24x8xf32>
    %291 = vector.shape_cast %290 : vector<24x8xf32> to vector<2x12x8xf32>
    %292 = arith.truncf %291 : vector<2x12x8xf32> to vector<2x12x8xbf16>
    %293 = vector.extract_strided_slice %253 {offsets = [0, 8], sizes = [24, 8], strides = [1, 1]} : vector<24x32xf32> to vector<24x8xf32>
    %294 = vector.shape_cast %293 : vector<24x8xf32> to vector<2x12x8xf32>
    %295 = arith.truncf %294 : vector<2x12x8xf32> to vector<2x12x8xbf16>
    "tpu.trace_start"() <{level = 10 : i32, message = "bqd,bkd->bqk"}> : () -> ()
    %cst_86 = arith.constant dense<0.000000e+00> : vector<2x8x12xf32>
    %296 = tpu.matmul %289, %292, %cst_86 {dimension_numbers = #tpu.dot_dimension_numbers<[2], [2], [1], [1], [0, 0, 0, 1, 1, 1], [0], [0]>} : vector<2x8x8xbf16>, vector<2x12x8xbf16>, vector<2x8x12xf32> -> vector<2x8x12xf32>
    "tpu.trace_stop"() : () -> ()
    %cst_87 = arith.constant dense<0xFF800000> : vector<2x8xf32>
    %297 = vector.multi_reduction <maximumf>, %296, %cst_87 [2] : vector<2x8x12xf32> to vector<2x8xf32>
    %298 = vector.shape_cast %297 : vector<2x8xf32> to vector<2x8x1xf32>
    %299 = vector.broadcast %298 : vector<2x8x1xf32> to vector<2x8x12xf32>
    %300 = arith.subf %296, %299 : vector<2x8x12xf32>
    %301 = math.exp %300 : vector<2x8x12xf32>
    %cst_88 = arith.constant dense<0.000000e+00> : vector<2x8xf32>
    %302 = vector.multi_reduction <add>, %301, %cst_88 [2] : vector<2x8x12xf32> to vector<2x8xf32>
    %303 = vector.shape_cast %302 : vector<2x8xf32> to vector<2x8x1xf32>
    %304 = vector.broadcast %303 : vector<2x8x1xf32> to vector<2x8x12xf32>
    %305 = arith.divf %301, %304 : vector<2x8x12xf32>
    %306 = arith.truncf %305 : vector<2x8x12xf32> to vector<2x8x12xbf16>
    "tpu.trace_start"() <{level = 10 : i32, message = "bqk,bkd->bqd"}> : () -> ()
    %cst_89 = arith.constant dense<0.000000e+00> : vector<2x8x8xf32>
    %307 = tpu.matmul %306, %295, %cst_89 {dimension_numbers = #tpu.dot_dimension_numbers<[2], [1], [1], [2], [0, 0, 0, 1, 1, 2], [0], [0]>} : vector<2x8x12xbf16>, vector<2x12x8xbf16>, vector<2x8x8xf32> -> vector<2x8x8xf32>
    "tpu.trace_stop"() : () -> ()
    %308 = vector.shape_cast %307 : vector<2x8x8xf32> to vector<16x8xf32>
    %309 = arith.truncf %308 : vector<16x8xf32> to vector<16x8xbf16>
    %310 = vector.extract_strided_slice %21 {offsets = [1, 0, 0], sizes = [1, 8, 32], strides = [1, 1, 1]} : vector<4x8x32xf32> to vector<1x8x32xf32>
    %311 = vector.shape_cast %310 : vector<1x8x32xf32> to vector<8x32xf32>
    %312 = arith.truncf %311 : vector<8x32xf32> to vector<8x32xbf16>
    %cst_90 = arith.constant dense<0.000000e+00> : vector<16x32xf32>
    %313 = tpu.matmul %309, %312, %cst_90 {dimension_numbers = #tpu.dot_dimension_numbers<[1], [0], [0], [1], [0, 0, 1, 1], [], []>} : vector<16x8xbf16>, vector<8x32xbf16>, vector<16x32xf32> -> vector<16x32xf32>
    %314 = arith.addf %284, %313 : vector<16x32xf32>
    %315 = vector.extract_strided_slice %237 {offsets = [0, 16], sizes = [16, 8], strides = [1, 1]} : vector<16x32xf32> to vector<16x8xf32>
    %cst_91 = arith.constant 0.353553385 : f32
    %316 = vector.broadcast %cst_91 : f32 to vector<16x8xf32>
    %317 = arith.mulf %315, %316 : vector<16x8xf32>
    %318 = vector.shape_cast %317 : vector<16x8xf32> to vector<2x8x8xf32>
    %319 = arith.truncf %318 : vector<2x8x8xf32> to vector<2x8x8xbf16>
    %320 = vector.extract_strided_slice %245 {offsets = [0, 16], sizes = [24, 8], strides = [1, 1]} : vector<24x32xf32> to vector<24x8xf32>
    %321 = vector.shape_cast %320 : vector<24x8xf32> to vector<2x12x8xf32>
    %322 = arith.truncf %321 : vector<2x12x8xf32> to vector<2x12x8xbf16>
    %323 = vector.extract_strided_slice %253 {offsets = [0, 16], sizes = [24, 8], strides = [1, 1]} : vector<24x32xf32> to vector<24x8xf32>
    %324 = vector.shape_cast %323 : vector<24x8xf32> to vector<2x12x8xf32>
    %325 = arith.truncf %324 : vector<2x12x8xf32> to vector<2x12x8xbf16>
    "tpu.trace_start"() <{level = 10 : i32, message = "bqd,bkd->bqk"}> : () -> ()
    %cst_92 = arith.constant dense<0.000000e+00> : vector<2x8x12xf32>
    %326 = tpu.matmul %319, %322, %cst_92 {dimension_numbers = #tpu.dot_dimension_numbers<[2], [2], [1], [1], [0, 0, 0, 1, 1, 1], [0], [0]>} : vector<2x8x8xbf16>, vector<2x12x8xbf16>, vector<2x8x12xf32> -> vector<2x8x12xf32>
    "tpu.trace_stop"() : () -> ()
    %cst_93 = arith.constant dense<0xFF800000> : vector<2x8xf32>
    %327 = vector.multi_reduction <maximumf>, %326, %cst_93 [2] : vector<2x8x12xf32> to vector<2x8xf32>
    %328 = vector.shape_cast %327 : vector<2x8xf32> to vector<2x8x1xf32>
    %329 = vector.broadcast %328 : vector<2x8x1xf32> to vector<2x8x12xf32>
    %330 = arith.subf %326, %329 : vector<2x8x12xf32>
    %331 = math.exp %330 : vector<2x8x12xf32>
    %cst_94 = arith.constant dense<0.000000e+00> : vector<2x8xf32>
    %332 = vector.multi_reduction <add>, %331, %cst_94 [2] : vector<2x8x12xf32> to vector<2x8xf32>
    %333 = vector.shape_cast %332 : vector<2x8xf32> to vector<2x8x1xf32>
    %334 = vector.broadcast %333 : vector<2x8x1xf32> to vector<2x8x12xf32>
    %335 = arith.divf %331, %334 : vector<2x8x12xf32>
    %336 = arith.truncf %335 : vector<2x8x12xf32> to vector<2x8x12xbf16>
    "tpu.trace_start"() <{level = 10 : i32, message = "bqk,bkd->bqd"}> : () -> ()
    %cst_95 = arith.constant dense<0.000000e+00> : vector<2x8x8xf32>
    %337 = tpu.matmul %336, %325, %cst_95 {dimension_numbers = #tpu.dot_dimension_numbers<[2], [1], [1], [2], [0, 0, 0, 1, 1, 2], [0], [0]>} : vector<2x8x12xbf16>, vector<2x12x8xbf16>, vector<2x8x8xf32> -> vector<2x8x8xf32>
    "tpu.trace_stop"() : () -> ()
    %338 = vector.shape_cast %337 : vector<2x8x8xf32> to vector<16x8xf32>
    %339 = arith.truncf %338 : vector<16x8xf32> to vector<16x8xbf16>
    %340 = vector.extract_strided_slice %21 {offsets = [2, 0, 0], sizes = [1, 8, 32], strides = [1, 1, 1]} : vector<4x8x32xf32> to vector<1x8x32xf32>
    %341 = vector.shape_cast %340 : vector<1x8x32xf32> to vector<8x32xf32>
    %342 = arith.truncf %341 : vector<8x32xf32> to vector<8x32xbf16>
    %cst_96 = arith.constant dense<0.000000e+00> : vector<16x32xf32>
    %343 = tpu.matmul %339, %342, %cst_96 {dimension_numbers = #tpu.dot_dimension_numbers<[1], [0], [0], [1], [0, 0, 1, 1], [], []>} : vector<16x8xbf16>, vector<8x32xbf16>, vector<16x32xf32> -> vector<16x32xf32>
    %344 = arith.addf %314, %343 : vector<16x32xf32>
    %345 = vector.extract_strided_slice %237 {offsets = [0, 24], sizes = [16, 8], strides = [1, 1]} : vector<16x32xf32> to vector<16x8xf32>
    %cst_97 = arith.constant 0.353553385 : f32
    %346 = vector.broadcast %cst_97 : f32 to vector<16x8xf32>
    %347 = arith.mulf %345, %346 : vector<16x8xf32>
    %348 = vector.shape_cast %347 : vector<16x8xf32> to vector<2x8x8xf32>
    %349 = arith.truncf %348 : vector<2x8x8xf32> to vector<2x8x8xbf16>
    %350 = vector.extract_strided_slice %245 {offsets = [0, 24], sizes = [24, 8], strides = [1, 1]} : vector<24x32xf32> to vector<24x8xf32>
    %351 = vector.shape_cast %350 : vector<24x8xf32> to vector<2x12x8xf32>
    %352 = arith.truncf %351 : vector<2x12x8xf32> to vector<2x12x8xbf16>
    %353 = vector.extract_strided_slice %253 {offsets = [0, 24], sizes = [24, 8], strides = [1, 1]} : vector<24x32xf32> to vector<24x8xf32>
    %354 = vector.shape_cast %353 : vector<24x8xf32> to vector<2x12x8xf32>
    %355 = arith.truncf %354 : vector<2x12x8xf32> to vector<2x12x8xbf16>
    "tpu.trace_start"() <{level = 10 : i32, message = "bqd,bkd->bqk"}> : () -> ()
    %cst_98 = arith.constant dense<0.000000e+00> : vector<2x8x12xf32>
    %356 = tpu.matmul %349, %352, %cst_98 {dimension_numbers = #tpu.dot_dimension_numbers<[2], [2], [1], [1], [0, 0, 0, 1, 1, 1], [0], [0]>} : vector<2x8x8xbf16>, vector<2x12x8xbf16>, vector<2x8x12xf32> -> vector<2x8x12xf32>
    "tpu.trace_stop"() : () -> ()
    %cst_99 = arith.constant dense<0xFF800000> : vector<2x8xf32>
    %357 = vector.multi_reduction <maximumf>, %356, %cst_99 [2] : vector<2x8x12xf32> to vector<2x8xf32>
    %358 = vector.shape_cast %357 : vector<2x8xf32> to vector<2x8x1xf32>
    %359 = vector.broadcast %358 : vector<2x8x1xf32> to vector<2x8x12xf32>
    %360 = arith.subf %356, %359 : vector<2x8x12xf32>
    %361 = math.exp %360 : vector<2x8x12xf32>
    %cst_100 = arith.constant dense<0.000000e+00> : vector<2x8xf32>
    %362 = vector.multi_reduction <add>, %361, %cst_100 [2] : vector<2x8x12xf32> to vector<2x8xf32>
    %363 = vector.shape_cast %362 : vector<2x8xf32> to vector<2x8x1xf32>
    %364 = vector.broadcast %363 : vector<2x8x1xf32> to vector<2x8x12xf32>
    %365 = arith.divf %361, %364 : vector<2x8x12xf32>
    %366 = arith.truncf %365 : vector<2x8x12xf32> to vector<2x8x12xbf16>
    "tpu.trace_start"() <{level = 10 : i32, message = "bqk,bkd->bqd"}> : () -> ()
    %cst_101 = arith.constant dense<0.000000e+00> : vector<2x8x8xf32>
    %367 = tpu.matmul %366, %355, %cst_101 {dimension_numbers = #tpu.dot_dimension_numbers<[2], [1], [1], [2], [0, 0, 0, 1, 1, 2], [0], [0]>} : vector<2x8x12xbf16>, vector<2x12x8xbf16>, vector<2x8x8xf32> -> vector<2x8x8xf32>
    "tpu.trace_stop"() : () -> ()
    %368 = vector.shape_cast %367 : vector<2x8x8xf32> to vector<16x8xf32>
    %369 = arith.truncf %368 : vector<16x8xf32> to vector<16x8xbf16>
    %370 = vector.extract_strided_slice %21 {offsets = [3, 0, 0], sizes = [1, 8, 32], strides = [1, 1, 1]} : vector<4x8x32xf32> to vector<1x8x32xf32>
    %371 = vector.shape_cast %370 : vector<1x8x32xf32> to vector<8x32xf32>
    %372 = arith.truncf %371 : vector<8x32xf32> to vector<8x32xbf16>
    %cst_102 = arith.constant dense<0.000000e+00> : vector<16x32xf32>
    %373 = tpu.matmul %369, %372, %cst_102 {dimension_numbers = #tpu.dot_dimension_numbers<[1], [0], [0], [1], [0, 0, 1, 1], [], []>} : vector<16x8xbf16>, vector<8x32xbf16>, vector<16x32xf32> -> vector<16x32xf32>
    %374 = arith.addf %344, %373 : vector<16x32xf32>
    %375 = vector.broadcast %23 : vector<1x32xf32> to vector<16x32xf32>
    %376 = arith.addf %374, %375 : vector<16x32xf32>
    %377 = arith.addf %227, %376 : vector<16x32xf32>
    %cst_103 = arith.constant dense<0.000000e+00> : vector<16xf32>
    %378 = vector.multi_reduction <add>, %377, %cst_103 [1] : vector<16x32xf32> to vector<16xf32>
    %379 = vector.shape_cast %378 : vector<16xf32> to vector<16x1xf32>
    %cst_104 = arith.constant 3.200000e+01 : f32
    %380 = vector.broadcast %cst_104 : f32 to vector<16x1xf32>
    %381 = arith.divf %379, %380 : vector<16x1xf32>
    %382 = vector.broadcast %381 : vector<16x1xf32> to vector<16x32xf32>
    %383 = arith.subf %377, %382 : vector<16x32xf32>
    %384 = arith.mulf %383, %383 : vector<16x32xf32>
    %cst_105 = arith.constant dense<0.000000e+00> : vector<16xf32>
    %385 = vector.multi_reduction <add>, %384, %cst_105 [1] : vector<16x32xf32> to vector<16xf32>
    %386 = vector.shape_cast %385 : vector<16xf32> to vector<16x1xf32>
    %cst_106 = arith.constant 3.200000e+01 : f32
    %387 = vector.broadcast %cst_106 : f32 to vector<16x1xf32>
    %388 = arith.divf %386, %387 : vector<16x1xf32>
    %389 = vector.broadcast %381 : vector<16x1xf32> to vector<16x32xf32>
    %390 = arith.subf %377, %389 : vector<16x32xf32>
    %cst_107 = arith.constant 9.99999974E-6 : f32
    %391 = vector.broadcast %cst_107 : f32 to vector<16x1xf32>
    %392 = arith.addf %388, %391 : vector<16x1xf32>
    %393 = math.rsqrt %392 : vector<16x1xf32>
    %394 = vector.broadcast %393 : vector<16x1xf32> to vector<16x32xf32>
    %395 = arith.mulf %390, %394 : vector<16x32xf32>
    %396 = vector.broadcast %37 : vector<1x32xf32> to vector<16x32xf32>
    %397 = arith.mulf %395, %396 : vector<16x32xf32>
    %398 = vector.broadcast %39 : vector<1x32xf32> to vector<16x32xf32>
    %399 = arith.addf %397, %398 : vector<16x32xf32>
    %400 = arith.truncf %399 : vector<16x32xf32> to vector<16x32xbf16>
    %401 = arith.truncf %25 : vector<32x64xf32> to vector<32x64xbf16>
    %cst_108 = arith.constant dense<0.000000e+00> : vector<16x64xf32>
    %402 = tpu.matmul %400, %401, %cst_108 {dimension_numbers = #tpu.dot_dimension_numbers<[1], [0], [0], [1], [0, 0, 1, 1], [], []>} : vector<16x32xbf16>, vector<32x64xbf16>, vector<16x64xf32> -> vector<16x64xf32>
    %403 = vector.broadcast %27 : vector<1x64xf32> to vector<16x64xf32>
    %404 = arith.addf %402, %403 : vector<16x64xf32>
    %cst_109 = arith.constant 0.000000e+00 : f32
    %405 = vector.broadcast %cst_109 : f32 to vector<16x64xf32>
    %406 = arith.maximumf %404, %405 : vector<16x64xf32>
    %407 = arith.truncf %406 : vector<16x64xf32> to vector<16x64xbf16>
    %408 = arith.truncf %29 : vector<64x32xf32> to vector<64x32xbf16>
    %cst_110 = arith.constant dense<0.000000e+00> : vector<16x32xf32>
    %409 = tpu.matmul %407, %408, %cst_110 {dimension_numbers = #tpu.dot_dimension_numbers<[1], [0], [0], [1], [0, 0, 1, 1], [], []>} : vector<16x64xbf16>, vector<64x32xbf16>, vector<16x32xf32> -> vector<16x32xf32>
    %410 = vector.broadcast %31 : vector<1x32xf32> to vector<16x32xf32>
    %411 = arith.addf %409, %410 : vector<16x32xf32>
    %412 = arith.addf %399, %411 : vector<16x32xf32>
    %cst_111 = arith.constant dense<0.000000e+00> : vector<16xf32>
    %413 = vector.multi_reduction <add>, %412, %cst_111 [1] : vector<16x32xf32> to vector<16xf32>
    %414 = vector.shape_cast %413 : vector<16xf32> to vector<16x1xf32>
    %cst_112 = arith.constant 3.200000e+01 : f32
    %415 = vector.broadcast %cst_112 : f32 to vector<16x1xf32>
    %416 = arith.divf %414, %415 : vector<16x1xf32>
    %417 = vector.broadcast %416 : vector<16x1xf32> to vector<16x32xf32>
    %418 = arith.subf %412, %417 : vector<16x32xf32>
    %419 = arith.mulf %418, %418 : vector<16x32xf32>
    %cst_113 = arith.constant dense<0.000000e+00> : vector<16xf32>
    %420 = vector.multi_reduction <add>, %419, %cst_113 [1] : vector<16x32xf32> to vector<16xf32>
    %421 = vector.shape_cast %420 : vector<16xf32> to vector<16x1xf32>
    %cst_114 = arith.constant 3.200000e+01 : f32
    %422 = vector.broadcast %cst_114 : f32 to vector<16x1xf32>
    %423 = arith.divf %421, %422 : vector<16x1xf32>
    %424 = vector.broadcast %416 : vector<16x1xf32> to vector<16x32xf32>
    %425 = arith.subf %412, %424 : vector<16x32xf32>
    %cst_115 = arith.constant 9.99999974E-6 : f32
    %426 = vector.broadcast %cst_115 : f32 to vector<16x1xf32>
    %427 = arith.addf %423, %426 : vector<16x1xf32>
    %428 = math.rsqrt %427 : vector<16x1xf32>
    %429 = vector.broadcast %428 : vector<16x1xf32> to vector<16x32xf32>
    %430 = arith.mulf %425, %429 : vector<16x32xf32>
    %431 = vector.broadcast %41 : vector<1x32xf32> to vector<16x32xf32>
    %432 = arith.mulf %430, %431 : vector<16x32xf32>
    %433 = vector.broadcast %43 : vector<1x32xf32> to vector<16x32xf32>
    %434 = arith.addf %432, %433 : vector<16x32xf32>
    %c0_116 = arith.constant 0 : index
    %c0_117 = arith.constant 0 : index
    %435 = vector.load %arg15[%c0_116, %c0_117] : memref<16x32xf32, #tpu.memory_space<vmem>>, vector<16x32xf32>
    tpu.vector_store %arg15[%c0_116, %c0_117], %434 {strides = array<i32>} : memref<16x32xf32, #tpu.memory_space<vmem>>, vector<16x32xf32>,
    return
  }
  func.func @transform_0(%arg0: i32) -> (i32, i32) {
    %c0_i32 = arith.constant 0 : i32
    %c0_i32_0 = arith.constant 0 : i32
    %c0_i32_1 = arith.constant 0 : i32
    return %c0_i32, %c0_i32_0 : i32, i32
  }
  func.func @transform_1(%arg0: i32) -> (i32, i32) {
    %c0_i32 = arith.constant 0 : i32
    %c0_i32_0 = arith.constant 0 : i32
    %c0_i32_1 = arith.constant 0 : i32
    return %c0_i32, %c0_i32_0 : i32, i32
  }
  func.func @transform_2(%arg0: i32) -> (i32, i32) {
    %c0_i32 = arith.constant 0 : i32
    %c0_i32_0 = arith.constant 0 : i32
    %c0_i32_1 = arith.constant 0 : i32
    return %c0_i32, %c0_i32_0 : i32, i32
  }
  func.func @transform_3(%arg0: i32) -> (i32, i32) {
    %c0_i32 = arith.constant 0 : i32
    %c0_i32_0 = arith.constant 0 : i32
    %c0_i32_1 = arith.constant 0 : i32
    return %c0_i32, %c0_i32_0 : i32, i32
  }
  func.func @transform_4(%arg0: i32) -> (i32, i32, i32, i32) {
    %c0_i32 = arith.constant 0 : i32
    %c0_i32_0 = arith.constant 0 : i32
    %c0_i32_1 = arith.constant 0 : i32
    %c0_i32_2 = arith.constant 0 : i32
    return %arg0, %c0_i32, %c0_i32_0, %c0_i32_1 : i32, i32, i32, i32
  }
  func.func @transform_5(%arg0: i32) -> (i32, i32, i32, i32) {
    %c0_i32 = arith.constant 0 : i32
    %c0_i32_0 = arith.constant 0 : i32
    %c0_i32_1 = arith.constant 0 : i32
    %c0_i32_2 = arith.constant 0 : i32
    return %arg0, %c0_i32, %c0_i32_0, %c0_i32_1 : i32, i32, i32, i32
  }
  func.func @transform_6(%arg0: i32) -> (i32, i32, i32, i32) {
    %c0_i32 = arith.constant 0 : i32
    %c0_i32_0 = arith.constant 0 : i32
    %c0_i32_1 = arith.constant 0 : i32
    %c0_i32_2 = arith.constant 0 : i32
    return %arg0, %c0_i32, %c0_i32_0, %c0_i32_1 : i32, i32, i32, i32
  }
  func.func @transform_7(%arg0: i32) -> (i32, i32, i32, i32) {
    %c0_i32 = arith.constant 0 : i32
    %c0_i32_0 = arith.constant 0 : i32
    %c0_i32_1 = arith.constant 0 : i32
    %c0_i32_2 = arith.constant 0 : i32
    return %arg0, %c0_i32, %c0_i32_0, %c0_i32_1 : i32, i32, i32, i32
  }
  func.func @transform_8(%arg0: i32) -> (i32, i32, i32, i32) {
    %c0_i32 = arith.constant 0 : i32
    %c0_i32_0 = arith.constant 0 : i32
    %c0_i32_1 = arith.constant 0 : i32
    %c0_i32_2 = arith.constant 0 : i32
    return %arg0, %c0_i32, %c0_i32_0, %c0_i32_1 : i32, i32, i32, i32
  }
  func.func @transform_9(%arg0: i32) -> (i32, i32, i32, i32) {
    %c0_i32 = arith.constant 0 : i32
    %c0_i32_0 = arith.constant 0 : i32
    %c0_i32_1 = arith.constant 0 : i32
    %c0_i32_2 = arith.constant 0 : i32
    return %arg0, %c0_i32, %c0_i32_0, %c0_i32_1 : i32, i32, i32, i32
  }
  func.func @transform_10(%arg0: i32) -> (i32, i32, i32) {
    %c0_i32 = arith.constant 0 : i32
    %c0_i32_0 = arith.constant 0 : i32
    %c0_i32_1 = arith.constant 0 : i32
    return %arg0, %c0_i32, %c0_i32_0 : i32, i32, i32
  }
  func.func @transform_11(%arg0: i32) -> (i32, i32, i32) {
    %c0_i32 = arith.constant 0 : i32
    %c0_i32_0 = arith.constant 0 : i32
    %c0_i32_1 = arith.constant 0 : i32
    return %arg0, %c0_i32, %c0_i32_0 : i32, i32, i32
  }
  func.func @transform_12(%arg0: i32) -> (i32, i32, i32) {
    %c0_i32 = arith.constant 0 : i32
    %c0_i32_0 = arith.constant 0 : i32
    %c0_i32_1 = arith.constant 0 : i32
    return %arg0, %c0_i32, %c0_i32_0 : i32, i32, i32
  }
  func.func @transform_13(%arg0: i32) -> (i32, i32, i32, i32) {
    %c0_i32 = arith.constant 0 : i32
    %c0_i32_0 = arith.constant 0 : i32
    %c0_i32_1 = arith.constant 0 : i32
    %c0_i32_2 = arith.constant 0 : i32
    return %arg0, %c0_i32, %c0_i32_0, %c0_i32_1 : i32, i32, i32, i32
  }
  func.func @transform_14(%arg0: i32) -> (i32, i32) {
    %c0_i32 = arith.constant 0 : i32
    %c0_i32_0 = arith.constant 0 : i32
    %c0_i32_1 = arith.constant 0 : i32
    return %c0_i32, %c0_i32_0 : i32, i32
  }
}

</mosaic_0001>

<bundles_post_ra>
// kernel: tpu_custom_call.1
= control target key start
LH: loop header
LB: loop body
LE: loop exit
PB: predicated region body
PF: predicated region fallthrough
CT: control target
= control target key end

     0   :  { %s5965_s0 = inlined_call_operand.hbm [shape: f32[16,32], index: 0, kind: input, shape index: {}]   ;;  %s5966_s1 = inlined_call_operand.hbm [shape: f32[16,32], index: 1, kind: input, shape index: {}]   ;;  %s5967_s2 = inlined_call_operand.hbm [shape: f32[24,32], index: 2, kind: input, shape index: {}]   ;;  %s5968_s3 = inlined_call_operand.hbm [shape: f32[8,8], index: 3, kind: input, shape index: {}]   ;;  %s5969_s4 = inlined_call_operand.vmem [shape: f32[2,3,32,32], index: 4, kind: input, shape index: {}]   ;;  %s5970_s5 = inlined_call_operand.hbm [shape: f32[2,3,1,32], index: 5, kind: input, shape index: {}]   ;;  %s5971_s6 = inlined_call_operand.hbm [shape: f32[2,4,8,32], index: 6, kind: input, shape index: {}]   ;;  %s5972_s7 = inlined_call_operand.hbm [shape: f32[2,3,32,32], index: 7, kind: input, shape index: {}]   ;;  %s5973_s8 = inlined_call_operand.vmem [shape: f32[2,3,1,32], index: 8, kind: input, shape index: {}]   ;;  %s5974_s9 = inlined_call_operand.hbm [shape: f32[2,4,8,32], index: 9, kind: input, shape index: {}]   ;;  %s5975_s10 = inlined_call_operand.hbm [shape: f32[2,32,64], index: 10, kind: input, shape index: {}]   ;;  %s5976_s11 = inlined_call_operand.vmem [shape: f32[2,1,64], index: 11, kind: input, shape index: {}]   ;;  %s5977_s12 = inlined_call_operand.vmem [shape: f32[2,64,32], index: 12, kind: input, shape index: {}]   ;;  %s5978_s13 = inlined_call_operand.vmem [shape: f32[2,9,1,32], index: 13, kind: input, shape index: {}]   ;;  %s5979_s14 = inlined_call_operand.hbm [shape: f32[16,32], index: 14, kind: output, shape index: {}]  }
   0x1   :  { %6002 = sst [smem:[#allocation26_spill]] %s5965_s0 }
   0x2   :  { %6003 = sst [smem:[#allocation27_spill]] %s5966_s1 }
   0x3   :  { %6004 = sst [smem:[#allocation28_spill]] %s5969_s4 }
   0x4   :  { %6005 = sst [smem:[#allocation29_spill]] %s5970_s5 }
   0x5   :  { %6006 = sst [smem:[#allocation30_spill]] %s5971_s6 }
   0x6   :  { %6007 = sst [smem:[#allocation31_spill]] %s5973_s8 }
   0x7   :  { %6008 = sst [smem:[#allocation32_spill]] %s5976_s11 }
   0x8   :  { %6009 = sst [smem:[#allocation33_spill]] %s5977_s12 }
   0x9   :  { %6010 = sst [smem:[#allocation34_spill]] %s5978_s13 }
   0xa   :  { %6011 = sst [smem:[#allocation35_spill]] %s5979_s14 }
   0xb   :  { %19 = vsyncpa [#allocation3], 0 }
   0xc   :  { %20 = vsyncpa [#allocation6], 0 }
   0xd   :  { %21 = vsyncpa [#allocation9], 0 }
   0xe   :  { %22 = vsyncpa [#allocation4], 0  ;;  %s5016_s29 = smov 0   ;;  %s5018_s30 = smov 0  }
   0xf   :  { %s5020_s15 = smov 0   ;;  %s5022_s16 = smov 0  }
  0x10 LB: > { %6012 = sst [smem:[#allocation21_spill]] %s4910_s30  ;;  %s5035_s17 = sadd.s32 4294967295, %s4918_s16   ;;  %s4918_s16 = sphi %s5022_s16, %s6054_s16   ;;  %s4914_s15 = sphi %s5020_s15, %s6057_s15   ;;  %s4910_s30 = sphi %s5018_s30, %s6056_s30   ;;  %s4906_s29 = sphi %s5016_s29, %s6055_s29  }
  0x11   : > { %6013 = sst [smem:[#allocation22_spill]] %s4914_s15  ;;  %p158_p0 = scmp.ne.s32.totalorder %s4910_s30, %s4906_s29 }
  0x12   : > { %p5981_p1 = scmp.eq.s32.totalorder %s5035_s17, 0  ;;  %p3858_p2 = scmp.ge.s32.totalorder %s4918_s16, 1 }
  0x13   : > { %p398_p3 = scmp.lt.s32.totalorder %s4918_s16, 3  ;;  %s4920_s20 = smov [#allocation2]  }
  0x14   : > { %p5044_p5 = por %p5981_p1, %p158_p0  ;;  %s410_s21 = sshll.u32 %s4920_s20, 4  ;;  %s411_s21 = int_to_ptr.vmem [resolvable:$true] %s410_s21 }
  0x15   : > { %p5048_p6 = pnand %p3858_p2, %p398_p3  ;;  %s5061_s23 = sadd.s32 1, %s4918_s16  }
  0x16   : > { %s6014_s18 = scalar_select %p5044_p5, 1, 0 }
  0x17   : > { %s6016_s19 = scalar_select %p5048_p6, 1, 0 }
  0x18   : > { %6015 = sst [smem:[#allocation23_spill]] %s6014_s18  ;;  %p4416_p7 = pneg %p5048_p6 }
  0x19   : > { %6018 = sst [smem:[#allocation24_spill]] %s5061_s23  ;;  %s145_s24 = sadd.s32 1, %s4914_s15 }
  0x1a   : > { %p5056_p8 = pnand %p4416_p7, %p5981_p1  ;;  %s142_s25 = ssub.s32 %s4918_s16, %s5061_s23 }
  0x1b   : > { %s6019_s0 = sld [smem:[#allocation26_spill]] }
  0x1c   : > { %s6017_s22 = scalar_select %p5056_p8, 1, 0 }
  0x1d   : > { %p5074_p10 = pneg %p5056_p8 }
  0x1f   : > { %s6020_s14 = scalar_select %p5074_p10, 1, 0 }
  0x21   : > { %s4580_s28 = scalar_lea.hbm %s6019_s0, 256 }
  0x22   : > { %p4581_p9 = scmp.ne.s32.totalorder %s6019_s0, %s4580_s28  ;;  %p4587_p13 = scmp.lt.u32.totalorder %s4580_s28, %s6019_s0 }
  0x24   : > { %p4583_p11 = pnand %p5074_p10, %p4581_p9 }
  0x26   : > { %p4584_p12 = pneg %p4583_p11 }
  0x28   : > { %p4589_p0 = pnand %p4587_p13, %p4584_p12 }
  0x2a   : > { %4592 = shalt.err (!%p4589_p0)
}
  0x2b   : > { %s4593_s26 = scalar_lea.vmem %s411_s21, 256  ;;  %p4601_p4 = scmp.lt.s32.totalorder %s411_s21, %s411_s21 }
  0x2c   : > { %p4594_p2 = scmp.ne.s32.totalorder %s411_s21, %s4593_s26  ;;  %p4602_p1 = scmp.lt.s32.totalorder %s4593_s26, %s4593_s26 }
  0x2e   : > { %p4596_p3 = pnand %p4594_p2, %p5074_p10  ;;  %p4603_p5 = por %p4602_p1, %p4601_p4 }
  0x30   : > { %p4597_p7 = pneg %p4596_p3 }
  0x32   : > { %p4604_p6 = pnand %p4603_p5, %p4597_p7 }
  0x34   : > { %4607 = shalt.err (!%p4604_p6)
}
  0x35   : > { %s5986_s27 = smov 128   ;;  %s5988_s8 = smov 8  }
  0x36   : > { %4419 = dma.hbm_to_vmem [thread:$0]  (!%p5056_p8), %s6019_s0, 256, %s411_s21, [#allocation3], %s5986_s27, %s5986_s27, %s5988_s8  }
  0x37   : > { %p143_p1 = scmp.eq.s32.totalorder %s142_s25, 0  ;;  %p152_p4 = scmp.ne.s32.totalorder %s4914_s15, %s4910_s30 }
  0x38   : > { %p153_p5 = scmp.eq.s32.totalorder %s4918_s16, 0  ;;  %p4449_p6 = scmp.lt.s32.totalorder %s4918_s16, 2 }
  0x39   : > { %s5098_s29 = scalar_select %p143_p1, %s4914_s15, %s145_s24  }
  0x3a   : > { %p154_p9 = por %p153_p5, %p152_p4  ;;  %s469_s20 = sand.u32 1, %s4918_s16  }
  0x3b   : > { %6021 = sst [smem:[#allocation25_spill]] %s5098_s29  ;;  %s5102_s26 = sand.u32 1, %s4914_s15  }
  0x3c   : > { %s4377_s23 = smul.u32 3, %s5102_s26  ;;  %p5105_p11 = pnand %p4449_p6, %p154_p9 }
  0x3d   : > { %s4378_s4 = smul.u32 48, %s4918_s16  ;;  %s6023_s5 = sld [smem:[#allocation29_spill]] }
  0x3e   : > { %s6022_s12 = scalar_select %p5105_p11, 1, 0 }
  0x3f   : > { %s473_s24 = scalar_lea.vmem [#allocation10], %s4377_s23  ;;  %s5117_s27 = scalar_lea.sflag [#allocation3], %s469_s20 }
  0x40   : > { %s480_s28 = sshll.u32 %s473_s24, 4  ;;  %p5123_p13 = pneg %p5105_p11  ;;  %s5115_s28 = int_to_ptr.vmem [resolvable:$true] %s480_s28 }
  0x42   : > { %s6024_s0 = scalar_select %p5123_p13, 1, 0 }
  0x43   : > { %s5113_s25 = scalar_lea.hbm %s6023_s5, %s4378_s4  ;;  %s4613_s23 = scalar_lea.hbm %s6023_s5, 96 }
  0x44   : > { %s4608_s8 = scalar_lea.hbm %s5113_s25, 48  ;;  %p4614_p3 = scmp.lt.u32.totalorder %s5113_s25, %s6023_s5 }
  0x45   : > { %p4609_p12 = scmp.ne.s32.totalorder %s5113_s25, %s4608_s8  ;;  %p4615_p7 = scmp.lt.u32.totalorder %s4613_s23, %s4608_s8 }
  0x46   : > { %p4617_p4 = scmp.lt.u32.totalorder %s4608_s8, %s5113_s25 }
  0x47   : > { %p4611_p0 = pnand %p5123_p13, %p4609_p12  ;;  %p4616_p1 = por %p4615_p7, %p4614_p3 }
  0x49   : > { %p4612_p2 = pneg %p4611_p0  ;;  %p4618_p5 = por %p4617_p4, %p4616_p1 }
  0x4b   : > { %p4619_p6 = pnand %p4618_p5, %p4612_p2 }
  0x4d   : > { %4622 = shalt.err (!%p4619_p6)
}
  0x4e   : > { %s4623_s20 = scalar_lea.vmem %s5115_s28, 48  ;;  %s4923_s4 = smov [#allocation10]  }
  0x4f   : > { %p4624_p9 = scmp.ne.s32.totalorder %s5115_s28, %s4623_s20  ;;  %s4628_s13 = sshll.u32 %s4923_s4, 4  ;;  %s4629_s13 = int_to_ptr.vmem [resolvable:$false] %s4628_s13 }
  0x50   : > { %s4630_s21 = scalar_lea.vmem %s4629_s13, 96  ;;  %p4631_p8 = scmp.lt.s32.totalorder %s5115_s28, %s4629_s13 }
  0x51   : > { %p4626_p12 = pnand %p4624_p9, %p5123_p13  ;;  %p4632_p10 = scmp.lt.s32.totalorder %s4630_s21, %s4623_s20 }
  0x53   : > { %p4627_p0 = pneg %p4626_p12  ;;  %p4633_p3 = por %p4632_p10, %p4631_p8 }
  0x55   : > { %p4634_p7 = pnand %p4633_p3, %p4627_p0 }
  0x57   : > { %4637 = shalt.err (!%p4634_p7)
}
  0x58   : > { %s4924_s8 = smov 16   ;;  %s4925_s23 = smov 1  }
  0x59   : > { %4432 = dma.hbm_to_vmem [thread:$0]  (!%p5105_p11), %s5113_s25, 48, %s5115_s28, %s5117_s27, %s4924_s8, %s4924_s8, %s4925_s23  }
  0x5a   : > { %s5148_s24 = sshll.u32 %s5102_s26, 5  ;;  %s5151_s20 = sshll.u32 %s4918_s16, 9 }
  0x5b   : > { %s6025_s6 = sld [smem:[#allocation30_spill]]  ;;  %s494_s5 = scalar_lea.vmem [#allocation11], %s5148_s24 }
  0x5c   : > { %s501_s29 = sshll.u32 %s494_s5, 4  ;;  %s4379_s15 = smul.u32 96, %s5102_s26  ;;  %s5161_s29 = int_to_ptr.vmem [resolvable:$true] %s501_s29 }
  0x5d   : > { %s4380_s25 = smul.u32 1536, %s4918_s16 }
  0x61   : > { %s5157_s21 = scalar_lea.hbm %s6025_s6, %s5151_s20  ;;  %s4643_s4 = scalar_lea.hbm %s6025_s6, 1024 }
  0x62   : > { %s4638_s28 = scalar_lea.hbm %s5157_s21, 512  ;;  %p4644_p1 = scmp.lt.u32.totalorder %s5157_s21, %s6025_s6 }
  0x63   : > { %p4639_p8 = scmp.ne.s32.totalorder %s5157_s21, %s4638_s28  ;;  %p4645_p4 = scmp.lt.u32.totalorder %s4643_s4, %s4638_s28 }
  0x64   : > { %p4647_p6 = scmp.lt.u32.totalorder %s4638_s28, %s5157_s21 }
  0x65   : > { %p4641_p10 = pnand %p4639_p8, %p5123_p13  ;;  %p4646_p5 = por %p4645_p4, %p4644_p1 }
  0x67   : > { %p4642_p2 = pneg %p4641_p10  ;;  %p4648_p9 = por %p4647_p6, %p4646_p5 }
  0x69   : > { %p4649_p12 = pnand %p4648_p9, %p4642_p2 }
  0x6b   : > { %4652 = shalt.err (!%p4649_p12)
}
  0x6c   : > { %s4653_s5 = scalar_lea.vmem %s5161_s29, 512  ;;  %s4926_s8 = smov [#allocation11]  }
  0x6d   : > { %p4654_p0 = scmp.ne.s32.totalorder %s5161_s29, %s4653_s5  ;;  %s4658_s23 = sshll.u32 %s4926_s8, 4  ;;  %s4659_s23 = int_to_ptr.vmem [resolvable:$false] %s4658_s23 }
  0x6e   : > { %s4660_s11 = scalar_lea.vmem %s4659_s23, 1024  ;;  %p4661_p8 = scmp.lt.s32.totalorder %s5161_s29, %s4659_s23 }
  0x6f   : > { %p4656_p3 = pnand %p4654_p0, %p5123_p13  ;;  %p4662_p10 = scmp.lt.s32.totalorder %s4660_s11, %s4653_s5 }
  0x71   : > { %p4657_p7 = pneg %p4656_p3  ;;  %p4663_p1 = por %p4662_p10, %p4661_p8 }
  0x73   : > { %p4664_p4 = pnand %p4663_p1, %p4657_p7 }
  0x75   : > { %4667 = shalt.err (!%p4664_p4)
}
  0x76   : > { %s6026_s28 = smov 8   ;;  %s6027_s4 = smov 128  }
  0x77   : > { %4435 = dma.hbm_to_vmem [thread:$0]  (!%p5105_p11), %s5157_s21, 512, %s5161_s29, %s5117_s27, %s6027_s4, %s6027_s4, %s6026_s28  }
  0x78   : > { %s5194_s5 = scalar_lea.hbm %s5972_s7, %s4380_s25  ;;  %s515_s23 = scalar_lea.vmem [#allocation12], %s4379_s15 }
  0x79   : > { %s522_s11 = sshll.u32 %s515_s23, 4  ;;  %s4927_s6 = smov [#allocation5]   ;;  %s5198_s11 = int_to_ptr.vmem [resolvable:$true] %s522_s11 }
  0x7a   : > { %s5200_s18 = sshll.u32 %s4927_s6, 4  ;;  %s4668_s30 = scalar_lea.hbm %s5194_s5, 1536  ;;  %s424_s18 = int_to_ptr.vmem [resolvable:$true] %s5200_s18 }
  0x7b   : > { %p4669_p2 = scmp.ne.s32.totalorder %s5194_s5, %s4668_s30  ;;  %s4673_s26 = scalar_lea.hbm %s5972_s7, 3072 }
  0x7c   : > { %p4674_p9 = scmp.lt.u32.totalorder %s5194_s5, %s5972_s7  ;;  %p4675_p12 = scmp.lt.u32.totalorder %s4673_s26, %s4668_s30 }
  0x7d   : > { %p4671_p5 = pnand %p4669_p2, %p5123_p13  ;;  %p4677_p3 = scmp.lt.u32.totalorder %s4668_s30, %s5194_s5 }
  0x7e   : > { %p4676_p0 = por %p4675_p12, %p4674_p9 }
  0x7f   : > { %p4672_p6 = pneg %p4671_p5 }
  0x80   : > { %p4678_p7 = por %p4677_p3, %p4676_p0 }
  0x82   : > { %p4679_p8 = pnand %p4678_p7, %p4672_p6 }
  0x84   : > { %4682 = shalt.err (!%p4679_p8)
}
  0x85   : > { %s4683_s6 = scalar_lea.vmem %s5198_s11, 1536  ;;  %s4928_s15 = smov [#allocation12]  }
  0x86   : > { %p4684_p10 = scmp.ne.s32.totalorder %s5198_s11, %s4683_s6  ;;  %s4688_s13 = sshll.u32 %s4928_s15, 4  ;;  %s4689_s13 = int_to_ptr.vmem [resolvable:$false] %s4688_s13 }
  0x87   : > { %s4690_s8 = scalar_lea.vmem %s4689_s13, 3072  ;;  %p4691_p2 = scmp.lt.s32.totalorder %s5198_s11, %s4689_s13 }
  0x88   : > { %p4686_p1 = pnand %p4684_p10, %p5123_p13  ;;  %p4692_p5 = scmp.lt.s32.totalorder %s4690_s8, %s4683_s6 }
  0x8a   : > { %p4687_p4 = pneg %p4686_p1  ;;  %p4693_p9 = por %p4692_p5, %p4691_p2 }
  0x8c   : > { %p4694_p12 = pnand %p4693_p9, %p4687_p4 }
  0x8e   : > { %4697 = shalt.err (!%p4694_p12)
}
  0x8f   : > { %4438 = dma.hbm_to_vmem [thread:$0]  (!%p5105_p11), %s5194_s5, 1536, %s5198_s11, %s5117_s27, %s6027_s4, %s6027_s4, %s6026_s28  }
  0x90   : > { %s6028_s1 = sld [smem:[#allocation27_spill]]  ;;  %p6029_p0 = scmp.ne.s32.totalorder %s6020_s14, 0 }
  0x96   : > { %s4698_s16 = scalar_lea.hbm %s6028_s1, 256 }
  0x97   : > { %p4699_p6 = scmp.ne.s32.totalorder %s6028_s1, %s4698_s16  ;;  %p4705_p8 = scmp.lt.u32.totalorder %s4698_s16, %s6028_s1 }
  0x99   : > { %p4701_p3 = pnand %p4699_p6, %p6029_p0 }
  0x9b   : > { %p4702_p7 = pneg %p4701_p3 }
  0x9d   : > { %p4707_p10 = pnand %p4705_p8, %p4702_p7 }
  0x9f   : > { %4710 = shalt.err (!%p4707_p10)
}
  0xa0   : > { %s4711_s6 = scalar_lea.vmem %s424_s18, 256  ;;  %p4719_p5 = scmp.lt.s32.totalorder %s424_s18, %s424_s18 }
  0xa1   : > { %p4712_p1 = scmp.ne.s32.totalorder %s424_s18, %s4711_s6  ;;  %p4720_p9 = scmp.lt.s32.totalorder %s4711_s6, %s4711_s6 }
  0xa3   : > { %p4714_p4 = pnand %p4712_p1, %p6029_p0  ;;  %p4721_p12 = por %p4720_p9, %p4719_p5 }
  0xa5   : > { %p4715_p2 = pneg %p4714_p4 }
  0xa7   : > { %p4722_p11 = pnand %p4721_p12, %p4715_p2 }
  0xa9   : > { %4725 = shalt.err (!%p4722_p11)
}
  0xaa   : > { %p6030_p6 = scmp.ne.s32.totalorder %s6017_s22, 0  ;;  %s5253_s8 = scalar_lea.hbm %s5974_s9, %s5151_s20 }
  0xab   : > { %s543_s30 = scalar_lea.vmem [#allocation13], %s5148_s24  ;;  %s4726_s16 = scalar_lea.hbm %s5253_s8, 512 }
  0xac   : > { %4422 = dma.hbm_to_vmem [thread:$0]  (!%p6030_p6), %s6028_s1, 256, %s424_s18, [#allocation6], %s6027_s4, %s6027_s4, %s6026_s28  }
  0xad   : > { %s550_s23 = sshll.u32 %s543_s30, 4  ;;  %p4727_p11 = scmp.ne.s32.totalorder %s5253_s8, %s4726_s16  ;;  %s5256_s23 = int_to_ptr.vmem [resolvable:$true] %s550_s23 }
  0xae   : > { %s4731_s26 = scalar_lea.hbm %s5974_s9, 1024  ;;  %p4732_p8 = scmp.lt.u32.totalorder %s5253_s8, %s5974_s9 }
  0xaf   : > { %p4729_p3 = pnand %p4727_p11, %p5123_p13  ;;  %p4733_p10 = scmp.lt.u32.totalorder %s4731_s26, %s4726_s16 }
  0xb0   : > { %p4735_p4 = scmp.lt.u32.totalorder %s4726_s16, %s5253_s8 }
  0xb1   : > { %p4730_p7 = pneg %p4729_p3  ;;  %p4734_p1 = por %p4733_p10, %p4732_p8 }
  0xb3   : > { %p4736_p2 = por %p4735_p4, %p4734_p1 }
  0xb5   : > { %p4737_p5 = pnand %p4736_p2, %p4730_p7 }
  0xb7   : > { %4740 = shalt.err (!%p4737_p5)
}
  0xb8   : > { %s4741_s6 = scalar_lea.vmem %s5256_s23, 512  ;;  %s4929_s5 = smov [#allocation13]  }
  0xb9   : > { %p4742_p9 = scmp.ne.s32.totalorder %s5256_s23, %s4741_s6  ;;  %s4746_s11 = sshll.u32 %s4929_s5, 4  ;;  %s4747_s11 = int_to_ptr.vmem [resolvable:$false] %s4746_s11 }
  0xba   : > { %s4748_s15 = scalar_lea.vmem %s4747_s11, 1024  ;;  %p4749_p3 = scmp.lt.s32.totalorder %s5256_s23, %s4747_s11 }
  0xbb   : > { %p4744_p12 = pnand %p4742_p9, %p5123_p13  ;;  %p4750_p6 = scmp.lt.s32.totalorder %s4748_s15, %s4741_s6 }
  0xbd   : > { %p4745_p11 = pneg %p4744_p12  ;;  %p4751_p8 = por %p4750_p6, %p4749_p3 }
  0xbf   : > { %p4752_p10 = pnand %p4751_p8, %p4745_p11 }
  0xc1   : > { %4755 = shalt.err (!%p4752_p10)
}
  0xc2   : > { %p6031_p7 = scmp.ne.s32.totalorder %s6022_s12, 0  ;;  %s4930_s13 = smov [#allocation7]  }
  0xc3   : > { %s436_s30 = sshll.u32 %s4930_s13, 4  ;;  %s4931_s16 = smov [#allocation8]   ;;  %s437_s30 = int_to_ptr.vmem [resolvable:$true] %s436_s30 }
  0xc4   : > { %4441 = dma.hbm_to_vmem [thread:$0]  (!%p6031_p7), %s5253_s8, 512, %s5256_s23, %s5117_s27, %s6027_s4, %s6027_s4, %s6026_s28  }
  0xc5   : > { %s450_s29 = sshll.u32 %s4931_s16, 4  ;;  %s4756_s21 = scalar_lea.hbm %s5967_s2, 384  ;;  %s451_s29 = int_to_ptr.vmem [resolvable:$true] %s450_s29 }
  0xc6   : > { %p4757_p6 = scmp.ne.s32.totalorder %s5967_s2, %s4756_s21  ;;  %p4763_p2 = scmp.lt.u32.totalorder %s4756_s21, %s5967_s2 }
  0xc8   : > { %p4759_p1 = pnand %p4757_p6, %p6029_p0 }
  0xca   : > { %p4760_p4 = pneg %p4759_p1 }
  0xcc   : > { %p4765_p5 = pnand %p4763_p2, %p4760_p4 }
  0xce   : > { %4768 = shalt.err (!%p4765_p5)
}
  0xcf   : > { %s4769_s8 = scalar_lea.vmem %s437_s30, 384  ;;  %p4777_p3 = scmp.lt.s32.totalorder %s437_s30, %s437_s30 }
  0xd0   : > { %p4770_p9 = scmp.ne.s32.totalorder %s437_s30, %s4769_s8  ;;  %p4778_p8 = scmp.lt.s32.totalorder %s4769_s8, %s4769_s8 }
  0xd2   : > { %p4772_p12 = pnand %p4770_p9, %p6029_p0  ;;  %p4779_p10 = por %p4778_p8, %p4777_p3 }
  0xd4   : > { %p4773_p11 = pneg %p4772_p12 }
  0xd6   : > { %p4780_p7 = pnand %p4779_p10, %p4773_p11 }
  0xd8   : > { %4783 = shalt.err (!%p4780_p7)
}
  0xd9   : > { %p6032_p6 = scmp.ne.s32.totalorder %s6017_s22, 0  ;;  %s4784_s18 = scalar_lea.hbm %s5968_s3, 128 }
  0xda   : > { %p4785_p1 = scmp.ne.s32.totalorder %s5968_s3, %s4784_s18  ;;  %p4791_p2 = scmp.lt.u32.totalorder %s4784_s18, %s5968_s3 }
  0xdb   : > { %4425 = dma.hbm_to_vmem [thread:$0]  (!%p6032_p6), %s5967_s2, 384, %s437_s30, [#allocation6], %s6027_s4, %s6027_s4, %s6026_s28  }
  0xdc   : > { %p4787_p7 = pnand %p4785_p1, %p6029_p0 }
  0xde   : > { %p4788_p4 = pneg %p4787_p7 }
  0xe0   : > { %p4793_p5 = pnand %p4791_p2, %p4788_p4 }
  0xe2   : > { %4796 = shalt.err (!%p4793_p5)
}
  0xe3   : > { %s4797_s5 = scalar_lea.vmem %s451_s29, 128  ;;  %p4805_p3 = scmp.lt.s32.totalorder %s451_s29, %s451_s29 }
  0xe4   : > { %p4798_p9 = scmp.ne.s32.totalorder %s451_s29, %s4797_s5  ;;  %p4806_p8 = scmp.lt.s32.totalorder %s4797_s5, %s4797_s5 }
  0xe6   : > { %p4800_p12 = pnand %p4798_p9, %p6029_p0  ;;  %p4807_p10 = por %p4806_p8, %p4805_p3 }
  0xe8   : > { %p4801_p11 = pneg %p4800_p12 }
  0xea   : > { %p4808_p13 = pnand %p4807_p10, %p4801_p11 }
  0xec   : > { %4811 = shalt.err (!%p4808_p13)
}
  0xed   : > { %4428 = dma.hbm_to_vmem [thread:$0]  (!%p6032_p6), %s5968_s3, 128, %s451_s29, [#allocation9]  }
  0xee   : > { %s5326_s14 = scalar_lea.hbm %s5975_s10, %s5151_s20  ;;  %s564_s15 = scalar_lea.vmem [#allocation14], %s5148_s24 }
  0xef   : > { %s571_s13 = sshll.u32 %s564_s15, 4  ;;  %s4812_s22 = scalar_lea.hbm %s5326_s14, 512  ;;  %s5329_s13 = int_to_ptr.vmem [resolvable:$true] %s571_s13 }
  0xf0   : > { %p4813_p13 = scmp.ne.s32.totalorder %s5326_s14, %s4812_s22  ;;  %p6033_p0 = scmp.ne.s32.totalorder %s6024_s0, 0 }
  0xf1   : > { %s4817_s18 = scalar_lea.hbm %s5975_s10, 1024  ;;  %p4818_p6 = scmp.lt.u32.totalorder %s5326_s14, %s5975_s10 }
  0xf2   : > { %p4815_p1 = pnand %p4813_p13, %p6033_p0  ;;  %p4819_p4 = scmp.lt.u32.totalorder %s4817_s18, %s4812_s22 }
  0xf3   : > { %p4821_p5 = scmp.lt.u32.totalorder %s4812_s22, %s5326_s14 }
  0xf4   : > { %p4816_p7 = pneg %p4815_p1  ;;  %p4820_p2 = por %p4819_p4, %p4818_p6 }
  0xf6   : > { %p4822_p9 = por %p4821_p5, %p4820_p2 }
  0xf8   : > { %p4823_p12 = pnand %p4822_p9, %p4816_p7 }
  0xfa   : > { %4826 = shalt.err (!%p4823_p12)
}
  0xfb   : > { %s4827_s24 = scalar_lea.vmem %s5329_s13, 512  ;;  %s4932_s21 = smov [#allocation14]  }
  0xfc   : > { %p4828_p11 = scmp.ne.s32.totalorder %s5329_s13, %s4827_s24  ;;  %s4832_s25 = sshll.u32 %s4932_s21, 4  ;;  %s4833_s25 = int_to_ptr.vmem [resolvable:$false] %s4832_s25 }
  0xfd   : > { %s4834_s6 = scalar_lea.vmem %s4833_s25, 1024  ;;  %p4835_p10 = scmp.lt.s32.totalorder %s5329_s13, %s4833_s25 }
  0xfe   : > { %p4830_p3 = pnand %p4828_p11, %p6033_p0  ;;  %p4836_p13 = scmp.lt.s32.totalorder %s4834_s6, %s4827_s24 }
 0x100   : > { %p4831_p8 = pneg %p4830_p3  ;;  %p4837_p1 = por %p4836_p13, %p4835_p10 }
 0x102   : > { %p4838_p6 = pnand %p4837_p1, %p4831_p8 }
 0x104   : > { %4841 = shalt.err (!%p4838_p6)
}
 0x105   : > { %p6034_p7 = scmp.ne.s32.totalorder %s6022_s12, 0  ;;  %p6035_p0 = scmp.ne.s32.totalorder %s6016_s19, 0 }
 0x106   : > { %p6036_p4 = scmp.eq.s32.totalorder (!%p6035_p0), %s5035_s17, 0 }
 0x107   : > { %4444 = dma.hbm_to_vmem [thread:$0]  (!%p6034_p7), %s5326_s14, 512, %s5329_s13, %s5117_s27, %s6027_s4, %s6027_s4, %s6026_s28  }
 0x108   : > { %604 = sbr.rel (%p6035_p0) target bundleno = 8176 (0x1ff0), region = 76 }
 0x10f   : > { %4885 = dma.done.wait (%p6036_p4), [#allocation3], 256   ;;  %p6037_p2 = pmov %p6036_p4 }
 0x111   : > { %4887 = vsyncadd (%p6037_p2), [#allocation3], 4294967040  ;;  %p6038_p5 = pmov %p6037_p2 }
 0x112   : > { %p6039_p9 = pmov %p6037_p2 }
 0x113   : > { %4889 = dma.done.wait (%p6038_p5), [#allocation6], 640  }
 0x114   : > { %4891 = vsyncadd (%p6039_p9), [#allocation6], 4294966656  ;;  %p6040_p12 = pmov %p6037_p2 }
 0x115   : > { %p6041_p11 = pmov %p6037_p2 }
 0x116   : > { %4893 = dma.done.wait (%p6040_p12), [#allocation9], 128  }
 0x117   : > { %4895 = vsyncadd (%p6041_p11), [#allocation9], 4294967168  ;;  %s6042_s0 = sld [smem:[#allocation21_spill]]  ;;  %s6043_s12 = sld [smem:[#allocation23_spill]] }
 0x118   : > { %s622_s19 = sand.u32 1, %s5035_s17  }
 0x119   : > { %s623_s4 = scalar_lea.sflag [#allocation3], %s622_s19 }
 0x11d   : > { %s624_s27 = sand.u32 1, %s6042_s0   ;;  %p6044_p3 = scmp.ne.s32.totalorder %s6043_s12, 0 }
 0x11e   : > { %s4381_s28 = smul.u32 3, %s624_s27 }
 0x120   : > { %s5372_s5 = scalar_lea.vmem [#allocation10], %s4381_s28 }
 0x121   : > { %4897 = dma.done.wait (%p6044_p3), %s623_s4, 3120  }
 0x122   : > { %4899 = vsyncadd (%p6044_p3), %s623_s4, 4294964176  ;;  %s3880_s30 = sshll.u32 %s624_s27, 5  ;;  %s4382_s11 = smul.u32 96, %s624_s27 }
 0x123   : > { %p743_p8 = scmp.lt.s32.totalorder %s5035_s17, 1  ;;  %s6046_s20 = sld [smem:[#allocation28_spill]] }
 0x124   : > { %s6047_s6 = sld [smem:[#allocation33_spill]]  ;;  %s6048_s27 = sld [smem:[#allocation31_spill]] }
 0x125   : > { %s5380_s8 = scalar_select %p743_p8, %s5035_s17, 1 }
 0x126   : > { %s6049_s13 = sld [smem:[#allocation34_spill]]  ;;  %s5410_s1 = scalar_lea.vmem [#allocation11], %s3880_s30 }
 0x127   : > { %s4383_s23 = smul.u32 96, %s5380_s8  ;;  %s3960_s29 = sshll.u32 %s5380_s8, 6 }
 0x128   : > { %s4384_s16 = smul.u32 3, %s5380_s8  ;;  %s5414_s18 = scalar_lea.vmem [#allocation13], %s3880_s30 }
 0x129   : > { %s5392_s24 = scalar_lea.vmem %s6046_s20, %s4383_s23  ;;  %s4385_s4 = smul.u32 9, %s5380_s8 }
 0x12a   : > { %s5397_s0 = scalar_lea.vmem %s6047_s6, %s3960_s29  ;;  %s5402_s28 = scalar_lea.vmem %s6048_s27, %s4384_s16 }
 0x12b   : > { %s5412_s23 = scalar_lea.vmem [#allocation12], %s4382_s11  ;;  %s5416_s26 = scalar_lea.vmem [#allocation14], %s3880_s30 }
 0x12c   : > { %s5408_s22 = scalar_lea.vmem %s6049_s13, %s4385_s4  ;;  %p6050_p10 = scmp.ne.s32.totalorder %s5035_s17, 0 }
 0x12d   : > { %v769_v0 = vld [vmem:[#allocation2] sm:$0xff] (!%p6050_p10)  ;;  %v771_v1 = vld [vmem:[#allocation5] sm:$0xff] (!%p6050_p10)  ;;  %v770_v2 = vld [vmem:[#allocation2 + $0x8] sm:$0xff] (!%p6050_p10)  ;;  %vm777_vm0 = vcmask (!%p6050_p10), 261120  }
 0x12e   : > { %768 = sbr.rel (%p6050_p10) target bundleno = 309 (0x135), region = 116  ;;  %v773_v3 = vadd.f32 (!%p6050_p10), %v771_v1, %v769_v0  ;;  %v772_v4 = vld [vmem:[#allocation5 + $0x8] sm:$0xff] (!%p6050_p10) }
 0x12f   : > { %v774_v5 = vadd.f32 (!%p6050_p10), %v772_v4, %v770_v2 }
 0x130   : > { %v775_v6 = vmul.f32 (!%p6050_p10), 5.656854, %v773_v3 }
 0x131   : > { %v776_v7 = vmul.f32 (!%p6050_p10), 5.656854, %v774_v5 }
 0x132   : > { %778 = vst.msk [vmem:[#allocation15] sm:$0xff] (!%p6050_p10), %vm777_vm0, %v775_v6 }
 0x133   : > { %779 = vst.msk [vmem:[#allocation15 + $0x8] sm:$0xff] (!%p6050_p10), %vm777_vm0, %v776_v7 }
 0x135 PF: > { %v799_v8 = vld [vmem:[%s5392_s24 + $0x20] sm:$0xff]  ;;  %v800_v9 = vld [vmem:[%s5392_s24 + $0x28] sm:$0xff]  ;;  %v4933_v11 = vmov 0.0   ;;  %v801_v14 = vld [vmem:[%s5392_s24 + $0x30] sm:$0xff]  ;;  %vm4934_vm1 = vmmov 0   ;;  %vm855_vm2 = vcmask 261120  }
 0x136   : > { %v795_v10 = vld [vmem:[%s5392_s24] sm:$0xff]  ;;  %4077 = vmatprep.subr.bf16.mxu1 %v4933_v11  ;;  %v900_v12 = vpack.c.bf16 %v800_v9, %v799_v8  ;;  %4069 = vmatprep.subr.bf16.mxu0 %v4933_v11  ;;  %v796_v13 = vld [vmem:[%s5392_s24 + $0x8] sm:$0xff]  ;;  %v802_v15 = vld [vmem:[%s5392_s24 + $0x38] sm:$0xff]  ;;  %vm1006_vm3 = vcmask 64512   ;;  %s4935_s30 = smov 120   ;;  %vm1126_vm4 = vcmask 1043456  }
 0x137   : > { %v847_v16 = vpack.c.bf16 %v796_v13, %v795_v10  ;;  %4081 = vmatprep.mubr.msk.bf16.mxu1 %vm4934_vm1, %v4933_v11  ;;  %v797_v17 = vld [vmem:[%s5392_s24 + $0x10] sm:$0xff]  ;;  %4073 = vmatprep.mubr.msk.bf16.mxu0 %vm4934_vm1, %v4933_v11  ;;  %v901_v18 = vpack.c.bf16 %v802_v15, %v801_v14  ;;  %v798_v21 = vld [vmem:[%s5392_s24 + $0x18] sm:$0xff]  ;;  %v803_v23 = vld [vmem:[%s5392_s24 + $0x40] sm:$0xff]  ;;  %s4937_s11 = smov 104   ;;  %vm2458_vm5 = vcmask 1045504   ;;  %vm2430_vm6 = vcmask 97280  }
 0x138   : > { %4078 = vmatpush3.bf16.msra.mxu1 %v900_v12  ;;  %v848_v22 = vpack.c.bf16 %v798_v21, %v797_v17  ;;  %v804_v24 = vld [vmem:[%s5392_s24 + $0x48] sm:$0xff]  ;;  %v805_v27 = vld [vmem:[%s5392_s24 + $0x50] sm:$0xff]  ;;  %v806_v28 = vld [vmem:[%s5392_s24 + $0x58] sm:$0xff]  ;;  %s6051_s29 = sld [smem:[#allocation32_spill]]  ;;  %vm3532_vm7 = vcmask 523264   ;;  %p4454_p13 = scmp.eq.s32.totalorder %s5035_s17, 1 }
 0x139   : > { %v5433_v19 = vld [vmem:[#allocation15] sm:$0xff]  ;;  %4079 = vmatprep.subr.bf16.mxu1 %v4933_v11  ;;  %4070 = vmatpush3.bf16.msra.mxu0 %v847_v16  ;;  %v949_v26 = vpack.c.bf16 %v804_v24, %v803_v23  ;;  %v950_v29 = vpack.c.bf16 %v806_v28, %v805_v27  ;;  %v3889_v30 = vld [vmem:[%s5372_s5 + $0x1] ss:$0 sm:$0xff]  ;;  %v3887_v31 = vld [vmem:[%s5372_s5] ss:$0 sm:$0xff] }
 0x13a   : > { %v5435_v20 = vld [vmem:[#allocation15 + $0x8] sm:$0xff]  ;;  %4071 = vmatprep.subr.bf16.mxu0 %v4933_v11  ;;  %v3891_v56 = vld [vmem:[%s5372_s5 + $0x2] ss:$0 sm:$0xff]  ;;  %v5496_v63 = vld [vmem:[#allocation8] sm:$0xff]  ;;  %s4936_s5 = smov 112  }
 0x13b   : > { %v846_v25 = vpack.c.bf16 %v5435_v20, %v5433_v19 }
 0x13c   : > { %4080 = vmatpush3.bf16.msra.mxu1 %v901_v18 }
 0x13d   : > { %4072 = vmatpush3.bf16.msra.mxu0 %v848_v22  ;;  %4093 = vmatprep.subr.bf16.mxu1 %v4933_v11 }
 0x13e   : > { %4085 = vmatprep.subr.bf16.mxu0 %v4933_v11  ;;  %s6052_s20 = scalar_lea.vmem %s6051_s29, %s5380_s8  ;;  %s4938_s8 = smov [#allocation15]  }
 0x13f   : > { %4082 = vmatmul.mubr.msk.bf16.vlgmr.msra.gmra.mrb[0].mxu1 %vm855_vm2, %v846_v25  ;;  %s3629_s24 = sshll.u32 %s4938_s8, 4  ;;  %s3630_s24 = int_to_ptr.vmem [resolvable:$true] %s3629_s24 }
 0x140   : > { %4074 = vmatmul.mubr.msk.bf16.vlgmr.msra.gmra.mrb[0].mxu0 %vm855_vm2, %v846_v25  ;;  %4095 = vmatprep.mubr.msk.bf16.mxu1 %vm4934_vm1, %v4933_v11  ;;  %s4842_s21 = scalar_lea.vmem %s3630_s24, 256  ;;  %p4849_p0 = scmp.lt.s32.totalorder %s3630_s24, %s3630_s24 }
 0x141   : > { %4086 = vmatpush3.bf16.msra.mxu0 %v949_v26  ;;  %4089 = vmatprep.mubr.msk.bf16.mxu0 %vm4934_vm1, %v4933_v11  ;;  %p4843_p1 = scmp.ne.s32.totalorder %s3630_s24, %s4842_s21  ;;  %p4850_p4 = scmp.lt.s32.totalorder %s4842_s21, %s4842_s21 }
 0x142   : > { %4087 = vmatprep.subr.bf16.mxu0 %v4933_v11 }
 0x143   : > { %p4844_p6 = pnand %p4843_p1, %p4454_p13  ;;  %p4851_p2 = por %p4850_p4, %p4849_p0 }
 0x145   : > { %4088 = vmatpush3.bf16.msra.mxu0 %v950_v29  ;;  %p4845_p7 = pneg %p4844_p6 }
 0x146   : > { %4099 = vmatprep.subr.bf16.mxu0 %v4933_v11 }
 0x147   : > { %p4852_p5 = pnand %p4851_p2, %p4845_p7 }
 0x148   : > { %4090 = vmatmul.mubr.msk.bf16.vlgmr.msra.gmra.mrb[4].mxu0 %vm855_vm2, %v846_v25 }
 0x149   : > { %4101 = vmatprep.mubr.msk.bf16.mxu0 %vm4934_vm1, %v4933_v11 }
 0x212   : > { %v942_v32 = vpop.f32.mrb[0].mxu1 }
 0x213   : > { %v943_v33 = vadd.f32 %v3889_v30, %v942_v32  ;;  %v4083_v34 = vpop.f32.mrb[1].mxu1  ;;  %v893_v35 = vpop.f32.mrb[0].mxu0 }
 0x214   : > { %v945_v36 = vpop.f32.mrb[2].mxu1  ;;  %v894_v37 = vadd.f32 %v3887_v31, %v893_v35  ;;  %v4075_v38 = vpop.f32.mrb[1].mxu0 }
 0x215   : > { %v5461_v39 = vpack.c.bf16 %v943_v33, %v943_v33  ;;  %v946_v40 = vadd.f32 %v3889_v30, %v945_v36  ;;  %v4084_v41 = vpop.f32.mrb[3].mxu1  ;;  %v896_v42 = vpop.f32.mrb[2].mxu0 }
 0x216   : > { %v4076_v43 = vpop.f32.mrb[3].mxu0  ;;  %v998_v45 = vmul.f32 0.35355338, %v894_v37  ;;  %v897_v46 = vadd.f32 %v3887_v31, %v896_v42 }
 0x217   : > { %v5463_v44 = vpack.c.bf16 %v946_v40, %v946_v40  ;;  %v1011_v47 = vsel %vm1006_vm3, %v5461_v39, 0 }
 0x218   : > { %4094 = vmatpush3.bf16.xpose.msra.mxu1 %v1011_v47  ;;  %v5472_v49 = vpack.c.bf16 %v998_v45, %v998_v45  ;;  %v999_v50 = vmul.f32 0.35355338, %v897_v46 }
 0x219   : > { %1274 = vrot.lane.b32.xlu1 %v5463_v44, %s4935_s30  ;;  %v1057_v48 = vsel %vm1006_vm3, %v5463_v44, 0  ;;  %4105 = vmatprep.subr.bf16.mxu1 %v4933_v11 }
 0x21a   : > { %4100 = vmatpush3.bf16.xpose.msra.mxu0 %v1057_v48  ;;  %v5475_v55 = vpack.c.bf16 %v999_v50, %v999_v50 }
 0x21b   : > { %v991_v51 = vpop.f32.mrb[4].mxu0  ;;  %4111 = vmatprep.subr.bf16.mxu0 %v4933_v11 }
 0x21c   : > { %v4091_v52 = vpop.f32.mrb[5].mxu0  ;;  %v992_v57 = vadd.f32 %v3891_v56, %v991_v51 }
 0x21d   : > { %v994_v53 = vpop.f32.mrb[6].mxu0 }
 0x21e   : > { %v4092_v54 = vpop.f32.mrb[7].mxu0  ;;  %v995_v58 = vadd.f32 %v3891_v56, %v994_v53  ;;  %v5486_v59 = vpack.c.bf16 %v992_v57, %v992_v57 }
 0x21f   : > { %4096 = vmatmul.mubr.msk.bf16.vlgmr.msra.gmra.mrb[4].mxu1 %vm1006_vm3, %v5472_v49 }
 0x220   : > { %4107 = vmatprep.mubr.msk.bf16.mxu1 %vm4934_vm1, %v4933_v11  ;;  %v5488_v60 = vpack.c.bf16 %v995_v58, %v995_v58  ;;  %v1128_v61 = vsel %vm1126_vm4, %v5486_v59, 0 }
 0x221   : > { %4102 = vmatmul.mubr.msk.bf16.vlgmr.msra.gmra.mrb[8].mxu0 %vm1006_vm3, %v5475_v55  ;;  %4106 = vmatpush3.bf16.msra.mxu1 %v1128_v61 }
 0x222   : > { %4113 = vmatprep.mubr.msk.bf16.mxu0 %vm4934_vm1, %v4933_v11  ;;  %v1174_v62 = vsel %vm1126_vm4, %v5488_v60, 0  ;;  %4117 = vmatprep.subr.bf16.mxu1 %v4933_v11 }
 0x223   : > { %4112 = vmatpush3.bf16.msra.mxu0 %v1174_v62 }
 0x224   : > { %4123 = vmatprep.subr.bf16.mxu0 %v4933_v11 }
 0x28b   : > { %v1275_v25 = vpop.permute.xlu1 %1274 }
 0x28c   : > { %v1280_v36 = vsel %vm1006_vm3, %v1275_v25, 0  ;;  %v810_v25 = vld [vmem:[%s5410_s1] sm:$0xff] }
 0x2f2   : > { %v1047_v0 = vpop.f32.mrb[4].mxu1 }
 0x2f3   : > { %v1048_v1 = vadd.f32 %v1047_v0, %v5496_v63  ;;  %v4097_v2 = vpop.f32.mrb[5].mxu1 }
 0x2f4   : > { %v1050_v3 = vpop.f32.mrb[6].mxu1  ;;  %v1093_v4 = vpop.f32.mrb[8].mxu0 }
 0x2f5   : > { %v1094_v5 = vadd.f32 %v1093_v4, %v5496_v63  ;;  %v4098_v6 = vpop.f32.mrb[7].mxu1  ;;  %v4103_v7 = vpop.f32.mrb[9].mxu0  ;;  %v1099_v8 = vsel %vm1006_vm3, %v1048_v1, -inf }
 0x2f6   : > { %1100 = vmax.xlane.f32.xlu0 %v1099_v8  ;;  %v1096_v9 = vpop.f32.mrb[10].mxu0 }
 0x2f7   : > { %v4104_v10 = vpop.f32.mrb[11].mxu0  ;;  %v1102_v12 = vsel %vm1006_vm3, %v1094_v5, -inf }
 0x2fa   : > { %1103 = vmax.xlane.f32.xlu0 %v1102_v12 }
 0x310   : > { %1222 = vrot.lane.b32.xlu0 %v5461_v39, %s4935_s30 }
 0x383   : > { %v1101_v13 = vpop.xlane.xlu0 %1100 }
 0x384   : > { %v1105_v14 = vsub.f32 %v1048_v1, %v1101_v13 }
 0x386   : > { %v1107_v15 = vmul.f32 1.442695, %v1105_v14 }
 0x387   : > { %v1104_v16 = vpop.xlane.xlu0 %1103 }
 0x388   : > { %4504 = vpow2.f32 %v1107_v15  ;;  %v1106_v17 = vsub.f32 %v1094_v5, %v1104_v16 }
 0x38a   : > { %v1109_v18 = vmul.f32 1.442695, %v1106_v17 }
 0x38b   : > { %v1223_v30 = vpop.permute.xlu0 %1222 }
 0x38c   : > { %4506 = vpow2.f32 %v1109_v18  ;;  %v1228_v33 = vsel %vm1006_vm3, %v1223_v30, 0  ;;  %v811_v18 = vld [vmem:[%s5410_s1 + $0x8] sm:$0xff] }
 0x392   : > { %v4505_v21 = vpop.eup %4504 }
 0x393   : > { %v1111_v22 = vsel %vm1006_vm3, %v4505_v21, 0.0 }
 0x394   : > { %1112 = vadd.xlane.f32.xlu1 %v1111_v22 }
 0x396   : > { %v4507_v23 = vpop.eup %4506 }
 0x397   : > { %v1114_v24 = vsel %vm1006_vm3, %v4507_v23, 0.0 }
 0x398   : > { %1115 = vadd.xlane.f32.xlu1 %v1114_v24 }
 0x3a9   : > { %1219 = vrot.lane.b32.xlu1 %v5472_v49, %s4935_s30 }
 0x3ad   : > { %1271 = vrot.lane.b32.xlu1 %v5475_v55, %s4935_s30 }
 0x421   : > { %v1113_v26 = vpop.xlane.xlu1 %1112 }
 0x422   : > { %4508 = vrcp.f32 %v1113_v26 }
 0x425   : > { %v1116_v27 = vpop.xlane.xlu1 %1115 }
 0x426   : > { %4510 = vrcp.f32 %v1116_v27 }
 0x429   : > { %v1220_v37 = vpop.permute.xlu1 %1219 }
 0x42c   : > { %v4509_v28 = vpop.eup %4508 }
 0x42d   : > { %v1118_v29 = vmul.f32 %v4509_v28, %v4505_v21  ;;  %v1272_v38 = vpop.permute.xlu1 %1271  ;;  %v1217_v28 = vpack.c.bf16 %v810_v25, %v810_v25 }
 0x42f   : > { %v1121_v31 = vpack.c.bf16 %v1118_v29, %v1118_v29 }
 0x430   : > { %v4511_v32 = vpop.eup %4510 }
 0x431   : > { %v1120_v34 = vmul.f32 %v4511_v32, %v4507_v23  ;;  %4108 = vmatmul.mubr.msk.bf16.vlgmr.msra.gmra.mrb[8].mxu1 %vm1006_vm3, %v1121_v31  ;;  %v1445_v23 = vpack.c.bf16 %v811_v18, %v811_v18 }
 0x432   : > { %4118 = vmatpush3.bf16.xpose.msra.mxu1 %v1228_v33  ;;  %4119 = vmatprep.mubr.msk.bf16.mxu1 %vm4934_vm1, %v4933_v11  ;;  %v1497_v33 = vsel %vm1126_vm4, %v1217_v28, 0 }
 0x433   : > { %v1122_v35 = vpack.c.bf16 %v1120_v34, %v1120_v34  ;;  %4129 = vmatprep.subr.bf16.mxu1 %v4933_v11  ;;  %v1450_v29 = vsel %vm1126_vm4, %v1445_v23, 0 }
 0x435   : > { %4114 = vmatmul.mubr.msk.bf16.vlgmr.msra.gmra.mrb[12].mxu0 %vm1006_vm3, %v1122_v35 }
 0x436   : > { %4124 = vmatpush3.bf16.xpose.msra.mxu0 %v1280_v36  ;;  %4125 = vmatprep.mubr.msk.bf16.mxu0 %vm4934_vm1, %v4933_v11 }
 0x437   : > { %4135 = vmatprep.subr.bf16.mxu0 %v4933_v11 }
 0x439   : > { %4120 = vmatmul.mubr.msk.bf16.vlgmr.msra.gmra.mrb[12].mxu1 %vm1006_vm3, %v1220_v37 }
 0x43a   : > { %4131 = vmatprep.mubr.msk.bf16.mxu1 %vm4934_vm1, %v4933_v11 }
 0x43d   : > { %4126 = vmatmul.mubr.msk.bf16.vlgmr.msra.gmra.mrb[16].mxu0 %vm1006_vm3, %v1272_v38 }
 0x43e   : > { %4137 = vmatprep.mubr.msk.bf16.mxu0 %vm4934_vm1, %v4933_v11 }
 0x504   : > { %v5526_v40 = vpop.f32.mrb[8].mxu1 }
 0x505   : > { %v4109_v41 = vpop.f32.mrb[9].mxu1 }
 0x506   : > { %v1167_v42 = vpop.f32.mrb[10].mxu1 }
 0x507   : > { %v4110_v43 = vpop.f32.mrb[11].mxu1 }
 0x508   : > { %v5528_v45 = vpop.f32.mrb[12].mxu0 }
 0x509   : > { %v1216_v46 = vpack.c.bf16 %v5528_v45, %v5526_v40  ;;  %v4115_v47 = vpop.f32.mrb[13].mxu0 }
 0x50a   : > { %v1213_v48 = vpop.f32.mrb[14].mxu0 }
 0x50b   : > { %v4116_v50 = vpop.f32.mrb[15].mxu0 }
 0x50c   : > { %v1264_v51 = vpop.f32.mrb[12].mxu1 }
 0x50d   : > { %v1265_v52 = vadd.f32 %v1264_v51, %v5496_v63  ;;  %v4121_v53 = vpop.f32.mrb[13].mxu1 }
 0x50e   : > { %v1267_v54 = vpop.f32.mrb[14].mxu1 }
 0x50f   : > { %v4122_v56 = vpop.f32.mrb[15].mxu1  ;;  %v1322_v57 = vsel %vm1006_vm3, %v1265_v52, -inf }
 0x510   : > { %1323 = vmax.xlane.f32.xlu0 %v1322_v57  ;;  %v1316_v58 = vpop.f32.mrb[16].mxu0 }
 0x511   : > { %v1317_v61 = vadd.f32 %v1316_v58, %v5496_v63  ;;  %v4127_v62 = vpop.f32.mrb[17].mxu0 }
 0x512   : > { %v1319_v0 = vpop.f32.mrb[18].mxu0 }
 0x513   : > { %v4128_v1 = vpop.f32.mrb[19].mxu0  ;;  %v1325_v2 = vsel %vm1006_vm3, %v1317_v61, -inf }
 0x514   : > { %1326 = vmax.xlane.f32.xlu1 %v1325_v2 }
 0x525   : > { %1396 = vrot.lane.b32.xlu1 %v5488_v60, %s4935_s30 }
 0x529   : > { %1542 = vrot.lane.b32.xlu1 %v5461_v39, %s4936_s5 }
 0x52d   : > { %1592 = vrot.lane.b32.xlu1 %v5463_v44, %s4936_s5 }
 0x531   : > { %1590 = vrot.lane.b32.xlu1 %v5475_v55, %s4936_s5 }
 0x59d   : > { %v1324_v3 = vpop.xlane.xlu0 %1323 }
 0x59e   : > { %v1328_v4 = vsub.f32 %v1265_v52, %v1324_v3 }
 0x5a0   : > { %v1330_v5 = vmul.f32 1.442695, %v1328_v4 }
 0x5a1   : > { %v1327_v6 = vpop.xlane.xlu1 %1326 }
 0x5a2   : > { %4512 = vpow2.f32 %v1330_v5  ;;  %v1329_v7 = vsub.f32 %v1317_v61, %v1327_v6 }
 0x5a4   : > { %v1332_v8 = vmul.f32 1.442695, %v1329_v7 }
 0x5a5   : > { %v1397_v9 = vpop.permute.xlu1 %1396 }
 0x5a6   : > { %4514 = vpow2.f32 %v1332_v8  ;;  %v1402_v10 = vsel %vm1126_vm4, %v1397_v9, 0 }
 0x5a7   : > { %4136 = vmatpush3.bf16.msra.mxu0 %v1402_v10 }
 0x5a8   : > { %4147 = vmatprep.subr.bf16.mxu0 %v4933_v11 }
 0x5a9   : > { %v1543_v34 = vpop.permute.xlu1 %1542 }
 0x5aa   : > { %v1548_v48 = vsel %vm1006_vm3, %v1543_v34, 0 }
 0x5ac   : > { %v4513_v12 = vpop.eup %4512 }
 0x5ad   : > { %v1334_v13 = vsel %vm1006_vm3, %v4513_v12, 0.0  ;;  %v1593_v35 = vpop.permute.xlu1 %1592 }
 0x5ae   : > { %1335 = vadd.xlane.f32.xlu0 %v1334_v13  ;;  %v1598_v36 = vsel %vm1006_vm3, %v1593_v35, 0 }
 0x5b0   : > { %v4515_v14 = vpop.eup %4514 }
 0x5b1   : > { %v1337_v15 = vsel %vm1006_vm3, %v4515_v14, 0.0  ;;  %v1591_v37 = vpop.permute.xlu1 %1590 }
 0x5b2   : > { %1338 = vadd.xlane.f32.xlu0 %v1337_v15 }
 0x5c8   : > { %1347 = vrot.lane.b32.xlu0 %v5486_v59, %s4935_s30 }
 0x5cc   : > { %1540 = vrot.lane.b32.xlu0 %v5472_v49, %s4936_s5 }
 0x63b   : > { %v1336_v16 = vpop.xlane.xlu0 %1335 }
 0x63c   : > { %4516 = vrcp.f32 %v1336_v16 }
 0x63f   : > { %v1339_v17 = vpop.xlane.xlu0 %1338 }
 0x640   : > { %4518 = vrcp.f32 %v1339_v17 }
 0x643   : > { %v1348_v21 = vpop.permute.xlu0 %1347 }
 0x644   : > { %v1353_v22 = vsel %vm1126_vm4, %v1348_v21, 0 }
 0x645   : > { %4130 = vmatpush3.bf16.msra.mxu1 %v1353_v22 }
 0x646   : > { %v4517_v24 = vpop.eup %4516  ;;  %4141 = vmatprep.subr.bf16.mxu1 %v4933_v11 }
 0x647   : > { %v1341_v26 = vmul.f32 %v4517_v24, %v4513_v12  ;;  %v1541_v53 = vpop.permute.xlu0 %1540 }
 0x649   : > { %v1344_v27 = vpack.c.bf16 %v1341_v26, %v1341_v26 }
 0x64a   : > { %v4519_v30 = vpop.eup %4518 }
 0x64b   : > { %v1343_v31 = vmul.f32 %v4519_v30, %v4515_v14  ;;  %4132 = vmatmul.mubr.msk.bf16.vlgmr.msra.gmra.mrb[16].mxu1 %vm1006_vm3, %v1344_v27 }
 0x64c   : > { %4142 = vmatpush3.bf16.msra.mxu1 %v1450_v29  ;;  %4143 = vmatprep.mubr.msk.bf16.mxu1 %vm4934_vm1, %v4933_v11 }
 0x64d   : > { %v1345_v32 = vpack.c.bf16 %v1343_v31, %v1343_v31  ;;  %4153 = vmatprep.subr.bf16.mxu1 %v4933_v11 }
 0x64f   : > { %4138 = vmatmul.mubr.msk.bf16.vlgmr.msra.gmra.mrb[20].mxu0 %vm1006_vm3, %v1345_v32 }
 0x650   : > { %4148 = vmatpush3.bf16.msra.mxu0 %v1497_v33  ;;  %4149 = vmatprep.mubr.msk.bf16.mxu0 %vm4934_vm1, %v4933_v11 }
 0x651   : > { %4159 = vmatprep.subr.bf16.mxu0 %v4933_v11 }
 0x657   : > { %4150 = vmatmul.mubr.msk.bf16.vlgmr.msra.gmra.mrb[24].mxu0 %vm1006_vm3, %v1216_v46 }
 0x658   : > { %4161 = vmatprep.mubr.msk.bf16.mxu0 %vm4934_vm1, %v4933_v11 }
 0x659   : > { %4160 = vmatpush3.bf16.xpose.msra.mxu0 %v1598_v36 }
 0x65a   : > { %4171 = vmatprep.subr.bf16.mxu0 %v4933_v11 }
 0x660   : > { %4162 = vmatmul.mubr.msk.bf16.vlgmr.msra.gmra.mrb[28].mxu0 %vm1006_vm3, %v1591_v37 }
 0x661   : > { %4173 = vmatprep.mubr.msk.bf16.mxu0 %vm4934_vm1, %v4933_v11 }
 0x71e   : > { %v1389_v38 = vpop.f32.mrb[16].mxu1 }
 0x71f   : > { %v4133_v41 = vpop.f32.mrb[17].mxu1 }
 0x720   : > { %v1392_v42 = vpop.f32.mrb[18].mxu1 }
 0x721   : > { %v4134_v40 = vpop.f32.mrb[19].mxu1 }
 0x722   : > { %v1438_v43 = vpop.f32.mrb[20].mxu0 }
 0x723   : > { %v1444_v45 = vpack.c.bf16 %v1438_v43, %v1389_v38  ;;  %v4139_v46 = vpop.f32.mrb[21].mxu0  ;;  %v812_v43 = vld [vmem:[%s5410_s1 + $0x10] sm:$0xff] }
 0x724   : > { %v1441_v47 = vpop.f32.mrb[22].mxu0 }
 0x725   : > { %v4140_v50 = vpop.f32.mrb[23].mxu0  ;;  %4144 = vmatmul.mubr.msk.bf16.vlgmr.msra.gmra.mrb[20].mxu1 %vm1006_vm3, %v1444_v45  ;;  %v1761_v45 = vpack.c.bf16 %v812_v43, %v812_v43 }
 0x726   : > { %4154 = vmatpush3.bf16.xpose.msra.mxu1 %v1548_v48  ;;  %4155 = vmatprep.mubr.msk.bf16.mxu1 %vm4934_vm1, %v4933_v11 }
 0x727   : > { %4165 = vmatprep.subr.bf16.mxu1 %v4933_v11  ;;  %v1766_v46 = vsel %vm1126_vm4, %v1761_v45, 0 }
 0x72a   : > { %v1533_v51 = vpop.f32.mrb[24].mxu0 }
 0x72b   : > { %v4151_v52 = vpop.f32.mrb[25].mxu0 }
 0x72c   : > { %v1536_v54 = vpop.f32.mrb[26].mxu0 }
 0x72d   : > { %v4152_v56 = vpop.f32.mrb[27].mxu0  ;;  %4156 = vmatmul.mubr.msk.bf16.vlgmr.msra.gmra.mrb[24].mxu1 %vm1006_vm3, %v1541_v53 }
 0x72e   : > { %4167 = vmatprep.mubr.msk.bf16.mxu1 %vm4934_vm1, %v4933_v11 }
 0x733   : > { %v1634_v57 = vpop.f32.mrb[28].mxu0 }
 0x734   : > { %v1635_v58 = vadd.f32 %v1634_v57, %v5496_v63  ;;  %v4163_v61 = vpop.f32.mrb[29].mxu0 }
 0x735   : > { %v1637_v62 = vpop.f32.mrb[30].mxu0 }
 0x736   : > { %v4164_v0 = vpop.f32.mrb[31].mxu0  ;;  %v1643_v1 = vsel %vm1006_vm3, %v1635_v58, -inf }
 0x737   : > { %1644 = vmax.xlane.f32.xlu1 %v1643_v1 }
 0x748   : > { %1712 = vrot.lane.b32.xlu1 %v5488_v60, %s4936_s5 }
 0x74c   : > { %1813 = vrot.lane.b32.xlu1 %v5461_v39, %s4937_s11 }
 0x750   : > { %1863 = vrot.lane.b32.xlu1 %v5463_v44, %s4937_s11 }
 0x754   : > { %1861 = vrot.lane.b32.xlu1 %v5475_v55, %s4937_s11 }
 0x7c4   : > { %v1645_v2 = vpop.xlane.xlu1 %1644 }
 0x7c5   : > { %v1647_v5 = vsub.f32 %v1635_v58, %v1645_v2 }
 0x7c7   : > { %v1650_v6 = vmul.f32 1.442695, %v1647_v5 }
 0x7c8   : > { %v1713_v3 = vpop.permute.xlu1 %1712 }
 0x7c9   : > { %v1718_v4 = vsel %vm1126_vm4, %v1713_v3, 0  ;;  %4520 = vpow2.f32 %v1650_v6 }
 0x7ca   : > { %4172 = vmatpush3.bf16.msra.mxu0 %v1718_v4 }
 0x7cb   : > { %4183 = vmatprep.subr.bf16.mxu0 %v4933_v11 }
 0x7cc   : > { %v1814_v29 = vpop.permute.xlu1 %1813 }
 0x7cd   : > { %v1819_v31 = vsel %vm1006_vm3, %v1814_v29, 0 }
 0x7d3   : > { %v4521_v17 = vpop.eup %4520 }
 0x7d4   : > { %v1655_v18 = vsel %vm1006_vm3, %v4521_v17, 0.0 }
 0x7f8   : > { %v1486_v7 = vpop.f32.mrb[20].mxu1 }
 0x7f9   : > { %v5597_v8 = vadd.f32 %v1533_v51, %v1486_v7  ;;  %v4145_v9 = vpop.f32.mrb[21].mxu1 }
 0x7fa   : > { %v1489_v39 = vpop.f32.mrb[22].mxu1 }
 0x7fb   : > { %v5599_v10 = vadd.f32 %v1536_v54, %v1489_v39  ;;  %v4146_v44 = vpop.f32.mrb[23].mxu1  ;;  %v1864_v54 = vpop.permute.xlu1 %1863 }
 0x7fc   : > { %v1869_v62 = vsel %vm1006_vm3, %v1864_v54, 0 }
 0x7ff   : > { %v1862_v1 = vpop.permute.xlu1 %1861 }
 0x800   : > { %v1584_v12 = vpop.f32.mrb[24].mxu1 }
 0x801   : > { %v1585_v55 = vadd.f32 %v1584_v12, %v5496_v63  ;;  %v4157_v13 = vpop.f32.mrb[25].mxu1 }
 0x802   : > { %v1587_v14 = vpop.f32.mrb[26].mxu1 }
 0x803   : > { %v4158_v15 = vpop.f32.mrb[27].mxu1  ;;  %v1640_v16 = vsel %vm1006_vm3, %v1585_v55, -inf }
 0x804   : > { %1641 = vmax.xlane.f32.xlu0 %v1640_v16 }
 0x808   : > { %1656 = vadd.xlane.f32.xlu0 %v1655_v18 }
 0x891   : > { %v1642_v21 = vpop.xlane.xlu0 %1641 }
 0x892   : > { %v1646_v22 = vsub.f32 %v1585_v55, %v1642_v21 }
 0x894   : > { %v1648_v23 = vmul.f32 1.442695, %v1646_v22 }
 0x895   : > { %v1657_v24 = vpop.xlane.xlu0 %1656 }
 0x896   : > { %4522 = vpow2.f32 %v1648_v23 }
 0x897   : > { %4524 = vrcp.f32 %v1657_v24 }
 0x8a0   : > { %v4523_v25 = vpop.eup %4522 }
 0x8a1   : > { %v4525_v26 = vpop.eup %4524  ;;  %v1652_v27 = vsel %vm1006_vm3, %v4523_v25, 0.0 }
 0x8a2   : > { %v1661_v28 = vmul.f32 %v4525_v26, %v4521_v17  ;;  %1653 = vadd.xlane.f32.xlu0 %v1652_v27 }
 0x8a4   : > { %v1663_v30 = vpack.c.bf16 %v1661_v28, %v1661_v28 }
 0x8a6   : > { %4174 = vmatmul.mubr.msk.bf16.vlgmr.msra.gmra.mrb[32].mxu0 %vm1006_vm3, %v1663_v30 }
 0x8a7   : > { %4184 = vmatpush3.bf16.xpose.msra.mxu0 %v1819_v31  ;;  %4185 = vmatprep.mubr.msk.bf16.mxu0 %vm4934_vm1, %v4933_v11 }
 0x8a8   : > { %4195 = vmatprep.subr.bf16.mxu0 %v4933_v11 }
 0x8b8   : > { %1664 = vrot.lane.b32.xlu0 %v5486_v59, %s4936_s5 }
 0x8bc   : > { %1811 = vrot.lane.b32.xlu0 %v5472_v49, %s4937_s11 }
 0x92f   : > { %v1654_v32 = vpop.xlane.xlu0 %1653 }
 0x930   : > { %4526 = vrcp.f32 %v1654_v32 }
 0x933   : > { %v1665_v33 = vpop.permute.xlu0 %1664 }
 0x934   : > { %v1670_v34 = vsel %vm1126_vm4, %v1665_v33, 0  ;;  %v813_v33 = vld [vmem:[%s5410_s1 + $0x18] sm:$0xff] }
 0x935   : > { %4166 = vmatpush3.bf16.msra.mxu1 %v1670_v34  ;;  %v2032_v34 = vpack.c.bf16 %v813_v33, %v813_v33 }
 0x936   : > { %4177 = vmatprep.subr.bf16.mxu1 %v4933_v11 }
 0x937   : > { %v1812_v35 = vpop.permute.xlu0 %1811 }
 0x938   : > { %4186 = vmatmul.mubr.msk.bf16.vlgmr.msra.gmra.mrb[36].mxu0 %vm1006_vm3, %v1812_v35  ;;  %v2037_v35 = vsel %vm1126_vm4, %v2032_v34, 0 }
 0x939   : > { %4197 = vmatprep.mubr.msk.bf16.mxu0 %vm4934_vm1, %v4933_v11 }
 0x93a   : > { %v4527_v36 = vpop.eup %4526 }
 0x93b   : > { %v1659_v37 = vmul.f32 %v4527_v36, %v4523_v25 }
 0x93d   : > { %v1662_v38 = vpack.c.bf16 %v1659_v37, %v1659_v37 }
 0x93f   : > { %4168 = vmatmul.mubr.msk.bf16.vlgmr.msra.gmra.mrb[28].mxu1 %vm1006_vm3, %v1662_v38 }
 0x940   : > { %4179 = vmatprep.mubr.msk.bf16.mxu1 %vm4934_vm1, %v4933_v11  ;;  %4178 = vmatpush3.bf16.msra.mxu1 %v1766_v46  ;;  %v3913_v46 = vld [vmem:[%s5408_s22] ss:$0 sm:$0xff] }
 0x941   : > { %4189 = vmatprep.subr.bf16.mxu1 %v4933_v11 }
 0x979   : > { %v1754_v49 = vpop.f32.mrb[32].mxu0 }
 0x97a   : > { %v4175_v41 = vpop.f32.mrb[33].mxu0 }
 0x97b   : > { %v1757_v42 = vpop.f32.mrb[34].mxu0 }
 0x97c   : > { %v4176_v40 = vpop.f32.mrb[35].mxu0 }
 0xa0b   : > { %v1855_v47 = vpop.f32.mrb[36].mxu0 }
 0xa0c   : > { %v1856_v48 = vadd.f32 %v1855_v47, %v5496_v63  ;;  %v4187_v50 = vpop.f32.mrb[37].mxu0 }
 0xa0d   : > { %v1858_v51 = vpop.f32.mrb[38].mxu0 }
 0xa0e   : > { %v4188_v52 = vpop.f32.mrb[39].mxu0  ;;  %v1911_v53 = vsel %vm1006_vm3, %v1856_v48, -inf }
 0xa0f   : > { %1912 = vmax.xlane.f32.xlu0 %v1911_v53 }
 0xa12   : > { %v1706_v56 = vpop.f32.mrb[28].mxu1 }
 0xa13   : > { %v1760_v57 = vpack.c.bf16 %v1754_v49, %v1706_v56  ;;  %v4169_v58 = vpop.f32.mrb[29].mxu1 }
 0xa14   : > { %v1709_v61 = vpop.f32.mrb[30].mxu1 }
 0xa15   : > { %v4170_v0 = vpop.f32.mrb[31].mxu1  ;;  %4180 = vmatmul.mubr.msk.bf16.vlgmr.msra.gmra.mrb[32].mxu1 %vm1006_vm3, %v1760_v57 }
 0xa16   : > { %4190 = vmatpush3.bf16.xpose.msra.mxu1 %v1869_v62  ;;  %4191 = vmatprep.mubr.msk.bf16.mxu1 %vm4934_vm1, %v4933_v11 }
 0xa17   : > { %4201 = vmatprep.subr.bf16.mxu1 %v4933_v11 }
 0xa1d   : > { %4192 = vmatmul.mubr.msk.bf16.vlgmr.msra.gmra.mrb[36].mxu1 %vm1006_vm3, %v1862_v1 }
 0xa1e   : > { %4203 = vmatprep.mubr.msk.bf16.mxu1 %vm4934_vm1, %v4933_v11 }
 0xa9c   : > { %v1913_v2 = vpop.xlane.xlu0 %1912 }
 0xa9d   : > { %v1917_v3 = vsub.f32 %v1856_v48, %v1913_v2 }
 0xa9f   : > { %v1919_v4 = vmul.f32 1.442695, %v1917_v3 }
 0xaa1   : > { %4528 = vpow2.f32 %v1919_v4 }
 0xaab   : > { %v4529_v5 = vpop.eup %4528 }
 0xaac   : > { %v1923_v6 = vsel %vm1006_vm3, %v4529_v5, 0.0 }
 0xaad   : > { %1924 = vadd.xlane.f32.xlu0 %v1923_v6 }
 0xae8   : > { %v1802_v7 = vpop.f32.mrb[32].mxu1 }
 0xae9   : > { %v1809_v9 = vadd.f32 %v1802_v7, %v5597_v8  ;;  %v4181_v39 = vpop.f32.mrb[33].mxu1 }
 0xaea   : > { %v1805_v44 = vpop.f32.mrb[34].mxu1  ;;  %v819_v39 = vld [vmem:[%s5412_s23 + $0x28] sm:$0xff] }
 0xaeb   : > { %v1810_v12 = vadd.f32 %v1805_v44, %v5599_v10  ;;  %v4182_v55 = vpop.f32.mrb[35].mxu1 }
 0xaec   : > { %v821_v55 = vld [vmem:[%s5412_s23 + $0x38] sm:$0xff] }
 0xaf0   : > { %v1905_v13 = vpop.f32.mrb[36].mxu1 }
 0xaf1   : > { %v1906_v14 = vadd.f32 %v1905_v13, %v5496_v63  ;;  %v4193_v15 = vpop.f32.mrb[37].mxu1 }
 0xaf2   : > { %v1908_v16 = vpop.f32.mrb[38].mxu1  ;;  %v783_v15 = vld [vmem:[#allocation7 + $0x8] sm:$0xff] }
 0xaf3   : > { %v4194_v17 = vpop.f32.mrb[39].mxu1  ;;  %v1914_v18 = vsel %vm1006_vm3, %v1906_v14, -inf }
 0xaf4   : > { %1915 = vmax.xlane.f32.xlu1 %v1914_v18  ;;  %v784_v17 = vld [vmem:[#allocation7 + $0x10] sm:$0xff] }
 0xaf5   : > { %v2137_v18 = vpack.c.bf16 %v784_v17, %v784_v17 }
 0xb05   : > { %1983 = vrot.lane.b32.xlu1 %v5488_v60, %s4937_s11 }
 0xb3a   : > { %v1925_v25 = vpop.xlane.xlu0 %1924 }
 0xb81   : > { %v1916_v21 = vpop.xlane.xlu1 %1915 }
 0xb82   : > { %v1918_v22 = vsub.f32 %v1906_v14, %v1916_v21  ;;  %v782_v14 = vld [vmem:[#allocation7] sm:$0xff] }
 0xb83   : > { %v2136_v16 = vpack.c.bf16 %v783_v15, %v782_v14  ;;  %v814_v21 = vld [vmem:[%s5412_s23] sm:$0xff] }
 0xb84   : > { %v1921_v8 = vmul.f32 1.442695, %v1918_v22  ;;  %v815_v22 = vld [vmem:[%s5412_s23 + $0x8] sm:$0xff] }
 0xb85   : > { %v1984_v23 = vpop.permute.xlu1 %1983 }
 0xb86   : > { %4530 = vpow2.f32 %v1921_v8  ;;  %v1989_v10 = vsel %vm1126_vm4, %v1984_v23, 0  ;;  %v2138_v8 = vpack.c.bf16 %v815_v22, %v814_v21  ;;  %v816_v23 = vld [vmem:[%s5412_s23 + $0x10] sm:$0xff] }
 0xb87   : > { %4202 = vmatpush3.bf16.msra.mxu1 %v1989_v10  ;;  %4532 = vrcp.f32 %v1925_v25  ;;  %v817_v10 = vld [vmem:[%s5412_s23 + $0x18] sm:$0xff]  ;;  %v823_v25 = vld [vmem:[%s5412_s23 + $0x48] sm:$0xff] }
 0xb88   : > { %4213 = vmatprep.subr.bf16.mxu1 %v4933_v11 }
 0xb90   : > { %v4531_v63 = vpop.eup %4530 }
 0xb91   : > { %v1926_v24 = vsel %vm1006_vm3, %v4531_v63, 0.0  ;;  %v4533_v60 = vpop.eup %4532 }
 0xb92   : > { %1927 = vadd.xlane.f32.xlu0 %v1926_v24  ;;  %v1930_v27 = vmul.f32 %v4533_v60, %v4529_v5  ;;  %v822_v24 = vld [vmem:[%s5412_s23 + $0x40] sm:$0xff] }
 0xb93   : > { %v2252_v60 = vpack.c.bf16 %v823_v25, %v822_v24 }
 0xb94   : > { %v1933_v30 = vpack.c.bf16 %v1930_v27, %v1930_v27 }
 0xba8   : > { %1935 = vrot.lane.b32.xlu0 %v5486_v59, %s4937_s11 }
 0xc1f   : > { %v1928_v26 = vpop.xlane.xlu0 %1927 }
 0xc20   : > { %4534 = vrcp.f32 %v1928_v26 }
 0xc23   : > { %v1936_v28 = vpop.permute.xlu0 %1935 }
 0xc24   : > { %v1941_v29 = vsel %vm1126_vm4, %v1936_v28, 0 }
 0xc25   : > { %4196 = vmatpush3.bf16.msra.mxu0 %v1941_v29 }
 0xc26   : > { %4207 = vmatprep.subr.bf16.mxu0 %v4933_v11 }
 0xc28   : > { %4198 = vmatmul.mubr.msk.bf16.vlgmr.msra.gmra.mrb[40].mxu0 %vm1006_vm3, %v1933_v30 }
 0xc29   : > { %4209 = vmatprep.mubr.msk.bf16.mxu0 %vm4934_vm1, %v4933_v11  ;;  %4208 = vmatpush3.bf16.msra.mxu0 %v2037_v35 }
 0xc2a   : > { %v4535_v59 = vpop.eup %4534 }
 0xc2b   : > { %v1932_v31 = vmul.f32 %v4535_v59, %v4531_v63  ;;  %v2139_v63 = vpack.c.bf16 %v817_v10, %v816_v23 }
 0xc2d   : > { %v1934_v32 = vpack.c.bf16 %v1932_v31, %v1932_v31 }
 0xc2f   : > { %4204 = vmatmul.mubr.msk.bf16.vlgmr.msra.gmra.mrb[40].mxu1 %vm1006_vm3, %v1934_v32  ;;  %v3914_v32 = vld [vmem:[%s5408_s22 + $0x3] ss:$0 sm:$0xff] }
 0xc30   : > { %4217 = vmatprep.mubr.msk.bf16.mxu1 %vm4934_vm1, %v4933_v11  ;;  %4214 = vmatpush3.bf16.msra.mxu1 %v2138_v8 }
 0xc31   : > { %4215 = vmatprep.subr.bf16.mxu1 %v4933_v11 }
 0xc34   : > { %4216 = vmatpush3.bf16.msra.mxu1 %v2139_v63 }
 0xc35   : > { %4229 = vmatprep.subr.bf16.mxu1 %v2252_v60 }
 0xcfb   : > { %v1977_v36 = vpop.f32.mrb[40].mxu0 }
 0xcfc   : > { %v4199_v37 = vpop.f32.mrb[41].mxu0 }
 0xcfd   : > { %v1980_v38 = vpop.f32.mrb[42].mxu0  ;;  %v3915_v37 = vld [vmem:[%s5408_s22 + $0x4] ss:$0 sm:$0xff] }
 0xcfe   : > { %v4200_v49 = vpop.f32.mrb[43].mxu0 }
 0xcff   : > { %v824_v49 = vld [vmem:[%s5412_s23 + $0x50] sm:$0xff] }
 0xd02   : > { %v2025_v41 = vpop.f32.mrb[40].mxu1 }
 0xd03   : > { %v2031_v42 = vpack.c.bf16 %v2025_v41, %v1977_v36  ;;  %v4205_v40 = vpop.f32.mrb[41].mxu1  ;;  %v825_v41 = vld [vmem:[%s5412_s23 + $0x58] sm:$0xff] }
 0xd04   : > { %v2028_v43 = vpop.f32.mrb[42].mxu1 }
 0xd05   : > { %v4206_v45 = vpop.f32.mrb[43].mxu1  ;;  %4210 = vmatmul.mubr.msk.bf16.vlgmr.msra.gmra.mrb[44].mxu0 %vm1006_vm3, %v2031_v42 }
 0xd06   : > { %4225 = vmatprep.mubr.msk.bf16.mxu0 %vm855_vm2, %v2136_v16  ;;  %v2253_v45 = vpack.c.bf16 %v825_v41, %v824_v49 }
 0xdd8   : > { %v2073_v47 = vpop.f32.mrb[44].mxu0 }
 0xdd9   : > { %v2080_v48 = vadd.f32 %v2073_v47, %v1809_v9  ;;  %v4211_v50 = vpop.f32.mrb[45].mxu0  ;;  %v818_v9 = vld [vmem:[%s5412_s23 + $0x20] sm:$0xff] }
 0xdda   : > { %v2076_v51 = vpop.f32.mrb[46].mxu0  ;;  %v2190_v44 = vpack.c.bf16 %v819_v39, %v818_v9 }
 0xddb   : > { %v2088_v52 = vadd.f32 %v3913_v46, %v2080_v48  ;;  %v2081_v53 = vadd.f32 %v2076_v51, %v1810_v12  ;;  %v4212_v54 = vpop.f32.mrb[47].mxu0  ;;  %v820_v12 = vld [vmem:[%s5412_s23 + $0x30] sm:$0xff] }
 0xddc   : > { %4221 = vmatprep.subr.bf16.mxu0 %v2190_v44  ;;  %v2191_v13 = vpack.c.bf16 %v821_v55, %v820_v12 }
 0xddd   : > { %v2089_v56 = vadd.f32 %v3913_v46, %v2081_v53  ;;  %v2090_v57 = vadd.f32 %v2088_v52, %v5433_v19  ;;  %4222 = vmatpush3.bf16.msra.mxu0 %v2190_v44  ;;  %v3918_v46 = vld [vmem:[%s5402_s28 + $0x1] ss:$0 sm:$0xff] }
 0xdde   : > { %4223 = vmatprep.subr.bf16.mxu0 %v2191_v13 }
 0xddf   : > { %v2092_v58 = vsel %vm855_vm2, %v2090_v57, 0.0  ;;  %v2091_v61 = vadd.f32 %v2089_v56, %v5435_v20 }
 0xde0   : > { %2093 = vadd.xlane.f32.xlu1 %v2092_v58 }
 0xde1   : > { %v2095_v62 = vsel %vm855_vm2, %v2091_v61, 0.0  ;;  %4224 = vmatpush3.bf16.msra.mxu0 %v2191_v13  ;;  %v3921_v13 = vld [vmem:[%s5402_s28 + $0x2] ss:$0 sm:$0xff] }
 0xde2   : > { %2096 = vadd.xlane.f32.xlu0 %v2095_v62  ;;  %4237 = vmatprep.subr.bf16.mxu0 %v4933_v11 }
 0xde4   : > { %4226 = vmatmul.mubr.msk.bf16.vlgmr.msra.gmra.mrb[48].mxu0 %vm855_vm2, %v2137_v18 }
 0xde5   : > { %4239 = vmatprep.mubr.msk.bf16.mxu0 %vm4934_vm1, %v4933_v11 }
 0xe6d   : > { %v2094_v0 = vpop.xlane.xlu1 %2093 }
 0xe6e   : > { %v2099_v1 = vmul.f32 0.03125, %v2094_v0 }
 0xe6f   : > { %v2097_v2 = vpop.xlane.xlu0 %2096 }
 0xe70   : > { %v2101_v3 = vsub.f32 %v2090_v57, %v2099_v1  ;;  %v2100_v4 = vmul.f32 0.03125, %v2097_v2 }
 0xe72   : > { %v2102_v5 = vsub.f32 %v2091_v61, %v2100_v4  ;;  %v2103_v6 = vmul.f32 %v2101_v3, %v2101_v3  ;;  %v3916_v4 = vld [vmem:[%s5402_s28] ss:$0 sm:$0xff] }
 0xe74   : > { %v2105_v19 = vsel %vm855_vm2, %v2103_v6, 0.0  ;;  %v2104_v7 = vmul.f32 %v2102_v5, %v2102_v5 }
 0xe75   : > { %2106 = vadd.xlane.f32.xlu0 %v2105_v19 }
 0xe76   : > { %v2108_v20 = vsel %vm855_vm2, %v2104_v7, 0.0 }
 0xe77   : > { %2109 = vadd.xlane.f32.xlu1 %v2108_v20 }
 0xeb7   : > { %v4227_v47 = vpop.f32.mrb[48].mxu0 }
 0xeb8   : > { %v2238_v48 = vpop.f32.mrb[49].mxu0  ;;  %v2247_v50 = vadd.f32 %v4227_v47, %v3918_v46 }
 0xeb9   : > { %v2239_v51 = vadd.f32 %v3918_v46, %v2238_v48  ;;  %v4228_v52 = vpop.f32.mrb[50].mxu0 }
 0xeba   : > { %v2241_v53 = vpop.f32.mrb[51].mxu0  ;;  %v2317_v57 = vcombine.high %v2247_v50, %v2247_v50 }
 0xebb   : > { %v2315_v54 = vcombine.high %v2239_v51, %v2239_v51  ;;  %v2242_v56 = vadd.f32 %v3918_v46, %v2241_v53 }
 0xebd   : > { %v2319_v58 = vcombine.low %v2239_v51, %v2315_v54  ;;  %v2316_v61 = vcombine.high %v2242_v56, %v2242_v56 }
 0xebf   : > { %v2320_v62 = vcombine.low %v2316_v61, %v2247_v50  ;;  %v5698_v0 = vpack.c.bf16 %v2242_v56, %v2319_v58 }
 0xec1   : > { %v5700_v1 = vpack.c.bf16 %v2317_v57, %v2320_v62  ;;  %v2342_v2 = vsel %vm1006_vm3, %v5698_v0, 0 }
 0xec2   : > { %4238 = vmatpush3.bf16.xpose.msra.mxu0 %v2342_v2 }
 0xec3   : > { %4249 = vmatprep.subr.bf16.mxu0 %v4933_v11 }
 0xf02   : > { %v2107_v26 = vpop.xlane.xlu0 %2106 }
 0xf03   : > { %v2111_v27 = vmul.f32 0.03125, %v2107_v26 }
 0xf04   : > { %v2110_v28 = vpop.xlane.xlu1 %2109 }
 0xf05   : > { %v2113_v29 = vadd.f32 1e-05, %v2111_v27  ;;  %v2112_v30 = vmul.f32 0.03125, %v2110_v28 }
 0xf07   : > { %4536 = vrsqrt.f32 %v2113_v29  ;;  %v2114_v59 = vadd.f32 1e-05, %v2112_v30 }
 0xf09   : > { %4538 = vrsqrt.f32 %v2114_v59 }
 0xf11   : > { %v4537_v31 = vpop.eup %4536 }
 0xf12   : > { %v2117_v33 = vmul.f32 %v4537_v31, %v2101_v3  ;;  %v2388_v3 = vsel %vm1006_vm3, %v5700_v1, 0 }
 0xf13   : > { %v4539_v34 = vpop.eup %4538 }
 0xf14   : > { %v2125_v35 = vmul.f32 %v3914_v32, %v2117_v33  ;;  %v2118_v36 = vmul.f32 %v4539_v34, %v2102_v5 }
 0xf16   : > { %v2126_v38 = vmul.f32 %v3914_v32, %v2118_v36  ;;  %v5685_v42 = vadd.f32 %v3915_v37, %v2125_v35 }
 0xf18   : > { %v5687_v40 = vadd.f32 %v3915_v37, %v2126_v38 }
 0xf1a   : > { %v2135_v43 = vpack.c.bf16 %v5687_v40, %v5685_v42 }
 0xf1c   : > { %4218 = vmatmul.mubr.msk.bf16.vlgmr.msra.gmra.mrb[44].mxu1 %vm855_vm2, %v2135_v43 }
 0xf1d   : > { %4230 = vmatpush3.bf16.msra.mxu1 %v2252_v60  ;;  %4233 = vmatprep.mubr.msk.bf16.mxu1 %vm855_vm2, %v2136_v16 }
 0xf1e   : > { %4231 = vmatprep.subr.bf16.mxu1 %v2253_v45 }
 0xf21   : > { %4232 = vmatpush3.bf16.msra.mxu1 %v2253_v45 }
 0xf22   : > { %4243 = vmatprep.subr.bf16.mxu1 %v4933_v11 }
 0xf24   : > { %4234 = vmatmul.mubr.msk.bf16.vlgmr.msra.gmra.mrb[48].mxu1 %vm855_vm2, %v2137_v18 }
 0xf25   : > { %4245 = vmatprep.mubr.msk.bf16.mxu1 %vm4934_vm1, %v4933_v11 }
 0xf2a   : > { %4244 = vmatpush3.bf16.xpose.msra.mxu1 %v2388_v3 }
 0xf2b   : > { %4255 = vmatprep.subr.bf16.mxu1 %v4933_v11 }
 0xfef   : > { %v2183_v5 = vpop.f32.mrb[44].mxu1 }
 0xff0   : > { %v2184_v6 = vadd.f32 %v3916_v4, %v2183_v5  ;;  %v4219_v19 = vpop.f32.mrb[45].mxu1 }
 0xff1   : > { %v2186_v7 = vpop.f32.mrb[46].mxu1 }
 0xff2   : > { %v2308_v20 = vmul.f32 0.35355338, %v2184_v6  ;;  %v2187_v9 = vadd.f32 %v3916_v4, %v2186_v7  ;;  %v4220_v39 = vpop.f32.mrb[47].mxu1 }
 0xff4   : > { %v5709_v44 = vpack.c.bf16 %v2308_v20, %v2308_v20  ;;  %v2309_v12 = vmul.f32 0.35355338, %v2187_v9 }
 0xff6   : > { %v5711_v55 = vpack.c.bf16 %v2309_v12, %v2309_v12  ;;  %4240 = vmatmul.mubr.msk.bf16.vlgmr.msra.gmra.mrb[52].mxu0 %vm1006_vm3, %v5709_v44 }
 0xff7   : > { %v4235_v14 = vpop.f32.mrb[48].mxu1  ;;  %4251 = vmatprep.mubr.msk.bf16.mxu0 %vm4934_vm1, %v4933_v11 }
 0xff8   : > { %4246 = vmatmul.mubr.msk.bf16.vlgmr.msra.gmra.mrb[52].mxu1 %vm1006_vm3, %v5711_v55  ;;  %v2294_v15 = vpop.f32.mrb[49].mxu1  ;;  %v2303_v16 = vadd.f32 %v4235_v14, %v3921_v13 }
 0xff9   : > { %v2295_v17 = vadd.f32 %v3921_v13, %v2294_v15  ;;  %v4236_v18 = vpop.f32.mrb[50].mxu1  ;;  %4257 = vmatprep.mubr.msk.bf16.mxu1 %vm4934_vm1, %v4933_v11 }
 0xffa   : > { %v2297_v21 = vpop.f32.mrb[51].mxu1  ;;  %v2330_v23 = vcombine.high %v2303_v16, %v2303_v16 }
 0xffb   : > { %v2328_v22 = vcombine.high %v2295_v17, %v2295_v17  ;;  %v2298_v8 = vadd.f32 %v3921_v13, %v2297_v21 }
 0xffd   : > { %v2332_v10 = vcombine.low %v2295_v17, %v2328_v22  ;;  %v2329_v63 = vcombine.high %v2298_v8, %v2298_v8 }
 0xfff   : > { %v2333_v24 = vcombine.low %v2329_v63, %v2303_v16  ;;  %v5722_v25 = vpack.c.bf16 %v2298_v8, %v2332_v10 }
0x1001   : > { %v5724_v60 = vpack.c.bf16 %v2330_v23, %v2333_v24  ;;  %v2460_v26 = vsel %vm2458_vm5, %v5722_v25, 0 }
0x1002   : > { %4250 = vmatpush3.bf16.msra.mxu0 %v2460_v26 }
0x1003   : > { %v2506_v27 = vsel %vm2458_vm5, %v5724_v60, 0  ;;  %4261 = vmatprep.subr.bf16.mxu0 %v4933_v11 }
0x1004   : > { %4256 = vmatpush3.bf16.msra.mxu1 %v2506_v27 }
0x1005   : > { %4267 = vmatprep.subr.bf16.mxu1 %v4933_v11 }
0x10c9   : > { %v2378_v28 = vpop.f32.mrb[52].mxu0 }
0x10ca   : > { %v4241_v29 = vpop.f32.mrb[53].mxu0  ;;  %v2431_v30 = vsel %vm2430_vm6, %v2378_v28, -inf }
0x10cb   : > { %v2424_v59 = vpop.f32.mrb[52].mxu1  ;;  %2432 = vmax.xlane.f32.xlu0 %v2431_v30  ;;  %v2381_v31 = vpop.f32.mrb[54].mxu0 }
0x10cc   : > { %v4242_v32 = vpop.f32.mrb[55].mxu0  ;;  %v4247_v33 = vpop.f32.mrb[53].mxu1  ;;  %v2434_v34 = vsel %vm2430_vm6, %v2424_v59, -inf }
0x10cd   : > { %2435 = vmax.xlane.f32.xlu1 %v2434_v34  ;;  %v2427_v35 = vpop.f32.mrb[54].mxu1 }
0x10ce   : > { %v4248_v36 = vpop.f32.mrb[55].mxu1 }
0x10de   : > { %2606 = vrot.lane.b32.xlu1 %v5700_v1, %s4935_s30 }
0x1158   : > { %v2433_v37 = vpop.xlane.xlu0 %2432 }
0x1159   : > { %v2437_v38 = vsub.f32 %v2378_v28, %v2433_v37 }
0x115a   : > { %v2436_v49 = vpop.xlane.xlu1 %2435 }
0x115b   : > { %v2439_v41 = vmul.f32 1.442695, %v2437_v38  ;;  %v2438_v43 = vsub.f32 %v2424_v59, %v2436_v49  ;;  %v830_v49 = vld [vmem:[%s5414_s18 + $0x8] sm:$0xff] }
0x115d   : > { %4540 = vpow2.f32 %v2439_v41  ;;  %v2441_v45 = vmul.f32 1.442695, %v2438_v43 }
0x115e   : > { %v2607_v51 = vpop.permute.xlu1 %2606 }
0x115f   : > { %4542 = vpow2.f32 %v2441_v45  ;;  %v2612_v4 = vsel %vm1006_vm3, %v2607_v51, 0  ;;  %v2777_v45 = vpack.c.bf16 %v830_v49, %v830_v49 }
0x1167   : > { %v4541_v46 = vpop.eup %4540 }
0x1168   : > { %v2443_v47 = vsel %vm2430_vm6, %v4541_v46, 0.0 }
0x1169   : > { %v4543_v48 = vpop.eup %4542  ;;  %2444 = vadd.xlane.f32.xlu0 %v2443_v47  ;;  %v829_v47 = vld [vmem:[%s5414_s18] sm:$0xff] }
0x116a   : > { %v2446_v50 = vsel %vm2430_vm6, %v4543_v48, 0.0  ;;  %v2549_v51 = vpack.c.bf16 %v829_v47, %v829_v47 }
0x116b   : > { %2447 = vadd.xlane.f32.xlu1 %v2446_v50 }
0x117c   : > { %2551 = vrot.lane.b32.xlu1 %v5709_v44, %s4935_s30 }
0x117f   : > { %2554 = vrot.lane.b32.xlu0 %v5698_v0, %s4935_s30 }
0x1180   : > { %2603 = vrot.lane.b32.xlu1 %v5711_v55, %s4935_s30 }
0x11f6   : > { %v2445_v52 = vpop.xlane.xlu0 %2444 }
0x11f7   : > { %4544 = vrcp.f32 %v2445_v52  ;;  %v2782_v52 = vsel %vm1126_vm4, %v2777_v45, 0 }
0x11f8   : > { %v2448_v53 = vpop.xlane.xlu1 %2447 }
0x11f9   : > { %4546 = vrcp.f32 %v2448_v53 }
0x11fa   : > { %v2555_v58 = vpop.permute.xlu0 %2554 }
0x11fb   : > { %v2560_v2 = vsel %vm1006_vm3, %v2555_v58, 0 }
0x11fc   : > { %v2552_v5 = vpop.permute.xlu1 %2551 }
0x1200   : > { %v2604_v6 = vpop.permute.xlu1 %2603 }
0x1201   : > { %v4545_v54 = vpop.eup %4544 }
0x1202   : > { %v2450_v56 = vmul.f32 %v4545_v54, %v4541_v46 }
0x1203   : > { %v4547_v57 = vpop.eup %4546 }
0x1204   : > { %v2452_v61 = vmul.f32 %v4547_v57, %v4543_v48  ;;  %v2453_v62 = vpack.c.bf16 %v2450_v56, %v2450_v56  ;;  %v2829_v57 = vsel %vm1126_vm4, %v2549_v51, 0 }
0x1206   : > { %4252 = vmatmul.mubr.msk.bf16.vlgmr.msra.gmra.mrb[56].mxu0 %vm2430_vm6, %v2453_v62  ;;  %v2454_v3 = vpack.c.bf16 %v2452_v61, %v2452_v61 }
0x1207   : > { %4262 = vmatpush3.bf16.xpose.msra.mxu0 %v2560_v2  ;;  %4263 = vmatprep.mubr.msk.bf16.mxu0 %vm4934_vm1, %v4933_v11 }
0x1208   : > { %4258 = vmatmul.mubr.msk.bf16.vlgmr.msra.gmra.mrb[56].mxu1 %vm2430_vm6, %v2454_v3  ;;  %4273 = vmatprep.subr.bf16.mxu0 %v4933_v11 }
0x1209   : > { %4268 = vmatpush3.bf16.xpose.msra.mxu1 %v2612_v4  ;;  %4269 = vmatprep.mubr.msk.bf16.mxu1 %vm4934_vm1, %v4933_v11 }
0x120a   : > { %4279 = vmatprep.subr.bf16.mxu1 %v4933_v11 }
0x120e   : > { %4264 = vmatmul.mubr.msk.bf16.vlgmr.msra.gmra.mrb[60].mxu0 %vm1006_vm3, %v2552_v5 }
0x120f   : > { %4275 = vmatprep.mubr.msk.bf16.mxu0 %vm4934_vm1, %v4933_v11 }
0x1210   : > { %4270 = vmatmul.mubr.msk.bf16.vlgmr.msra.gmra.mrb[60].mxu1 %vm1006_vm3, %v2604_v6 }
0x1211   : > { %4281 = vmatprep.mubr.msk.bf16.mxu1 %vm4934_vm1, %v4933_v11 }
0x12d9   : > { %v5760_v19 = vpop.f32.mrb[56].mxu0 }
0x12da   : > { %v4253_v7 = vpop.f32.mrb[57].mxu0 }
0x12db   : > { %v2499_v20 = vpop.f32.mrb[58].mxu0  ;;  %v5762_v9 = vpop.f32.mrb[56].mxu1 }
0x12dc   : > { %v2548_v39 = vpack.c.bf16 %v5762_v9, %v5760_v19  ;;  %v4254_v12 = vpop.f32.mrb[59].mxu0  ;;  %v4259_v13 = vpop.f32.mrb[57].mxu1 }
0x12dd   : > { %v2545_v14 = vpop.f32.mrb[58].mxu1 }
0x12de   : > { %v4260_v15 = vpop.f32.mrb[59].mxu1 }
0x12e1   : > { %v2596_v16 = vpop.f32.mrb[60].mxu0 }
0x12e2   : > { %v4265_v17 = vpop.f32.mrb[61].mxu0  ;;  %v2654_v18 = vsel %vm2430_vm6, %v2596_v16, -inf }
0x12e3   : > { %v2648_v21 = vpop.f32.mrb[60].mxu1  ;;  %2655 = vmax.xlane.f32.xlu0 %v2654_v18  ;;  %v2599_v22 = vpop.f32.mrb[62].mxu0 }
0x12e4   : > { %v4266_v8 = vpop.f32.mrb[63].mxu0  ;;  %v4271_v23 = vpop.f32.mrb[61].mxu1  ;;  %v2657_v10 = vsel %vm2430_vm6, %v2648_v21, -inf }
0x12e5   : > { %2658 = vmax.xlane.f32.xlu1 %v2657_v10  ;;  %v2651_v63 = vpop.f32.mrb[62].mxu1 }
0x12e6   : > { %v4272_v24 = vpop.f32.mrb[63].mxu1 }
0x12f6   : > { %2728 = vrot.lane.b32.xlu1 %v5724_v60, %s4935_s30 }
0x12fa   : > { %2874 = vrot.lane.b32.xlu1 %v5698_v0, %s4936_s5 }
0x12fe   : > { %2924 = vrot.lane.b32.xlu1 %v5700_v1, %s4936_s5 }
0x1302   : > { %2922 = vrot.lane.b32.xlu1 %v5711_v55, %s4936_s5 }
0x1370   : > { %v2656_v26 = vpop.xlane.xlu0 %2655 }
0x1371   : > { %v2660_v27 = vsub.f32 %v2596_v16, %v2656_v26 }
0x1372   : > { %v2659_v28 = vpop.xlane.xlu1 %2658 }
0x1373   : > { %v2662_v29 = vmul.f32 1.442695, %v2660_v27  ;;  %v2661_v30 = vsub.f32 %v2648_v21, %v2659_v28 }
0x1375   : > { %4548 = vpow2.f32 %v2662_v29  ;;  %v2664_v59 = vmul.f32 1.442695, %v2661_v30 }
0x1376   : > { %v2729_v31 = vpop.permute.xlu1 %2728 }
0x1377   : > { %4550 = vpow2.f32 %v2664_v59  ;;  %v2734_v32 = vsel %vm2458_vm5, %v2729_v31, 0 }
0x1378   : > { %4280 = vmatpush3.bf16.msra.mxu1 %v2734_v32 }
0x1379   : > { %4291 = vmatprep.subr.bf16.mxu1 %v4933_v11 }
0x137a   : > { %v2875_v58 = vpop.permute.xlu1 %2874 }
0x137e   : > { %v2925_v61 = vpop.permute.xlu1 %2924 }
0x137f   : > { %v4549_v33 = vpop.eup %4548  ;;  %v2930_v62 = vsel %vm1006_vm3, %v2925_v61, 0 }
0x1380   : > { %v2666_v34 = vsel %vm2430_vm6, %v4549_v33, 0.0 }
0x1381   : > { %v4551_v35 = vpop.eup %4550  ;;  %2667 = vadd.xlane.f32.xlu0 %v2666_v34 }
0x1382   : > { %v2669_v36 = vsel %vm2430_vm6, %v4551_v35, 0.0  ;;  %v2923_v2 = vpop.permute.xlu1 %2922 }
0x1385   : > { %2670 = vadd.xlane.f32.xlu0 %v2669_v36 }
0x139b   : > { %2679 = vrot.lane.b32.xlu0 %v5722_v25, %s4935_s30 }
0x139f   : > { %2872 = vrot.lane.b32.xlu0 %v5709_v44, %s4936_s5 }
0x140e   : > { %v2668_v37 = vpop.xlane.xlu0 %2667 }
0x140f   : > { %4552 = vrcp.f32 %v2668_v37 }
0x1412   : > { %v2671_v38 = vpop.xlane.xlu0 %2670 }
0x1413   : > { %4554 = vrcp.f32 %v2671_v38 }
0x1416   : > { %v2680_v41 = vpop.permute.xlu0 %2679 }
0x1417   : > { %v2685_v43 = vsel %vm2458_vm5, %v2680_v41, 0 }
0x1418   : > { %4274 = vmatpush3.bf16.msra.mxu0 %v2685_v43 }
0x1419   : > { %v4553_v46 = vpop.eup %4552  ;;  %4285 = vmatprep.subr.bf16.mxu0 %v4933_v11 }
0x141a   : > { %v2673_v48 = vmul.f32 %v4553_v46, %v4549_v33  ;;  %v2873_v15 = vpop.permute.xlu0 %2872 }
0x141c   : > { %v2676_v50 = vpack.c.bf16 %v2673_v48, %v2673_v48 }
0x141d   : > { %v4555_v53 = vpop.eup %4554 }
0x141e   : > { %v2675_v54 = vmul.f32 %v4555_v53, %v4551_v35  ;;  %4276 = vmatmul.mubr.msk.bf16.vlgmr.msra.gmra.mrb[64].mxu0 %vm2430_vm6, %v2676_v50 }
0x141f   : > { %4286 = vmatpush3.bf16.msra.mxu0 %v2782_v52  ;;  %4287 = vmatprep.mubr.msk.bf16.mxu0 %vm4934_vm1, %v4933_v11 }
0x1420   : > { %v2677_v56 = vpack.c.bf16 %v2675_v54, %v2675_v54  ;;  %4297 = vmatprep.subr.bf16.mxu0 %v4933_v11 }
0x1422   : > { %4282 = vmatmul.mubr.msk.bf16.vlgmr.msra.gmra.mrb[64].mxu1 %vm2430_vm6, %v2677_v56 }
0x1423   : > { %4292 = vmatpush3.bf16.msra.mxu1 %v2829_v57  ;;  %4293 = vmatprep.mubr.msk.bf16.mxu1 %vm4934_vm1, %v4933_v11 }
0x1424   : > { %4303 = vmatprep.subr.bf16.mxu1 %v4933_v11 }
0x142a   : > { %4294 = vmatmul.mubr.msk.bf16.vlgmr.msra.gmra.mrb[68].mxu1 %vm1006_vm3, %v2548_v39  ;;  %v2880_v39 = vsel %vm1006_vm3, %v2875_v58, 0 }
0x142b   : > { %4305 = vmatprep.mubr.msk.bf16.mxu1 %vm4934_vm1, %v4933_v11 }
0x142c   : > { %4304 = vmatpush3.bf16.xpose.msra.mxu1 %v2930_v62 }
0x142d   : > { %4315 = vmatprep.subr.bf16.mxu1 %v4933_v11 }
0x1433   : > { %4306 = vmatmul.mubr.msk.bf16.vlgmr.msra.gmra.mrb[72].mxu1 %vm1006_vm3, %v2923_v2 }
0x1434   : > { %4317 = vmatprep.mubr.msk.bf16.mxu1 %vm4934_vm1, %v4933_v11 }
0x14f1   : > { %v2721_v3 = vpop.f32.mrb[64].mxu0 }
0x14f2   : > { %v4277_v4 = vpop.f32.mrb[65].mxu0 }
0x14f3   : > { %v2724_v5 = vpop.f32.mrb[66].mxu0  ;;  %v831_v4 = vld [vmem:[%s5414_s18 + $0x10] sm:$0xff] }
0x14f4   : > { %v4278_v6 = vpop.f32.mrb[67].mxu0  ;;  %v3093_v5 = vpack.c.bf16 %v831_v4, %v831_v4  ;;  %v3944_v4 = vld [vmem:[%s5408_s22 + $0x1] ss:$0 sm:$0xff] }
0x14f5   : > { %v2770_v19 = vpop.f32.mrb[64].mxu1 }
0x14f6   : > { %v2776_v7 = vpack.c.bf16 %v2770_v19, %v2721_v3  ;;  %v4283_v20 = vpop.f32.mrb[65].mxu1  ;;  %v3098_v6 = vsel %vm1126_vm4, %v3093_v5, 0 }
0x14f7   : > { %v2773_v9 = vpop.f32.mrb[66].mxu1 }
0x14f8   : > { %v4284_v12 = vpop.f32.mrb[67].mxu1  ;;  %4288 = vmatmul.mubr.msk.bf16.vlgmr.msra.gmra.mrb[68].mxu0 %vm1006_vm3, %v2776_v7 }
0x14f9   : > { %4298 = vmatpush3.bf16.xpose.msra.mxu0 %v2880_v39  ;;  %4299 = vmatprep.mubr.msk.bf16.mxu0 %vm4934_vm1, %v4933_v11 }
0x14fa   : > { %4309 = vmatprep.subr.bf16.mxu0 %v4933_v11 }
0x14fd   : > { %v2865_v13 = vpop.f32.mrb[68].mxu1 }
0x14fe   : > { %v4295_v14 = vpop.f32.mrb[69].mxu1 }
0x14ff   : > { %v2868_v16 = vpop.f32.mrb[70].mxu1 }
0x1500   : > { %v4296_v17 = vpop.f32.mrb[71].mxu1  ;;  %4300 = vmatmul.mubr.msk.bf16.vlgmr.msra.gmra.mrb[72].mxu0 %vm1006_vm3, %v2873_v15 }
0x1501   : > { %4311 = vmatprep.mubr.msk.bf16.mxu0 %vm4934_vm1, %v4933_v11 }
0x1506   : > { %v2966_v18 = vpop.f32.mrb[72].mxu1 }
0x1507   : > { %v4307_v21 = vpop.f32.mrb[73].mxu1  ;;  %v2975_v22 = vsel %vm2430_vm6, %v2966_v18, -inf }
0x1508   : > { %2976 = vmax.xlane.f32.xlu1 %v2975_v22  ;;  %v2969_v8 = vpop.f32.mrb[74].mxu1 }
0x1509   : > { %v4308_v23 = vpop.f32.mrb[75].mxu1 }
0x1519   : > { %3044 = vrot.lane.b32.xlu1 %v5724_v60, %s4936_s5 }
0x151d   : > { %3145 = vrot.lane.b32.xlu1 %v5698_v0, %s4937_s11 }
0x1521   : > { %3195 = vrot.lane.b32.xlu1 %v5700_v1, %s4937_s11 }
0x1525   : > { %3193 = vrot.lane.b32.xlu1 %v5711_v55, %s4937_s11 }
0x1595   : > { %v2977_v10 = vpop.xlane.xlu1 %2976 }
0x1596   : > { %v2979_v26 = vsub.f32 %v2966_v18, %v2977_v10 }
0x1598   : > { %v2982_v27 = vmul.f32 1.442695, %v2979_v26 }
0x1599   : > { %v3045_v63 = vpop.permute.xlu1 %3044 }
0x159a   : > { %v3050_v24 = vsel %vm2458_vm5, %v3045_v63, 0  ;;  %4556 = vpow2.f32 %v2982_v27 }
0x159b   : > { %4316 = vmatpush3.bf16.msra.mxu1 %v3050_v24 }
0x159c   : > { %4327 = vmatprep.subr.bf16.mxu1 %v4933_v11 }
0x159d   : > { %v3146_v48 = vpop.permute.xlu1 %3145 }
0x159e   : > { %v3151_v51 = vsel %vm1006_vm3, %v3146_v48, 0 }
0x15a1   : > { %v3196_v12 = vpop.permute.xlu1 %3195 }
0x15a2   : > { %v3201_v17 = vsel %vm1006_vm3, %v3196_v12, 0 }
0x15a4   : > { %v4557_v33 = vpop.eup %4556 }
0x15a5   : > { %v2987_v36 = vsel %vm2430_vm6, %v4557_v33, 0.0  ;;  %v3194_v21 = vpop.permute.xlu1 %3193 }
0x15cb   : > { %v2818_v28 = vpop.f32.mrb[68].mxu0 }
0x15cc   : > { %v5828_v29 = vadd.f32 %v2865_v13, %v2818_v28  ;;  %v4289_v0 = vpop.f32.mrb[69].mxu0 }
0x15cd   : > { %v2821_v30 = vpop.f32.mrb[70].mxu0 }
0x15ce   : > { %v5830_v59 = vadd.f32 %v2868_v16, %v2821_v30  ;;  %v4290_v1 = vpop.f32.mrb[71].mxu0 }
0x15d3   : > { %v2916_v31 = vpop.f32.mrb[72].mxu0 }
0x15d4   : > { %v4301_v55 = vpop.f32.mrb[73].mxu0  ;;  %v2972_v32 = vsel %vm2430_vm6, %v2916_v31, -inf }
0x15d5   : > { %2973 = vmax.xlane.f32.xlu0 %v2972_v32  ;;  %v2919_v34 = vpop.f32.mrb[74].mxu0 }
0x15d6   : > { %v4302_v35 = vpop.f32.mrb[75].mxu0 }
0x15d9   : > { %2988 = vadd.xlane.f32.xlu0 %v2987_v36 }
0x1662   : > { %v2974_v37 = vpop.xlane.xlu0 %2973 }
0x1663   : > { %v2978_v38 = vsub.f32 %v2916_v31, %v2974_v37 }
0x1665   : > { %v2980_v49 = vmul.f32 1.442695, %v2978_v38 }
0x1666   : > { %v2989_v41 = vpop.xlane.xlu0 %2988 }
0x1667   : > { %4558 = vpow2.f32 %v2980_v49 }
0x1668   : > { %4560 = vrcp.f32 %v2989_v41 }
0x1671   : > { %v4559_v43 = vpop.eup %4558 }
0x1672   : > { %v4561_v45 = vpop.eup %4560  ;;  %v2984_v46 = vsel %vm2430_vm6, %v4559_v43, 0.0 }
0x1673   : > { %v2993_v47 = vmul.f32 %v4561_v45, %v4557_v33  ;;  %2985 = vadd.xlane.f32.xlu0 %v2984_v46 }
0x1675   : > { %v2995_v50 = vpack.c.bf16 %v2993_v47, %v2993_v47 }
0x1677   : > { %4318 = vmatmul.mubr.msk.bf16.vlgmr.msra.gmra.mrb[76].mxu1 %vm2430_vm6, %v2995_v50 }
0x1678   : > { %4328 = vmatpush3.bf16.xpose.msra.mxu1 %v3151_v51  ;;  %4329 = vmatprep.mubr.msk.bf16.mxu1 %vm4934_vm1, %v4933_v11  ;;  %v832_v51 = vld [vmem:[%s5414_s18 + $0x18] sm:$0xff] }
0x1679   : > { %4339 = vmatprep.subr.bf16.mxu1 %v4933_v11 }
0x1689   : > { %2996 = vrot.lane.b32.xlu0 %v5722_v25, %s4936_s5 }
0x168d   : > { %3143 = vrot.lane.b32.xlu0 %v5709_v44, %s4937_s11 }
0x1700   : > { %v2986_v52 = vpop.xlane.xlu0 %2985 }
0x1701   : > { %4562 = vrcp.f32 %v2986_v52  ;;  %v3364_v52 = vpack.c.bf16 %v832_v51, %v832_v51 }
0x1704   : > { %v2997_v53 = vpop.permute.xlu0 %2996 }
0x1705   : > { %v3002_v54 = vsel %vm2458_vm5, %v2997_v53, 0  ;;  %v3369_v53 = vsel %vm1126_vm4, %v3364_v52, 0  ;;  %v842_v52 = vld [vmem:[%s5397_s0 + $0x20] sm:$0xff] }
0x1706   : > { %4310 = vmatpush3.bf16.msra.mxu0 %v3002_v54 }
0x1707   : > { %4321 = vmatprep.subr.bf16.mxu0 %v4933_v11 }
0x1708   : > { %v3144_v56 = vpop.permute.xlu0 %3143 }
0x1709   : > { %4330 = vmatmul.mubr.msk.bf16.vlgmr.msra.gmra.mrb[80].mxu1 %vm1006_vm3, %v3144_v56 }
0x170a   : > { %4341 = vmatprep.mubr.msk.bf16.mxu1 %vm4934_vm1, %v4933_v11 }
0x170b   : > { %v4563_v57 = vpop.eup %4562 }
0x170c   : > { %v2991_v58 = vmul.f32 %v4563_v57, %v4559_v43 }
0x170e   : > { %v2994_v61 = vpack.c.bf16 %v2991_v58, %v2991_v58 }
0x1710   : > { %4312 = vmatmul.mubr.msk.bf16.vlgmr.msra.gmra.mrb[76].mxu0 %vm2430_vm6, %v2994_v61 }
0x1711   : > { %4323 = vmatprep.mubr.msk.bf16.mxu0 %vm4934_vm1, %v4933_v11  ;;  %4322 = vmatpush3.bf16.msra.mxu0 %v3098_v6 }
0x1712   : > { %4333 = vmatprep.subr.bf16.mxu0 %v4933_v11 }
0x174a   : > { %v3086_v44 = vpop.f32.mrb[76].mxu1 }
0x174b   : > { %v4319_v62 = vpop.f32.mrb[77].mxu1 }
0x174c   : > { %v3089_v2 = vpop.f32.mrb[78].mxu1 }
0x174d   : > { %v4320_v3 = vpop.f32.mrb[79].mxu1 }
0x17dc   : > { %v3187_v19 = vpop.f32.mrb[80].mxu1 }
0x17dd   : > { %v4331_v7 = vpop.f32.mrb[81].mxu1  ;;  %v3243_v20 = vsel %vm2430_vm6, %v3187_v19, -inf }
0x17de   : > { %3244 = vmax.xlane.f32.xlu0 %v3243_v20  ;;  %v3190_v9 = vpop.f32.mrb[82].mxu1 }
0x17df   : > { %v4332_v39 = vpop.f32.mrb[83].mxu1 }
0x17e3   : > { %v3038_v13 = vpop.f32.mrb[76].mxu0 }
0x17e4   : > { %v3092_v14 = vpack.c.bf16 %v3086_v44, %v3038_v13  ;;  %v4313_v15 = vpop.f32.mrb[77].mxu0 }
0x17e5   : > { %v3041_v16 = vpop.f32.mrb[78].mxu0 }
0x17e6   : > { %v4314_v18 = vpop.f32.mrb[79].mxu0  ;;  %4324 = vmatmul.mubr.msk.bf16.vlgmr.msra.gmra.mrb[80].mxu0 %vm1006_vm3, %v3092_v14 }
0x17e7   : > { %4334 = vmatpush3.bf16.xpose.msra.mxu0 %v3201_v17  ;;  %4335 = vmatprep.mubr.msk.bf16.mxu0 %vm4934_vm1, %v4933_v11 }
0x17e8   : > { %4345 = vmatprep.subr.bf16.mxu0 %v4933_v11 }
0x17ee   : > { %4336 = vmatmul.mubr.msk.bf16.vlgmr.msra.gmra.mrb[84].mxu0 %vm1006_vm3, %v3194_v21 }
0x17ef   : > { %4347 = vmatprep.mubr.msk.bf16.mxu0 %vm4934_vm1, %v4933_v11 }
0x186b   : > { %v3245_v22 = vpop.xlane.xlu0 %3244 }
0x186c   : > { %v3249_v8 = vsub.f32 %v3187_v19, %v3245_v22 }
0x186e   : > { %v3251_v23 = vmul.f32 1.442695, %v3249_v8 }
0x1870   : > { %4564 = vpow2.f32 %v3251_v23 }
0x187a   : > { %v4565_v10 = vpop.eup %4564 }
0x187b   : > { %v3255_v63 = vsel %vm2430_vm6, %v4565_v10, 0.0 }
0x187c   : > { %3256 = vadd.xlane.f32.xlu0 %v3255_v63 }
0x18b9   : > { %v3134_v24 = vpop.f32.mrb[80].mxu0 }
0x18ba   : > { %v3141_v26 = vadd.f32 %v3134_v24, %v5828_v29  ;;  %v4325_v27 = vpop.f32.mrb[81].mxu0  ;;  %v833_v24 = vld [vmem:[%s5416_s26] sm:$0xff] }
0x18bb   : > { %v3137_v28 = vpop.f32.mrb[82].mxu0 }
0x18bc   : > { %v3142_v0 = vadd.f32 %v3137_v28, %v5830_v59  ;;  %v4326_v30 = vpop.f32.mrb[83].mxu0  ;;  %v835_v28 = vld [vmem:[%s5416_s26 + $0x10] sm:$0xff] }
0x18c1   : > { %v3237_v1 = vpop.f32.mrb[84].mxu0 }
0x18c2   : > { %v4337_v31 = vpop.f32.mrb[85].mxu0  ;;  %v3246_v55 = vsel %vm2430_vm6, %v3237_v1, -inf }
0x18c3   : > { %3247 = vmax.xlane.f32.xlu1 %v3246_v55  ;;  %v3240_v32 = vpop.f32.mrb[86].mxu0  ;;  %v839_v31 = vld [vmem:[%s5397_s0 + $0x8] sm:$0xff]  ;;  %v840_v55 = vld [vmem:[%s5397_s0 + $0x10] sm:$0xff] }
0x18c4   : > { %v4338_v33 = vpop.f32.mrb[87].mxu0 }
0x18c5   : > { %v841_v33 = vld [vmem:[%s5397_s0 + $0x18] sm:$0xff] }
0x18d4   : > { %3315 = vrot.lane.b32.xlu1 %v5724_v60, %s4937_s11 }
0x1909   : > { %v3257_v49 = vpop.xlane.xlu0 %3256 }
0x1950   : > { %v3248_v34 = vpop.xlane.xlu1 %3247 }
0x1951   : > { %v3250_v35 = vsub.f32 %v3237_v1, %v3248_v34  ;;  %v838_v1 = vld [vmem:[%s5397_s0] sm:$0xff]  ;;  %v3523_v34 = vpack.c.bf16 %v841_v33, %v840_v55 }
0x1952   : > { %v3522_v32 = vpack.c.bf16 %v839_v31, %v838_v1 }
0x1953   : > { %v3253_v36 = vmul.f32 1.442695, %v3250_v35 }
0x1954   : > { %v3316_v37 = vpop.permute.xlu1 %3315 }
0x1955   : > { %4566 = vpow2.f32 %v3253_v36  ;;  %v3321_v29 = vsel %vm2458_vm5, %v3316_v37, 0 }
0x1956   : > { %4346 = vmatpush3.bf16.msra.mxu0 %v3321_v29  ;;  %4568 = vrcp.f32 %v3257_v49 }
0x1957   : > { %4357 = vmatprep.subr.bf16.mxu0 %v4933_v11 }
0x195f   : > { %v4567_v59 = vpop.eup %4566 }
0x1960   : > { %v3258_v38 = vsel %vm2430_vm6, %v4567_v59, 0.0  ;;  %v4569_v60 = vpop.eup %4568 }
0x1961   : > { %3259 = vadd.xlane.f32.xlu0 %v3258_v38  ;;  %v3262_v43 = vmul.f32 %v4569_v60, %v4565_v10  ;;  %v3945_v60 = vld [vmem:[%s5408_s22 + $0x5] ss:$0 sm:$0xff] }
0x1963   : > { %v3265_v47 = vpack.c.bf16 %v3262_v43, %v3262_v43 }
0x1977   : > { %3267 = vrot.lane.b32.xlu0 %v5722_v25, %s4937_s11 }
0x19ee   : > { %v3260_v41 = vpop.xlane.xlu0 %3259 }
0x19ef   : > { %4570 = vrcp.f32 %v3260_v41 }
0x19f2   : > { %v3268_v45 = vpop.permute.xlu0 %3267 }
0x19f3   : > { %v3273_v46 = vsel %vm2458_vm5, %v3268_v45, 0 }
0x19f4   : > { %4340 = vmatpush3.bf16.msra.mxu1 %v3273_v46 }
0x19f5   : > { %4351 = vmatprep.subr.bf16.mxu1 %v4933_v11 }
0x19f7   : > { %4342 = vmatmul.mubr.msk.bf16.vlgmr.msra.gmra.mrb[84].mxu1 %vm2430_vm6, %v3265_v47  ;;  %v3946_v47 = vld [vmem:[%s5408_s22 + $0x6] ss:$0 sm:$0xff] }
0x19f8   : > { %4353 = vmatprep.mubr.msk.bf16.mxu1 %vm4934_vm1, %v4933_v11  ;;  %4352 = vmatpush3.bf16.msra.mxu1 %v3369_v53  ;;  %v843_v53 = vld [vmem:[%s5397_s0 + $0x28] sm:$0xff] }
0x19f9   : > { %v4571_v25 = vpop.eup %4570  ;;  %4365 = vmatprep.subr.bf16.mxu1 %v4933_v11 }
0x19fa   : > { %v3264_v48 = vmul.f32 %v4571_v25, %v4567_v59 }
0x19fc   : > { %v3266_v50 = vpack.c.bf16 %v3264_v48, %v3264_v48 }
0x19fe   : > { %4348 = vmatmul.mubr.msk.bf16.vlgmr.msra.gmra.mrb[88].mxu0 %vm2430_vm6, %v3266_v50 }
0x19ff   : > { %4361 = vmatprep.mubr.msk.bf16.mxu0 %vm4934_vm1, %v4933_v11 }
0x1aca   : > { %v3309_v54 = vpop.f32.mrb[84].mxu1 }
0x1acb   : > { %v4343_v56 = vpop.f32.mrb[85].mxu1 }
0x1acc   : > { %v3312_v57 = vpop.f32.mrb[86].mxu1  ;;  %v844_v56 = vld [vmem:[%s5397_s0 + $0x30] sm:$0xff] }
0x1acd   : > { %v4344_v58 = vpop.f32.mrb[87].mxu1  ;;  %v845_v57 = vld [vmem:[%s5397_s0 + $0x38] sm:$0xff] }
0x1ace   : > { %v3525_v58 = vpack.c.bf16 %v845_v57, %v844_v56 }
0x1ad1   : > { %v3357_v61 = vpop.f32.mrb[88].mxu0 }
0x1ad2   : > { %v3363_v44 = vpack.c.bf16 %v3357_v61, %v3309_v54  ;;  %v4349_v62 = vpop.f32.mrb[89].mxu0  ;;  %v3524_v54 = vpack.c.bf16 %v843_v53, %v842_v52  ;;  %v3947_v61 = vld [vmem:[%s6052_s20] ss:$0 sm:$0xff] }
0x1ad3   : > { %v3360_v2 = vpop.f32.mrb[90].mxu0 }
0x1ad4   : > { %v4350_v3 = vpop.f32.mrb[91].mxu0  ;;  %4354 = vmatmul.mubr.msk.bf16.vlgmr.msra.gmra.mrb[88].mxu1 %vm1006_vm3, %v3363_v44 }
0x1ad5   : > { %4373 = vmatprep.mubr.msk.bf16.mxu1 %vm4934_vm1, %v4933_v11  ;;  %4366 = vmatpush3.bf16.msra.mxu1 %v3522_v32  ;;  %v3951_v32 = vld [vmem:[%s5408_s22 + $0x7] ss:$0 sm:$0xff] }
0x1ad6   : > { %4367 = vmatprep.subr.bf16.mxu1 %v4933_v11 }
0x1ad9   : > { %4368 = vmatpush3.bf16.msra.mxu1 %v3523_v34 }
0x1ada   : > { %4369 = vmatprep.subr.bf16.mxu1 %v4933_v11 }
0x1add   : > { %4370 = vmatpush3.bf16.msra.mxu1 %v3524_v54 }
0x1ade   : > { %4371 = vmatprep.subr.bf16.mxu1 %v4933_v11 }
0x1ae1   : > { %4372 = vmatpush3.bf16.msra.mxu1 %v3525_v58 }
0x1ba7   : > { %v3405_v5 = vpop.f32.mrb[88].mxu1 }
0x1ba8   : > { %v3412_v6 = vadd.f32 %v3405_v5, %v3141_v26  ;;  %v4355_v19 = vpop.f32.mrb[89].mxu1  ;;  %v834_v26 = vld [vmem:[%s5416_s26 + $0x8] sm:$0xff] }
0x1ba9   : > { %v3408_v7 = vpop.f32.mrb[90].mxu1  ;;  %v3467_v27 = vpack.c.bf16 %v834_v26, %v833_v24 }
0x1baa   : > { %v3420_v20 = vadd.f32 %v3944_v4, %v3412_v6  ;;  %v3413_v9 = vadd.f32 %v3408_v7, %v3142_v0  ;;  %v4356_v39 = vpop.f32.mrb[91].mxu1  ;;  %v836_v0 = vld [vmem:[%s5416_s26 + $0x18] sm:$0xff] }
0x1bab   : > { %4358 = vmatpush3.bf16.msra.mxu0 %v3467_v27  ;;  %v3468_v30 = vpack.c.bf16 %v836_v0, %v835_v28  ;;  %v3949_v7 = vld [vmem:[%s5408_s22 + $0x2] ss:$0 sm:$0xff] }
0x1bac   : > { %v3421_v12 = vadd.f32 %v3944_v4, %v3413_v9  ;;  %v3422_v13 = vadd.f32 %v3420_v20, %v5685_v42  ;;  %4359 = vmatprep.subr.bf16.mxu0 %v4933_v11 }
0x1bae   : > { %v3424_v14 = vsel %vm855_vm2, %v3422_v13, 0.0  ;;  %v3423_v15 = vadd.f32 %v3421_v12, %v5687_v40 }
0x1baf   : > { %3425 = vadd.xlane.f32.xlu1 %v3424_v14  ;;  %4360 = vmatpush3.bf16.msra.mxu0 %v3468_v30 }
0x1bb0   : > { %v3427_v16 = vsel %vm855_vm2, %v3423_v15, 0.0 }
0x1bb1   : > { %3428 = vadd.xlane.f32.xlu0 %v3427_v16 }
0x1c3c   : > { %v3426_v17 = vpop.xlane.xlu1 %3425 }
0x1c3d   : > { %v3430_v18 = vmul.f32 0.03125, %v3426_v17 }
0x1c3e   : > { %v3429_v21 = vpop.xlane.xlu0 %3428 }
0x1c3f   : > { %v3432_v22 = vsub.f32 %v3422_v13, %v3430_v18  ;;  %v3431_v8 = vmul.f32 0.03125, %v3429_v21 }
0x1c41   : > { %v3433_v23 = vsub.f32 %v3423_v15, %v3431_v8  ;;  %v3434_v42 = vmul.f32 %v3432_v22, %v3432_v22 }
0x1c43   : > { %v3436_v10 = vsel %vm855_vm2, %v3434_v42, 0.0  ;;  %v3435_v40 = vmul.f32 %v3433_v23, %v3433_v23 }
0x1c44   : > { %3437 = vadd.xlane.f32.xlu0 %v3436_v10 }
0x1c45   : > { %v3439_v63 = vsel %vm855_vm2, %v3435_v40, 0.0 }
0x1c46   : > { %3440 = vadd.xlane.f32.xlu1 %v3439_v63 }
0x1cd1   : > { %v3438_v35 = vpop.xlane.xlu0 %3437 }
0x1cd2   : > { %v3442_v36 = vmul.f32 0.03125, %v3438_v35  ;;  %v3952_v35 = vld [vmem:[%s5408_s22 + $0x8] ss:$0 sm:$0xff] }
0x1cd3   : > { %v3441_v37 = vpop.xlane.xlu1 %3440 }
0x1cd4   : > { %v3444_v29 = vadd.f32 1e-05, %v3442_v36  ;;  %v3443_v59 = vmul.f32 0.03125, %v3441_v37 }
0x1cd6   : > { %4572 = vrsqrt.f32 %v3444_v29  ;;  %v3445_v38 = vadd.f32 1e-05, %v3443_v59 }
0x1cd8   : > { %4574 = vrsqrt.f32 %v3445_v38 }
0x1ce0   : > { %v4573_v49 = vpop.eup %4572 }
0x1ce1   : > { %v3448_v41 = vmul.f32 %v4573_v49, %v3432_v22 }
0x1ce2   : > { %v4575_v43 = vpop.eup %4574 }
0x1ce3   : > { %v3456_v45 = vmul.f32 %v3945_v60, %v3448_v41  ;;  %v3449_v46 = vmul.f32 %v4575_v43, %v3433_v23 }
0x1ce5   : > { %v3457_v25 = vmul.f32 %v3945_v60, %v3449_v46  ;;  %v3464_v48 = vadd.f32 %v3946_v47, %v3456_v45 }
0x1ce7   : > { %v3465_v50 = vadd.f32 %v3946_v47, %v3457_v25 }
0x1ce9   : > { %v3466_v51 = vpack.c.bf16 %v3465_v50, %v3464_v48 }
0x1ceb   : > { %4362 = vmatmul.mubr.msk.bf16.vlgmr.msra.gmra.mrb[92].mxu0 %vm855_vm2, %v3466_v51 }
0x1dbe   : > { %v3512_v44 = vpop.f32.mrb[92].mxu0 }
0x1dbf   : > { %v3513_v62 = vadd.f32 %v3947_v61, %v3512_v44  ;;  %v4363_v2 = vpop.f32.mrb[93].mxu0 }
0x1dc0   : > { %v3515_v3 = vpop.f32.mrb[94].mxu0 }
0x1dc1   : > { %v3516_v4 = vadd.f32 %v3947_v61, %v3515_v3  ;;  %v4364_v5 = vpop.f32.mrb[95].mxu0  ;;  %v3519_v6 = vmax.f32 %v3513_v62, 0.0 }
0x1dc3   : > { %v3520_v19 = vmax.f32 %v3516_v4, 0.0 }
0x1dc5   : > { %v3521_v11 = vpack.c.bf16 %v3520_v19, %v3519_v6 }
0x1dc7   : > { %4374 = vmatmul.mubr.msk.bf16.vlgmr.msra.gmra.mrb[92].mxu1 %vm3532_vm7, %v3521_v11 }
0x1e9a   : > { %v3570_v20 = vpop.f32.mrb[92].mxu1 }
0x1e9b   : > { %v3571_v9 = vadd.f32 %v3949_v7, %v3570_v20  ;;  %v4375_v39 = vpop.f32.mrb[93].mxu1 }
0x1e9c   : > { %v3573_v12 = vpop.f32.mrb[94].mxu1 }
0x1e9d   : > { %v3574_v13 = vadd.f32 %v3949_v7, %v3573_v12  ;;  %v4376_v14 = vpop.f32.mrb[95].mxu1  ;;  %v3577_v15 = vadd.f32 %v3571_v9, %v3464_v48 }
0x1e9f   : > { %v3579_v16 = vsel %vm855_vm2, %v3577_v15, 0.0  ;;  %v3578_v17 = vadd.f32 %v3574_v13, %v3465_v50 }
0x1ea0   : > { %3580 = vadd.xlane.f32.xlu0 %v3579_v16 }
0x1ea1   : > { %v3582_v18 = vsel %vm855_vm2, %v3578_v17, 0.0 }
0x1ea2   : > { %3583 = vadd.xlane.f32.xlu1 %v3582_v18 }
0x1f2d   : > { %v3581_v21 = vpop.xlane.xlu0 %3580 }
0x1f2e   : > { %v3585_v22 = vmul.f32 0.03125, %v3581_v21 }
0x1f2f   : > { %v3584_v8 = vpop.xlane.xlu1 %3583 }
0x1f30   : > { %v3587_v23 = vsub.f32 %v3577_v15, %v3585_v22  ;;  %v3586_v42 = vmul.f32 0.03125, %v3584_v8 }
0x1f32   : > { %v3588_v10 = vsub.f32 %v3578_v17, %v3586_v42  ;;  %v3589_v40 = vmul.f32 %v3587_v23, %v3587_v23 }
0x1f34   : > { %v3591_v63 = vsel %vm855_vm2, %v3589_v40, 0.0  ;;  %v3590_v24 = vmul.f32 %v3588_v10, %v3588_v10 }
0x1f35   : > { %3592 = vadd.xlane.f32.xlu0 %v3591_v63 }
0x1f36   : > { %v3594_v26 = vsel %vm855_vm2, %v3590_v24, 0.0 }
0x1f37   : > { %3595 = vadd.xlane.f32.xlu1 %v3594_v26 }
0x1fc2   : > { %v3593_v27 = vpop.xlane.xlu0 %3592 }
0x1fc3   : > { %v3597_v28 = vmul.f32 0.03125, %v3593_v27 }
0x1fc4   : > { %v3596_v0 = vpop.xlane.xlu1 %3595 }
0x1fc5   : > { %v3599_v30 = vadd.f32 1e-05, %v3597_v28  ;;  %v3598_v1 = vmul.f32 0.03125, %v3596_v0 }
0x1fc7   : > { %4576 = vrsqrt.f32 %v3599_v30  ;;  %v3600_v31 = vadd.f32 1e-05, %v3598_v1 }
0x1fc9   : > { %4578 = vrsqrt.f32 %v3600_v31 }
0x1fd1   : > { %v4577_v55 = vpop.eup %4576 }
0x1fd2   : > { %v3603_v33 = vmul.f32 %v4577_v55, %v3587_v23 }
0x1fd3   : > { %v4579_v34 = vpop.eup %4578 }
0x1fd4   : > { %v3611_v36 = vmul.f32 %v3951_v32, %v3603_v33  ;;  %v3604_v37 = vmul.f32 %v4579_v34, %v3588_v10 }
0x1fd6   : > { %v3612_v29 = vmul.f32 %v3951_v32, %v3604_v37  ;;  %v3619_v59 = vadd.f32 %v3952_v35, %v3611_v36 }
0x1fd8   : > { %v3620_v38 = vadd.f32 %v3952_v35, %v3612_v29  ;;  %3621 = vst.msk [vmem:[#allocation15] sm:$0xff] %vm855_vm2, %v3619_v59 }
0x1fda   : > { %3622 = vst.msk [vmem:[#allocation15 + $0x8] sm:$0xff] %vm855_vm2, %v3620_v38 }
0x1fdb   : > { %4855 = shalt.err (!%p4852_p5)
}
0x1fdc   : > { %s6053_s6 = sld [smem:[#allocation35_spill]] }
0x1fe2   : > { %s4856_s0 = scalar_lea.hbm %s6053_s6, 256 }
0x1fe3   : > { %p4857_p9 = scmp.ne.s32.totalorder %s6053_s6, %s4856_s0  ;;  %p4862_p3 = scmp.lt.u32.totalorder %s4856_s0, %s6053_s6 }
0x1fe5   : > { %p4858_p12 = pnand %p4857_p9, %p4454_p13 }
0x1fe7   : > { %p4859_p11 = pneg %p4858_p12 }
0x1fe9   : > { %p4864_p8 = pnand %p4862_p3, %p4859_p11 }
0x1feb   : > { %4867 = shalt.err (!%p4864_p8)
}
0x1fec   : > { %s4939_s4 = smov 128   ;;  %s4940_s14 = smov 8  }
0x1fed   : > { %4413 = dma.vmem_to_hbm [thread:$0]  (%p4454_p13), %s3630_s24, 256, %s6053_s6, [#allocation4], %s4939_s4, %s4939_s4, %s4940_s14  }
0x1fee   : > { %4901 = dma.done.wait (%p4454_p13), [#allocation4], 256  }
0x1fef   : > { %4903 = vsyncadd (%p4454_p13), [#allocation4], 4294967040 }
0x1ff0 PF: > { %s6054_s16 = sld [smem:[#allocation24_spill]]  ;;  %s6055_s29 = sld [smem:[#allocation21_spill]] }
0x1ff1   : > { %s6056_s30 = sld [smem:[#allocation22_spill]]  ;;  %s6057_s15 = sld [smem:[#allocation25_spill]] }
0x1ff6   : > { %p25_p10 = scmp.ge.s32.totalorder %s6054_s16, 4  }
0x1ff8   :  { %27 = sbr.rel (!%p25_p10) target bundleno = 16 (0x10), region = 191 }
0x1fff   :  { %3645 = vsyncpa [#allocation3], 1 }
0x2000   :  { %3647 = vsyncpa [#allocation3 + $0x1], 1 }
0x2001   :  { %3648 = vsyncpa [#allocation6], 1 }
0x2002   :  { %3649 = vsyncpa [#allocation9], 1 }
0x2003   :  { %3650 = vsyncpa [#allocation4], 1 }
0x2004   :  { %3652 = vsyncpa [#allocation4 + $0x1], 1 }

</bundles_post_ra>
